<compile_context>
chip_gen: v7x
topology: tpu7x:2x2x1
jax: 0.10.0
libtpu: 0.0.40
codegen_flags: <defaults>
</compile_context>

<pallas_src>
import functools

import jax
import jax.numpy as jnp
from jax import lax
from jax.experimental import pallas as pl
from jax.experimental.pallas import tpu as pltpu


# ----------------------------------------------------------------------------
# Fused Pallas kernel: conv -> encoder linear -> dueling heads -> combine
# ----------------------------------------------------------------------------
def _duel_dqn_kernel(x_ref, wc_ref, cb_ref, ew_ref, eb_ref,
                     wh_ref, bh_ref, wo_ref, bo_ref,
                     q_ref, feat_ref, *, l_grid, tb, w2, n_act):
    # x_ref block: (1, 4, S_pad*TB, Cin); rows within a parity plane are
    # ordered (flattened s2d position l, batch b).
    m = l_grid * tb
    cout = wc_ref.shape[2]

    # ---- conv 3x3 / stride 2 (+bias, ReLU) as 9 accumulated matmuls --------
    # Each kernel tap (ki, kj) is a contiguous, 8-aligned row window of the
    # space-to-depth x tile (in-kernel im2col; nothing extra in HBM).
    acc = jnp.zeros((m, cout), jnp.float32)
    for k9 in range(9):
        ki, kj = k9 // 3, k9 % 3
        pq = (ki % 2) * 2 + (kj % 2)          # parity plane of this tap
        s = (ki // 2) * w2 + (kj // 2)        # flat shift on the s2d grid
        slab = x_ref[0, pq, s * tb:(s + l_grid) * tb, :]        # (m, Cin)
        acc = acc + jnp.dot(slab, wc_ref[k9],
                            preferred_element_type=jnp.float32)
    conv = jnp.maximum(acc + cb_ref[...], 0.0)                  # (m, Cout)

    # ---- encoder linear (+bias, ReLU), flatten-free --------------------------
    # Rows are (l, b) ordered, tb % 8 == 0, so this reshape is layout-free.
    conv3 = conv.reshape(l_grid, tb, cout)                      # (L, TB, Cout)
    # Batched matmul over the padded s2d grid; invalid/contaminated positions
    # carry zero encoder weights, so they contribute nothing.
    z = jnp.einsum("lbc,lfc->lbf", conv3, ew_ref[...],
                   preferred_element_type=jnp.float32)          # (L, TB, FEAT)
    feat = jnp.maximum(z.sum(axis=0) + eb_ref[...], 0.0)        # (TB, FEAT)

    # ---- dueling heads: one hidden matmul + one merged output matmul --------
    h = jnp.maximum(
        jnp.dot(feat, wh_ref[...], preferred_element_type=jnp.float32)
        + bh_ref[...], 0.0)                                     # (TB, 2*HID)
    out = (jnp.dot(h, wo_ref[...], preferred_element_type=jnp.float32)
           + bo_ref[...])                                       # (TB, nA+1)
    a = out[:, :n_act]
    v = out[:, n_act:n_act + 1]
    # Dueling combine; mean strictly over the nA advantage columns.
    q_ref[...] = (v + a - jnp.mean(a, axis=1, keepdims=True)).astype(q_ref.dtype)
    feat_ref[...] = feat.astype(feat_ref.dtype)


def _resident(arr):
    """Full-array block with a constant index_map -> stays VMEM-resident."""
    nd = arr.ndim
    return pl.BlockSpec(arr.shape, lambda i, _nd=nd: (0,) * _nd)


# ----------------------------------------------------------------------------
# DuelDQN forward
# ----------------------------------------------------------------------------
def duel_dqn_forward(fparams, x, *, batch_tile=8):
    """x: (B, Cin, H, W) float32 -> (q: (B, nA), features: (B, FEAT))."""
    B, Cin, H, W = x.shape
    assert H % 2 == 0 and W % 2 == 0, "even spatial dims assumed"
    assert batch_tile % 8 == 0
    H2, W2 = H // 2, W // 2
    L = H2 * W2                                   # padded s2d output grid
    S_pad = ((L + W2 + 1 + 7) // 8) * 8           # spatial pad so shifted reads fit

    TB = batch_tile
    B_pad = -(-B // TB) * TB
    n_tiles = B_pad // TB

    nA = fparams["w_o_cat"].shape[1] - 1
    F = fparams["enc_b"].shape[1]

    # Cheap XLA-side space-to-depth relayout of x (no im2col expansion):
    # x_g[t, p*2+q, l*TB + b, cin] = x[t*TB+b, cin, 2*r+p, 2*c+q], l = r*W2+c.
    xp = jnp.pad(x, ((0, B_pad - B), (0, 0), (0, 0), (0, 0)))
    xs = (xp.reshape(B_pad, Cin, H2, 2, W2, 2)
            .transpose(0, 3, 5, 2, 4, 1)          # (b, p, q, r, c, cin)
            .reshape(B_pad, 4, L, Cin))
    xs = jnp.pad(xs, ((0, 0), (0, 0), (0, S_pad - L), (0, 0)))
    x_g = (xs.reshape(n_tiles, TB, 4, S_pad, Cin)
             .transpose(0, 2, 3, 1, 4)            # (t, pq, l, b, cin)
             .reshape(n_tiles, 4, S_pad * TB, Cin))

    kernel = functools.partial(_duel_dqn_kernel,
                               l_grid=L, tb=TB, w2=W2, n_act=nA)

    q_pad, feat_pad = pl.pallas_call(
        kernel,
        out_shape=(jax.ShapeDtypeStruct((B_pad, nA), jnp.float32),
                   jax.ShapeDtypeStruct((B_pad, F), jnp.float32)),
        grid=(n_tiles,),
        in_specs=[
            pl.BlockSpec((1, 4, S_pad * TB, Cin), lambda i: (i, 0, 0, 0)),
            _resident(fparams["conv_w9"]),
            _resident(fparams["conv_b"]),
            _resident(fparams["enc_w3"]),
            _resident(fparams["enc_b"]),
            _resident(fparams["w_h_cat"]),
            _resident(fparams["b_h_cat"]),
            _resident(fparams["w_o_cat"]),
            _resident(fparams["b_o_cat"]),
        ],
        out_specs=(pl.BlockSpec((TB, nA), lambda i: (i, 0)),
                   pl.BlockSpec((TB, F), lambda i: (i, 0))),
        compiler_params=pltpu.CompilerParams(
            dimension_semantics=("parallel",)),
    )(x_g, fparams["conv_w9"], fparams["conv_b"], fparams["enc_w3"],
      fparams["enc_b"], fparams["w_h_cat"], fparams["b_h_cat"],
      fparams["w_o_cat"], fparams["b_o_cat"])
    return q_pad[:B], feat_pad[:B]


# ----------------------------------------------------------------------------
# Parameter init (PyTorch-style layout) and one-time fusion prep
# ----------------------------------------------------------------------------
def init_params(key, cin, cout, h, w, feat_dim, hidden, n_actions):
    oh = (h - 3) // 2 + 1
    ow = (w - 3) // 2 + 1
    flat_dim = cout * oh * ow
    keys = jax.random.split(key, 12)

    def lin(kw_, kb_, fan_in, fan_out):
        s = 1.0 / jnp.sqrt(fan_in)
        wgt = jax.random.uniform(kw_, (fan_in, fan_out), jnp.float32, -s, s)
        bias = jax.random.uniform(kb_, (1, fan_out), jnp.float32, -s, s)
        return wgt, bias

    conv_s = 1.0 / jnp.sqrt(cin * 9)
    params = {
        "conv_w": jax.random.uniform(keys[0], (cout, cin, 3, 3), jnp.float32,
                                     -conv_s, conv_s),
        "conv_b": jax.random.uniform(keys[1], (cout,), jnp.float32,
                                     -conv_s, conv_s),
    }
    params["enc_w"], params["enc_b"] = lin(keys[2], keys[3], flat_dim, feat_dim)
    params["a_h_w"], params["a_h_b"] = lin(keys[4], keys[5], feat_dim, hidden)
    params["a_o_w"], params["a_o_b"] = lin(keys[6], keys[7], hidden, n_actions)
    params["v_h_w"], params["v_h_b"] = lin(keys[8], keys[9], feat_dim, hidden)
    params["v_o_w"], params["v_o_b"] = lin(keys[10], keys[11], hidden, 1)
    return params


def prepare_params(params, h, w):
    """One-time weight re-layout so the whole forward is one fused kernel:
    - conv weight as (9, Cin, Cout) (one matrix per kernel tap),
    - encoder weight as (L, FEAT, Cout) over the padded s2d grid, rows for
      invalid spatial positions zeroed (NCHW-flatten order preserved),
    - head hidden weights concatenated into one (FEAT, 2*HID) matrix,
    - head output weights merged block-diagonally into one (2*HID, nA+1)."""
    cout, cin = params["conv_w"].shape[:2]
    h2, w2 = h // 2, w // 2
    oh, ow = (h - 3) // 2 + 1, (w - 3) // 2 + 1
    L = h2 * w2
    F = params["enc_w"].shape[1]
    HID = params["a_h_w"].shape[1]
    nA = params["a_o_w"].shape[1]

    conv_w9 = params["conv_w"].transpose(2, 3, 1, 0).reshape(9, cin, cout)

    e = params["enc_w"].reshape(cout, oh, ow, F)
    e = jnp.pad(e, ((0, 0), (0, h2 - oh), (0, w2 - ow), (0, 0)))
    enc_w3 = e.transpose(1, 2, 3, 0).reshape(L, F, cout)

    w_o_cat = jnp.concatenate([
        jnp.concatenate([params["a_o_w"], jnp.zeros((HID, 1), jnp.float32)],
                        axis=1),
        jnp.concatenate([jnp.zeros((HID, nA), jnp.float32), params["v_o_w"]],
                        axis=1),
    ], axis=0)
    b_o_cat = jnp.concatenate([params["a_o_b"], params["v_o_b"]], axis=1)

    return {
        "conv_w9": conv_w9,                               # (9, Cin, Cout)
        "conv_b": params["conv_b"].reshape(1, -1),        # (1, Cout)
        "enc_w3": enc_w3,                                 # (L, FEAT, Cout)
        "enc_b": params["enc_b"],                         # (1, FEAT)
        "w_h_cat": jnp.concatenate([params["a_h_w"], params["v_h_w"]], axis=1),
        "b_h_cat": jnp.concatenate([params["a_h_b"], params["v_h_b"]], axis=1),
        "w_o_cat": w_o_cat,                               # (2*HID, nA+1)
        "b_o_cat": b_o_cat,                               # (1, nA+1)
    }


# ----------------------------------------------------------------------------
if __name__ == "__main__":
    B, Cin, H, W = 2, 4, 16, 16          # input x: NCHW
    Cout = 8                              # encoder conv channels
    FEAT = 32                             # encoder.linear_out_dim
    HID = 32                              # mlp_hidden_dims
    N_ACT = 4                             # action_space.n

    key = jax.random.PRNGKey(0)
    k_params, k_x = jax.random.split(key)
    params = init_params(k_params, Cin, Cout, H, W, FEAT, HID, N_ACT)
    fparams = prepare_params(params, H, W)
    x = jax.random.normal(k_x, (B, Cin, H, W), jnp.float32)

    q, feat = jax.jit(duel_dqn_forward)(fparams, x)
    jax.block_until_ready((q, feat))

    # Pure-JAX reference (original, un-fused parameterization), exact fp32.
    def ref_forward(p, xin):
        conv = lax.conv_general_dilated(
            xin, p["conv_w"], (2, 2), "VALID",
            dimension_numbers=("NCHW", "OIHW", "NCHW"),
            precision=lax.Precision.HIGHEST)
        conv = jnp.maximum(conv + p["conv_b"][None, :, None, None], 0.0)
        flat = conv.reshape(xin.shape[0], -1)
        hp = lax.Precision.HIGHEST
        f = jnp.maximum(jnp.dot(flat, p["enc_w"], precision=hp) + p["enc_b"], 0.0)
        ha = jnp.maximum(jnp.dot(f, p["a_h_w"], precision=hp) + p["a_h_b"], 0.0)
        hv = jnp.maximum(jnp.dot(f, p["v_h_w"], precision=hp) + p["v_h_b"], 0.0)
        a = jnp.dot(ha, p["a_o_w"], precision=hp) + p["a_o_b"]
        v = jnp.dot(hv, p["v_o_w"], precision=hp) + p["v_o_b"]
        return v + a - a.mean(axis=1, keepdims=True), f

    q_ref, feat_ref = ref_forward(params, x)
    assert q.shape == (B, N_ACT) and feat.shape == (B, FEAT)
    assert jnp.allclose(q, q_ref, atol=1e-4), "q mismatch vs reference"
    assert jnp.allclose(feat, feat_ref, atol=1e-4), "feature mismatch vs reference"

    print("KERNEL_OK")
</pallas_src>

<mosaic_0001>
module attributes {stable_mosaic.version = 11 : i64} {
  func.func @_duel_dqn_kernel(%arg0: i32, %arg1: memref<1x4x640x4xf32, #tpu.memory_space<vmem>>, %arg2: memref<9x4x8xf32, #tpu.memory_space<vmem>>, %arg3: memref<1x8xf32, #tpu.memory_space<vmem>>, %arg4: memref<64x32x8xf32, #tpu.memory_space<vmem>>, %arg5: memref<1x32xf32, #tpu.memory_space<vmem>>, %arg6: memref<32x64xf32, #tpu.memory_space<vmem>>, %arg7: memref<1x64xf32, #tpu.memory_space<vmem>>, %arg8: memref<64x5xf32, #tpu.memory_space<vmem>>, %arg9: memref<1x5xf32, #tpu.memory_space<vmem>>, %arg10: memref<8x4xf32, #tpu.memory_space<vmem>>, %arg11: memref<8x32xf32, #tpu.memory_space<vmem>>) attributes {dimension_semantics = [#tpu.dimension_semantics<parallel>], iteration_bounds = array<i64: 1>, scalar_prefetch = 0 : i64, scratch_operands = 0 : i64, tpu.core_type = #tpu.core_type<tc>, window_params = [{transform_indices = @transform_0, window_bounds = array<i64: 1, 4, 640, 4>}, {pipeline_mode = #tpu.pipeline_mode<synchronous>, transform_indices = @transform_1, window_bounds = array<i64: 9, 4, 8>}, {pipeline_mode = #tpu.pipeline_mode<synchronous>, transform_indices = @transform_2, window_bounds = array<i64: 1, 8>}, {pipeline_mode = #tpu.pipeline_mode<synchronous>, transform_indices = @transform_3, window_bounds = array<i64: 64, 32, 8>}, {pipeline_mode = #tpu.pipeline_mode<synchronous>, transform_indices = @transform_4, window_bounds = array<i64: 1, 32>}, {pipeline_mode = #tpu.pipeline_mode<synchronous>, transform_indices = @transform_5, window_bounds = array<i64: 32, 64>}, {pipeline_mode = #tpu.pipeline_mode<synchronous>, transform_indices = @transform_6, window_bounds = array<i64: 1, 64>}, {pipeline_mode = #tpu.pipeline_mode<synchronous>, transform_indices = @transform_7, window_bounds = array<i64: 64, 5>}, {pipeline_mode = #tpu.pipeline_mode<synchronous>, transform_indices = @transform_8, window_bounds = array<i64: 1, 5>}, {transform_indices = @transform_9, window_bounds = array<i64: 8, 4>}, {transform_indices = @transform_10, window_bounds = array<i64: 8, 32>}]} {
    %cst = arith.constant 0.000000e+00 : f32
    %0 = vector.broadcast %cst : f32 to vector<512x8xf32>
    %c0 = arith.constant 0 : index
    %c0_0 = arith.constant 0 : index
    %c0_1 = arith.constant 0 : index
    %c0_2 = arith.constant 0 : index
    %1 = vector.load %arg1[%c0, %c0_0, %c0_1, %c0_2] : memref<1x4x640x4xf32, #tpu.memory_space<vmem>>, vector<1x1x512x4xf32>
    %2 = vector.shape_cast %1 : vector<1x1x512x4xf32> to vector<512x4xf32>
    %c0_3 = arith.constant 0 : index
    %c0_4 = arith.constant 0 : index
    %c0_5 = arith.constant 0 : index
    %3 = vector.load %arg2[%c0_3, %c0_4, %c0_5] : memref<9x4x8xf32, #tpu.memory_space<vmem>>, vector<1x4x8xf32>
    %4 = vector.shape_cast %3 : vector<1x4x8xf32> to vector<4x8xf32>
    %cst_6 = arith.constant dense<0.000000e+00> : vector<512x8xf32>
    %5 = tpu.matmul %2, %4, %cst_6 {dimension_numbers = #tpu.dot_dimension_numbers<[1], [0], [0], [1], [0, 0, 1, 1], [], []>} : vector<512x4xf32>, vector<4x8xf32>, vector<512x8xf32> -> vector<512x8xf32>
    %6 = arith.addf %0, %5 : vector<512x8xf32>
    %c0_7 = arith.constant 0 : index
    %c1 = arith.constant 1 : index
    %c0_8 = arith.constant 0 : index
    %c0_9 = arith.constant 0 : index
    %7 = vector.load %arg1[%c0_7, %c1, %c0_8, %c0_9] : memref<1x4x640x4xf32, #tpu.memory_space<vmem>>, vector<1x1x512x4xf32>
    %8 = vector.shape_cast %7 : vector<1x1x512x4xf32> to vector<512x4xf32>
    %c1_10 = arith.constant 1 : index
    %c0_11 = arith.constant 0 : index
    %c0_12 = arith.constant 0 : index
    %9 = vector.load %arg2[%c1_10, %c0_11, %c0_12] : memref<9x4x8xf32, #tpu.memory_space<vmem>>, vector<1x4x8xf32>
    %10 = vector.shape_cast %9 : vector<1x4x8xf32> to vector<4x8xf32>
    %cst_13 = arith.constant dense<0.000000e+00> : vector<512x8xf32>
    %11 = tpu.matmul %8, %10, %cst_13 {dimension_numbers = #tpu.dot_dimension_numbers<[1], [0], [0], [1], [0, 0, 1, 1], [], []>} : vector<512x4xf32>, vector<4x8xf32>, vector<512x8xf32> -> vector<512x8xf32>
    %12 = arith.addf %6, %11 : vector<512x8xf32>
    %c0_14 = arith.constant 0 : index
    %c0_15 = arith.constant 0 : index
    %c8 = arith.constant 8 : index
    %c0_16 = arith.constant 0 : index
    %13 = vector.load %arg1[%c0_14, %c0_15, %c8, %c0_16] : memref<1x4x640x4xf32, #tpu.memory_space<vmem>>, vector<1x1x512x4xf32>
    %14 = vector.shape_cast %13 : vector<1x1x512x4xf32> to vector<512x4xf32>
    %c2 = arith.constant 2 : index
    %c0_17 = arith.constant 0 : index
    %c0_18 = arith.constant 0 : index
    %15 = vector.load %arg2[%c2, %c0_17, %c0_18] : memref<9x4x8xf32, #tpu.memory_space<vmem>>, vector<1x4x8xf32>
    %16 = vector.shape_cast %15 : vector<1x4x8xf32> to vector<4x8xf32>
    %cst_19 = arith.constant dense<0.000000e+00> : vector<512x8xf32>
    %17 = tpu.matmul %14, %16, %cst_19 {dimension_numbers = #tpu.dot_dimension_numbers<[1], [0], [0], [1], [0, 0, 1, 1], [], []>} : vector<512x4xf32>, vector<4x8xf32>, vector<512x8xf32> -> vector<512x8xf32>
    %18 = arith.addf %12, %17 : vector<512x8xf32>
    %c0_20 = arith.constant 0 : index
    %c2_21 = arith.constant 2 : index
    %c0_22 = arith.constant 0 : index
    %c0_23 = arith.constant 0 : index
    %19 = vector.load %arg1[%c0_20, %c2_21, %c0_22, %c0_23] : memref<1x4x640x4xf32, #tpu.memory_space<vmem>>, vector<1x1x512x4xf32>
    %20 = vector.shape_cast %19 : vector<1x1x512x4xf32> to vector<512x4xf32>
    %c3 = arith.constant 3 : index
    %c0_24 = arith.constant 0 : index
    %c0_25 = arith.constant 0 : index
    %21 = vector.load %arg2[%c3, %c0_24, %c0_25] : memref<9x4x8xf32, #tpu.memory_space<vmem>>, vector<1x4x8xf32>
    %22 = vector.shape_cast %21 : vector<1x4x8xf32> to vector<4x8xf32>
    %cst_26 = arith.constant dense<0.000000e+00> : vector<512x8xf32>
    %23 = tpu.matmul %20, %22, %cst_26 {dimension_numbers = #tpu.dot_dimension_numbers<[1], [0], [0], [1], [0, 0, 1, 1], [], []>} : vector<512x4xf32>, vector<4x8xf32>, vector<512x8xf32> -> vector<512x8xf32>
    %24 = arith.addf %18, %23 : vector<512x8xf32>
    %c0_27 = arith.constant 0 : index
    %c3_28 = arith.constant 3 : index
    %c0_29 = arith.constant 0 : index
    %c0_30 = arith.constant 0 : index
    %25 = vector.load %arg1[%c0_27, %c3_28, %c0_29, %c0_30] : memref<1x4x640x4xf32, #tpu.memory_space<vmem>>, vector<1x1x512x4xf32>
    %26 = vector.shape_cast %25 : vector<1x1x512x4xf32> to vector<512x4xf32>
    %c4 = arith.constant 4 : index
    %c0_31 = arith.constant 0 : index
    %c0_32 = arith.constant 0 : index
    %27 = vector.load %arg2[%c4, %c0_31, %c0_32] : memref<9x4x8xf32, #tpu.memory_space<vmem>>, vector<1x4x8xf32>
    %28 = vector.shape_cast %27 : vector<1x4x8xf32> to vector<4x8xf32>
    %cst_33 = arith.constant dense<0.000000e+00> : vector<512x8xf32>
    %29 = tpu.matmul %26, %28, %cst_33 {dimension_numbers = #tpu.dot_dimension_numbers<[1], [0], [0], [1], [0, 0, 1, 1], [], []>} : vector<512x4xf32>, vector<4x8xf32>, vector<512x8xf32> -> vector<512x8xf32>
    %30 = arith.addf %24, %29 : vector<512x8xf32>
    %c0_34 = arith.constant 0 : index
    %c2_35 = arith.constant 2 : index
    %c8_36 = arith.constant 8 : index
    %c0_37 = arith.constant 0 : index
    %31 = vector.load %arg1[%c0_34, %c2_35, %c8_36, %c0_37] : memref<1x4x640x4xf32, #tpu.memory_space<vmem>>, vector<1x1x512x4xf32>
    %32 = vector.shape_cast %31 : vector<1x1x512x4xf32> to vector<512x4xf32>
    %c5 = arith.constant 5 : index
    %c0_38 = arith.constant 0 : index
    %c0_39 = arith.constant 0 : index
    %33 = vector.load %arg2[%c5, %c0_38, %c0_39] : memref<9x4x8xf32, #tpu.memory_space<vmem>>, vector<1x4x8xf32>
    %34 = vector.shape_cast %33 : vector<1x4x8xf32> to vector<4x8xf32>
    %cst_40 = arith.constant dense<0.000000e+00> : vector<512x8xf32>
    %35 = tpu.matmul %32, %34, %cst_40 {dimension_numbers = #tpu.dot_dimension_numbers<[1], [0], [0], [1], [0, 0, 1, 1], [], []>} : vector<512x4xf32>, vector<4x8xf32>, vector<512x8xf32> -> vector<512x8xf32>
    %36 = arith.addf %30, %35 : vector<512x8xf32>
    %c0_41 = arith.constant 0 : index
    %c0_42 = arith.constant 0 : index
    %c64 = arith.constant 64 : index
    %c0_43 = arith.constant 0 : index
    %37 = vector.load %arg1[%c0_41, %c0_42, %c64, %c0_43] : memref<1x4x640x4xf32, #tpu.memory_space<vmem>>, vector<1x1x512x4xf32>
    %38 = vector.shape_cast %37 : vector<1x1x512x4xf32> to vector<512x4xf32>
    %c6 = arith.constant 6 : index
    %c0_44 = arith.constant 0 : index
    %c0_45 = arith.constant 0 : index
    %39 = vector.load %arg2[%c6, %c0_44, %c0_45] : memref<9x4x8xf32, #tpu.memory_space<vmem>>, vector<1x4x8xf32>
    %40 = vector.shape_cast %39 : vector<1x4x8xf32> to vector<4x8xf32>
    %cst_46 = arith.constant dense<0.000000e+00> : vector<512x8xf32>
    %41 = tpu.matmul %38, %40, %cst_46 {dimension_numbers = #tpu.dot_dimension_numbers<[1], [0], [0], [1], [0, 0, 1, 1], [], []>} : vector<512x4xf32>, vector<4x8xf32>, vector<512x8xf32> -> vector<512x8xf32>
    %42 = arith.addf %36, %41 : vector<512x8xf32>
    %c0_47 = arith.constant 0 : index
    %c1_48 = arith.constant 1 : index
    %c64_49 = arith.constant 64 : index
    %c0_50 = arith.constant 0 : index
    %43 = vector.load %arg1[%c0_47, %c1_48, %c64_49, %c0_50] : memref<1x4x640x4xf32, #tpu.memory_space<vmem>>, vector<1x1x512x4xf32>
    %44 = vector.shape_cast %43 : vector<1x1x512x4xf32> to vector<512x4xf32>
    %c7 = arith.constant 7 : index
    %c0_51 = arith.constant 0 : index
    %c0_52 = arith.constant 0 : index
    %45 = vector.load %arg2[%c7, %c0_51, %c0_52] : memref<9x4x8xf32, #tpu.memory_space<vmem>>, vector<1x4x8xf32>
    %46 = vector.shape_cast %45 : vector<1x4x8xf32> to vector<4x8xf32>
    %cst_53 = arith.constant dense<0.000000e+00> : vector<512x8xf32>
    %47 = tpu.matmul %44, %46, %cst_53 {dimension_numbers = #tpu.dot_dimension_numbers<[1], [0], [0], [1], [0, 0, 1, 1], [], []>} : vector<512x4xf32>, vector<4x8xf32>, vector<512x8xf32> -> vector<512x8xf32>
    %48 = arith.addf %42, %47 : vector<512x8xf32>
    %c0_54 = arith.constant 0 : index
    %c0_55 = arith.constant 0 : index
    %c72 = arith.constant 72 : index
    %c0_56 = arith.constant 0 : index
    %49 = vector.load %arg1[%c0_54, %c0_55, %c72, %c0_56] : memref<1x4x640x4xf32, #tpu.memory_space<vmem>>, vector<1x1x512x4xf32>
    %50 = vector.shape_cast %49 : vector<1x1x512x4xf32> to vector<512x4xf32>
    %c8_57 = arith.constant 8 : index
    %c0_58 = arith.constant 0 : index
    %c0_59 = arith.constant 0 : index
    %51 = vector.load %arg2[%c8_57, %c0_58, %c0_59] : memref<9x4x8xf32, #tpu.memory_space<vmem>>, vector<1x4x8xf32>
    %52 = vector.shape_cast %51 : vector<1x4x8xf32> to vector<4x8xf32>
    %cst_60 = arith.constant dense<0.000000e+00> : vector<512x8xf32>
    %53 = tpu.matmul %50, %52, %cst_60 {dimension_numbers = #tpu.dot_dimension_numbers<[1], [0], [0], [1], [0, 0, 1, 1], [], []>} : vector<512x4xf32>, vector<4x8xf32>, vector<512x8xf32> -> vector<512x8xf32>
    %54 = arith.addf %48, %53 : vector<512x8xf32>
    %c0_61 = arith.constant 0 : index
    %c0_62 = arith.constant 0 : index
    %55 = vector.load %arg3[%c0_61, %c0_62] : memref<1x8xf32, #tpu.memory_space<vmem>>, vector<1x8xf32>
    %56 = vector.broadcast %55 : vector<1x8xf32> to vector<512x8xf32>
    %57 = arith.addf %54, %56 : vector<512x8xf32>
    %cst_63 = arith.constant 0.000000e+00 : f32
    %58 = vector.broadcast %cst_63 : f32 to vector<512x8xf32>
    %59 = arith.maximumf %57, %58 : vector<512x8xf32>
    %60 = vector.shape_cast %59 : vector<512x8xf32> to vector<64x8x8xf32>
    %c0_64 = arith.constant 0 : index
    %c0_65 = arith.constant 0 : index
    %c0_66 = arith.constant 0 : index
    %61 = vector.load %arg4[%c0_64, %c0_65, %c0_66] : memref<64x32x8xf32, #tpu.memory_space<vmem>>, vector<64x32x8xf32>
    "tpu.trace_start"() <{level = 10 : i32, message = "lbc,lfc->lbf"}> : () -> ()
    %cst_67 = arith.constant dense<0.000000e+00> : vector<64x8x32xf32>
    %62 = tpu.matmul %60, %61, %cst_67 {dimension_numbers = #tpu.dot_dimension_numbers<[2], [2], [1], [1], [0, 0, 0, 1, 1, 1], [0], [0]>} : vector<64x8x8xf32>, vector<64x32x8xf32>, vector<64x8x32xf32> -> vector<64x8x32xf32>
    "tpu.trace_stop"() : () -> ()
    %cst_68 = arith.constant dense<0.000000e+00> : vector<8x32xf32>
    %63 = vector.multi_reduction <add>, %62, %cst_68 [0] : vector<64x8x32xf32> to vector<8x32xf32>
    %c0_69 = arith.constant 0 : index
    %c0_70 = arith.constant 0 : index
    %64 = vector.load %arg5[%c0_69, %c0_70] : memref<1x32xf32, #tpu.memory_space<vmem>>, vector<1x32xf32>
    %65 = vector.broadcast %64 : vector<1x32xf32> to vector<8x32xf32>
    %66 = arith.addf %63, %65 : vector<8x32xf32>
    %cst_71 = arith.constant 0.000000e+00 : f32
    %67 = vector.broadcast %cst_71 : f32 to vector<8x32xf32>
    %68 = arith.maximumf %66, %67 : vector<8x32xf32>
    %c0_72 = arith.constant 0 : index
    %c0_73 = arith.constant 0 : index
    %69 = vector.load %arg6[%c0_72, %c0_73] : memref<32x64xf32, #tpu.memory_space<vmem>>, vector<32x64xf32>
    %cst_74 = arith.constant dense<0.000000e+00> : vector<8x64xf32>
    %70 = tpu.matmul %68, %69, %cst_74 {dimension_numbers = #tpu.dot_dimension_numbers<[1], [0], [0], [1], [0, 0, 1, 1], [], []>} : vector<8x32xf32>, vector<32x64xf32>, vector<8x64xf32> -> vector<8x64xf32>
    %c0_75 = arith.constant 0 : index
    %c0_76 = arith.constant 0 : index
    %71 = vector.load %arg7[%c0_75, %c0_76] : memref<1x64xf32, #tpu.memory_space<vmem>>, vector<1x64xf32>
    %72 = vector.broadcast %71 : vector<1x64xf32> to vector<8x64xf32>
    %73 = arith.addf %70, %72 : vector<8x64xf32>
    %cst_77 = arith.constant 0.000000e+00 : f32
    %74 = vector.broadcast %cst_77 : f32 to vector<8x64xf32>
    %75 = arith.maximumf %73, %74 : vector<8x64xf32>
    %c0_78 = arith.constant 0 : index
    %c0_79 = arith.constant 0 : index
    %76 = vector.load %arg8[%c0_78, %c0_79] : memref<64x5xf32, #tpu.memory_space<vmem>>, vector<64x5xf32>
    %cst_80 = arith.constant dense<0.000000e+00> : vector<8x5xf32>
    %77 = tpu.matmul %75, %76, %cst_80 {dimension_numbers = #tpu.dot_dimension_numbers<[1], [0], [0], [1], [0, 0, 1, 1], [], []>} : vector<8x64xf32>, vector<64x5xf32>, vector<8x5xf32> -> vector<8x5xf32>
    %c0_81 = arith.constant 0 : index
    %c0_82 = arith.constant 0 : index
    %78 = vector.load %arg9[%c0_81, %c0_82] : memref<1x5xf32, #tpu.memory_space<vmem>>, vector<1x5xf32>
    %79 = vector.broadcast %78 : vector<1x5xf32> to vector<8x5xf32>
    %80 = arith.addf %77, %79 : vector<8x5xf32>
    %81 = vector.extract_strided_slice %80 {offsets = [0, 0], sizes = [8, 4], strides = [1, 1]} : vector<8x5xf32> to vector<8x4xf32>
    %82 = vector.extract_strided_slice %80 {offsets = [0, 4], sizes = [8, 1], strides = [1, 1]} : vector<8x5xf32> to vector<8x1xf32>
    %83 = vector.broadcast %82 : vector<8x1xf32> to vector<8x4xf32>
    %84 = arith.addf %83, %81 : vector<8x4xf32>
    %cst_83 = arith.constant dense<0.000000e+00> : vector<8xf32>
    %85 = vector.multi_reduction <add>, %81, %cst_83 [1] : vector<8x4xf32> to vector<8xf32>
    %86 = vector.shape_cast %85 : vector<8xf32> to vector<8x1xf32>
    %cst_84 = arith.constant 4.000000e+00 : f32
    %87 = vector.broadcast %cst_84 : f32 to vector<8x1xf32>
    %88 = arith.divf %86, %87 : vector<8x1xf32>
    %89 = vector.broadcast %88 : vector<8x1xf32> to vector<8x4xf32>
    %90 = arith.subf %84, %89 : vector<8x4xf32>
    %c0_85 = arith.constant 0 : index
    %c0_86 = arith.constant 0 : index
    %91 = vector.load %arg10[%c0_85, %c0_86] : memref<8x4xf32, #tpu.memory_space<vmem>>, vector<8x4xf32>
    tpu.vector_store %arg10[%c0_85, %c0_86], %90 {strides = array<i32>} : memref<8x4xf32, #tpu.memory_space<vmem>>, vector<8x4xf32>,
    %c0_87 = arith.constant 0 : index
    %c0_88 = arith.constant 0 : index
    %92 = vector.load %arg11[%c0_87, %c0_88] : memref<8x32xf32, #tpu.memory_space<vmem>>, vector<8x32xf32>
    tpu.vector_store %arg11[%c0_87, %c0_88], %68 {strides = array<i32>} : memref<8x32xf32, #tpu.memory_space<vmem>>, vector<8x32xf32>,
    return
  }
  func.func @transform_0(%arg0: i32) -> (i32, i32, i32, i32) {
    %c0_i32 = arith.constant 0 : i32
    %c0_i32_0 = arith.constant 0 : i32
    %c0_i32_1 = arith.constant 0 : i32
    %c0_i32_2 = arith.constant 0 : i32
    return %arg0, %c0_i32, %c0_i32_0, %c0_i32_1 : i32, i32, i32, i32
  }
  func.func @transform_1(%arg0: i32) -> (i32, i32, i32) {
    %c0_i32 = arith.constant 0 : i32
    %c0_i32_0 = arith.constant 0 : i32
    %c0_i32_1 = arith.constant 0 : i32
    %c0_i32_2 = arith.constant 0 : i32
    return %c0_i32, %c0_i32_0, %c0_i32_1 : i32, i32, i32
  }
  func.func @transform_2(%arg0: i32) -> (i32, i32) {
    %c0_i32 = arith.constant 0 : i32
    %c0_i32_0 = arith.constant 0 : i32
    %c0_i32_1 = arith.constant 0 : i32
    return %c0_i32, %c0_i32_0 : i32, i32
  }
  func.func @transform_3(%arg0: i32) -> (i32, i32, i32) {
    %c0_i32 = arith.constant 0 : i32
    %c0_i32_0 = arith.constant 0 : i32
    %c0_i32_1 = arith.constant 0 : i32
    %c0_i32_2 = arith.constant 0 : i32
    return %c0_i32, %c0_i32_0, %c0_i32_1 : i32, i32, i32
  }
  func.func @transform_4(%arg0: i32) -> (i32, i32) {
    %c0_i32 = arith.constant 0 : i32
    %c0_i32_0 = arith.constant 0 : i32
    %c0_i32_1 = arith.constant 0 : i32
    return %c0_i32, %c0_i32_0 : i32, i32
  }
  func.func @transform_5(%arg0: i32) -> (i32, i32) {
    %c0_i32 = arith.constant 0 : i32
    %c0_i32_0 = arith.constant 0 : i32
    %c0_i32_1 = arith.constant 0 : i32
    return %c0_i32, %c0_i32_0 : i32, i32
  }
  func.func @transform_6(%arg0: i32) -> (i32, i32) {
    %c0_i32 = arith.constant 0 : i32
    %c0_i32_0 = arith.constant 0 : i32
    %c0_i32_1 = arith.constant 0 : i32
    return %c0_i32, %c0_i32_0 : i32, i32
  }
  func.func @transform_7(%arg0: i32) -> (i32, i32) {
    %c0_i32 = arith.constant 0 : i32
    %c0_i32_0 = arith.constant 0 : i32
    %c0_i32_1 = arith.constant 0 : i32
    return %c0_i32, %c0_i32_0 : i32, i32
  }
  func.func @transform_8(%arg0: i32) -> (i32, i32) {
    %c0_i32 = arith.constant 0 : i32
    %c0_i32_0 = arith.constant 0 : i32
    %c0_i32_1 = arith.constant 0 : i32
    return %c0_i32, %c0_i32_0 : i32, i32
  }
  func.func @transform_9(%arg0: i32) -> (i32, i32) {
    %c0_i32 = arith.constant 0 : i32
    %c0_i32_0 = arith.constant 0 : i32
    return %arg0, %c0_i32 : i32, i32
  }
  func.func @transform_10(%arg0: i32) -> (i32, i32) {
    %c0_i32 = arith.constant 0 : i32
    %c0_i32_0 = arith.constant 0 : i32
    return %arg0, %c0_i32 : i32, i32
  }
}

</mosaic_0001>

<bundles_post_ra>
// kernel: duel_dqn_forward.1
= control target key start
LH: loop header
LB: loop body
LE: loop exit
PB: predicated region body
PF: predicated region fallthrough
CT: control target
= control target key end

     0   :  { %vm359_vm0 = vcmask 1043456   ;;  %vm166_vm1 = vcmask 31744   ;;  %vm6691_vm2 = vcmask 64512   ;;  %vm17291_vm4 = vmmov 0   ;;  %s21767_s1 = inlined_call_operand.vmem [shape: f32[9,4,8], index: 1, kind: input, shape index: {}]   ;;  %s21768_s0 = inlined_call_operand.vmem [shape: f32[1,4,640,4], index: 0, kind: input, shape index: {}]   ;;  %s21769_s3 = inlined_call_operand.vmem [shape: f32[64,32,8], index: 3, kind: input, shape index: {}]   ;;  %s21770_s2 = inlined_call_operand.vmem [shape: f32[1,8], index: 2, kind: input, shape index: {}]   ;;  %s21771_s5 = inlined_call_operand.vmem [shape: f32[32,64], index: 5, kind: input, shape index: {}]   ;;  %s21772_s4 = inlined_call_operand.vmem [shape: f32[1,32], index: 4, kind: input, shape index: {}]   ;;  %s21773_s7 = inlined_call_operand.vmem [shape: f32[64,5], index: 7, kind: input, shape index: {}]   ;;  %s21774_s10 = inlined_call_operand.vmem [shape: f32[8,32], index: 10, kind: output, shape index: {1}]   ;;  %s21775_s6 = inlined_call_operand.vmem [shape: f32[1,64], index: 6, kind: input, shape index: {}]   ;;  %s21776_s8 = inlined_call_operand.vmem [shape: f32[1,5], index: 8, kind: input, shape index: {}]   ;;  %s21777_s9 = inlined_call_operand.vmem [shape: f32[8,4], index: 9, kind: output, shape index: {0}]  }
   0x1   :  { %v12529_v0 = vld [vmem:[%s21767_s1 + $0x4] sm:$0xf]  ;;  %v12466_v2 = vld [vmem:[%s21768_s0 + $0x288] sm:$0xff]  ;;  %v98_v3 = vld [vmem:[%s21767_s1] sm:$0xf]  ;;  %vm12132_vm5 = vcmask 261120  }
   0x2   :  { %v12465_v1 = vld [vmem:[%s21768_s0 + $0x280] sm:$0xff]  ;;  %14623 = vmatprep.subr.msk.mxu0 %vm359_vm0, %v12529_v0  ;;  %v12467_v4 = vld [vmem:[%s21768_s0 + $0x290] sm:$0xff]  ;;  %16769 = vmatprep.subr.msk.mxu1 %vm359_vm0, %v12529_v0  ;;  %v12468_v5 = vld [vmem:[%s21768_s0 + $0x298] sm:$0xff]  ;;  %vm12369_vm6 = vcmask 523264  }
   0x3   :  { %14625 = vmatprep.mubr.msk.f32.mxu0 %vm166_vm1, %v12465_v1  ;;  %14624 = vmatpush3.msk.msra.mxu0 %vm359_vm0, %v12529_v0  ;;  %v12469_v6 = vld [vmem:[%s21768_s0 + $0x2a0] sm:$0xff]  ;;  %v12470_v7 = vld [vmem:[%s21768_s0 + $0x2a8] sm:$0xff]  ;;  %v12471_v8 = vld [vmem:[%s21768_s0 + $0x2b0] sm:$0xff] }
   0x4   :  { %14626 = vmatmul.mubr.msk.f32.vlgmr.msra.gmra.mrb[0].mxu0 %vm166_vm1, %v12466_v2  ;;  %14721 = vmatprep.subr.msk.mxu0 %vm359_vm0, %v98_v3  ;;  %v12472_v9 = vld [vmem:[%s21768_s0 + $0x2b8] sm:$0xff]  ;;  %v12473_v10 = vld [vmem:[%s21768_s0 + $0x2c0] sm:$0xff]  ;;  %v17398_v11 = vld [vmem:[%s21767_s1 + $0x8] sm:$0xf] }
   0x5   :  { %14722 = vmatpush3.msk.msra.mxu0 %vm359_vm0, %v98_v3  ;;  %14628 = vmatprep.mubr.msk.f32.mxu0 %vm166_vm1, %v12467_v4  ;;  %v12474_v12 = vld [vmem:[%s21768_s0 + $0x2c8] sm:$0xff]  ;;  %v12475_v13 = vld [vmem:[%s21768_s0 + $0x2d0] sm:$0xff]  ;;  %v12476_v14 = vld [vmem:[%s21768_s0 + $0x2d8] sm:$0xff] }
   0x6   :  { %16770 = vmatpush3.msk.msra.mxu1 %vm359_vm0, %v12529_v0  ;;  %14819 = vmatprep.subr.msk.mxu0 %vm359_vm0, %v17398_v11  ;;  %v12477_v15 = vld [vmem:[%s21768_s0 + $0x2e0] sm:$0xff]  ;;  %v12478_v16 = vld [vmem:[%s21768_s0 + $0x2e8] sm:$0xff]  ;;  %v12479_v17 = vld [vmem:[%s21768_s0 + $0x2f0] sm:$0xff] }
   0x7   :  { %v12480_v18 = vld [vmem:[%s21768_s0 + $0x2f8] sm:$0xff]  ;;  %v12481_v19 = vld [vmem:[%s21768_s0 + $0x300] sm:$0xff]  ;;  %v12482_v20 = vld [vmem:[%s21768_s0 + $0x308] sm:$0xff] }
   0x8   :  { %14629 = vmatmul.mubr.msk.f32.gmra.mrb[2].mxu0 %vm166_vm1, %v12468_v5  ;;  %v12483_v21 = vld [vmem:[%s21768_s0 + $0x310] sm:$0xff]  ;;  %v12484_v22 = vld [vmem:[%s21768_s0 + $0x318] sm:$0xff]  ;;  %v12485_v23 = vld [vmem:[%s21768_s0 + $0x320] sm:$0xff] }
   0x9   :  { %14631 = vmatprep.mubr.msk.f32.mxu0 %vm166_vm1, %v12469_v6  ;;  %v12486_v24 = vld [vmem:[%s21768_s0 + $0x328] sm:$0xff]  ;;  %v12487_v25 = vld [vmem:[%s21768_s0 + $0x330] sm:$0xff]  ;;  %v12488_v26 = vld [vmem:[%s21768_s0 + $0x338] sm:$0xff] }
   0xa   :  { %v12489_v27 = vld [vmem:[%s21768_s0 + $0x340] sm:$0xff]  ;;  %v12490_v28 = vld [vmem:[%s21768_s0 + $0x348] sm:$0xff]  ;;  %v12491_v29 = vld [vmem:[%s21768_s0 + $0x350] sm:$0xff] }
   0xb   :  { %v12492_v30 = vld [vmem:[%s21768_s0 + $0x358] sm:$0xff]  ;;  %v12493_v31 = vld [vmem:[%s21768_s0 + $0x360] sm:$0xff]  ;;  %v12494_v32 = vld [vmem:[%s21768_s0 + $0x368] sm:$0xff] }
   0xc   :  { %14632 = vmatmul.mubr.msk.f32.gmra.mrb[4].mxu0 %vm166_vm1, %v12470_v7  ;;  %v12495_v33 = vld [vmem:[%s21768_s0 + $0x370] sm:$0xff]  ;;  %v12496_v34 = vld [vmem:[%s21768_s0 + $0x378] sm:$0xff]  ;;  %v12497_v35 = vld [vmem:[%s21768_s0 + $0x380] sm:$0xff] }
   0xd   :  { %14634 = vmatprep.mubr.msk.f32.mxu0 %vm166_vm1, %v12471_v8  ;;  %v12498_v36 = vld [vmem:[%s21768_s0 + $0x388] sm:$0xff]  ;;  %v12499_v37 = vld [vmem:[%s21768_s0 + $0x390] sm:$0xff]  ;;  %v12500_v38 = vld [vmem:[%s21768_s0 + $0x398] sm:$0xff] }
   0xe   :  { %v34_v39 = vld [vmem:[%s21768_s0] sm:$0xff]  ;;  %v17519_v40 = vld [vmem:[%s21768_s0 + $0x8] sm:$0xff]  ;;  %v17524_v41 = vld [vmem:[%s21768_s0 + $0x10] sm:$0xff] }
   0xf   :  { %v17531_v42 = vld [vmem:[%s21767_s1 + $0xc] sm:$0xf]  ;;  %v17540_v43 = vld [vmem:[%s21768_s0 + $0x18] sm:$0xff]  ;;  %v17545_v44 = vld [vmem:[%s21768_s0 + $0x20] sm:$0xff] }
  0x10   :  { %14635 = vmatmul.mubr.msk.f32.gmra.mrb[6].mxu0 %vm166_vm1, %v12472_v9  ;;  %v17556_v45 = vld [vmem:[%s21768_s0 + $0x28] sm:$0xff]  ;;  %v17561_v46 = vld [vmem:[%s21768_s0 + $0x30] sm:$0xff]  ;;  %v17570_v47 = vld [vmem:[%s21768_s0 + $0x38] sm:$0xff] }
  0x11   :  { %14637 = vmatprep.mubr.msk.f32.mxu0 %vm166_vm1, %v12473_v10  ;;  %v17575_v48 = vld [vmem:[%s21768_s0 + $0x40] sm:$0xff]  ;;  %v17584_v49 = vld [vmem:[%s21768_s0 + $0x48] sm:$0xff]  ;;  %v17589_v50 = vld [vmem:[%s21768_s0 + $0x50] sm:$0xff] }
  0x12   :  { %v17598_v51 = vld [vmem:[%s21768_s0 + $0x58] sm:$0xff]  ;;  %v17603_v52 = vld [vmem:[%s21768_s0 + $0x60] sm:$0xff]  ;;  %v17612_v53 = vld [vmem:[%s21768_s0 + $0x68] sm:$0xff] }
  0x13   :  { %v17617_v54 = vld [vmem:[%s21768_s0 + $0x70] sm:$0xff]  ;;  %v17626_v55 = vld [vmem:[%s21768_s0 + $0x78] sm:$0xff]  ;;  %v17631_v56 = vld [vmem:[%s21768_s0 + $0x80] sm:$0xff] }
  0x14   :  { %14638 = vmatmul.mubr.msk.f32.gmra.mrb[8].mxu0 %vm166_vm1, %v12474_v12  ;;  %v17640_v57 = vld [vmem:[%s21768_s0 + $0x88] sm:$0xff]  ;;  %v17645_v58 = vld [vmem:[%s21768_s0 + $0x90] sm:$0xff]  ;;  %v17654_v59 = vld [vmem:[%s21768_s0 + $0x98] sm:$0xff] }
  0x15   :  { %14640 = vmatprep.mubr.msk.f32.mxu0 %vm166_vm1, %v12475_v13  ;;  %v17659_v60 = vld [vmem:[%s21768_s0 + $0xa0] sm:$0xff]  ;;  %v17668_v61 = vld [vmem:[%s21768_s0 + $0xa8] sm:$0xff]  ;;  %v17673_v62 = vld [vmem:[%s21768_s0 + $0xb0] sm:$0xff] }
  0x16   :  { %v17682_v63 = vld [vmem:[%s21768_s0 + $0xb8] sm:$0xff]  ;;  %v17687_v0 = vld [vmem:[%s21768_s0 + $0xc0] sm:$0xff]  ;;  %v17696_v1 = vld [vmem:[%s21768_s0 + $0xc8] sm:$0xff] }
  0x17   :  { %v17701_v2 = vld [vmem:[%s21768_s0 + $0xd0] sm:$0xff]  ;;  %v17710_v3 = vld [vmem:[%s21768_s0 + $0xd8] sm:$0xff]  ;;  %v17715_v4 = vld [vmem:[%s21768_s0 + $0xe0] sm:$0xff] }
  0x18   :  { %14641 = vmatmul.mubr.msk.f32.gmra.mrb[10].mxu0 %vm166_vm1, %v12476_v14  ;;  %v17724_v5 = vld [vmem:[%s21768_s0 + $0xe8] sm:$0xff]  ;;  %v17729_v6 = vld [vmem:[%s21768_s0 + $0xf0] sm:$0xff]  ;;  %v17738_v7 = vld [vmem:[%s21768_s0 + $0xf8] sm:$0xff] }
  0x19   :  { %14643 = vmatprep.mubr.msk.f32.mxu0 %vm166_vm1, %v12477_v15  ;;  %v17743_v8 = vld [vmem:[%s21768_s0 + $0x100] sm:$0xff]  ;;  %v17752_v9 = vld [vmem:[%s21768_s0 + $0x108] sm:$0xff]  ;;  %v17757_v10 = vld [vmem:[%s21768_s0 + $0x110] sm:$0xff] }
  0x1a   :  { %v17771_v12 = vld [vmem:[%s21768_s0 + $0x120] sm:$0xff]  ;;  %v17780_v13 = vld [vmem:[%s21768_s0 + $0x128] sm:$0xff]  ;;  %v17785_v14 = vld [vmem:[%s21768_s0 + $0x130] sm:$0xff] }
  0x1b   :  { %v17794_v15 = vld [vmem:[%s21768_s0 + $0x138] sm:$0xff]  ;;  %vm19824_vm3 = vmpackc.low %vm6691_vm2, %vm6691_vm2 }
  0x1c   :  { %14644 = vmatmul.mubr.msk.f32.gmra.mrb[12].mxu0 %vm166_vm1, %v12478_v16  ;;  %v17799_v16 = vld [vmem:[%s21768_s0 + $0x140] sm:$0xff] }
  0x1d   :  { %14646 = vmatprep.mubr.msk.f32.mxu0 %vm166_vm1, %v12479_v17  ;;  %v17808_v17 = vld [vmem:[%s21768_s0 + $0x148] sm:$0xff] }
  0x20   :  { %14647 = vmatmul.mubr.msk.f32.gmra.mrb[14].mxu0 %vm166_vm1, %v12480_v18  ;;  %v17813_v18 = vld [vmem:[%s21768_s0 + $0x150] sm:$0xff] }
  0x21   :  { %14649 = vmatprep.mubr.msk.f32.mxu0 %vm166_vm1, %v12481_v19  ;;  %v17822_v19 = vld [vmem:[%s21768_s0 + $0x158] sm:$0xff] }
  0x24   :  { %14650 = vmatmul.mubr.msk.f32.gmra.mrb[16].mxu0 %vm166_vm1, %v12482_v20  ;;  %v17827_v20 = vld [vmem:[%s21768_s0 + $0x160] sm:$0xff] }
  0x25   :  { %14652 = vmatprep.mubr.msk.f32.mxu0 %vm166_vm1, %v12483_v21  ;;  %v17836_v21 = vld [vmem:[%s21768_s0 + $0x168] sm:$0xff] }
  0x28   :  { %14653 = vmatmul.mubr.msk.f32.gmra.mrb[18].mxu0 %vm166_vm1, %v12484_v22  ;;  %v17841_v22 = vld [vmem:[%s21768_s0 + $0x170] sm:$0xff] }
  0x29   :  { %14655 = vmatprep.mubr.msk.f32.mxu0 %vm166_vm1, %v12485_v23  ;;  %v17850_v23 = vld [vmem:[%s21768_s0 + $0x178] sm:$0xff] }
  0x2c   :  { %14656 = vmatmul.mubr.msk.f32.gmra.mrb[20].mxu0 %vm166_vm1, %v12486_v24  ;;  %v17855_v24 = vld [vmem:[%s21768_s0 + $0x180] sm:$0xff] }
  0x2d   :  { %14658 = vmatprep.mubr.msk.f32.mxu0 %vm166_vm1, %v12487_v25  ;;  %v17864_v25 = vld [vmem:[%s21768_s0 + $0x188] sm:$0xff] }
  0x30   :  { %14659 = vmatmul.mubr.msk.f32.gmra.mrb[22].mxu0 %vm166_vm1, %v12488_v26  ;;  %v17869_v26 = vld [vmem:[%s21768_s0 + $0x190] sm:$0xff] }
  0x31   :  { %14661 = vmatprep.mubr.msk.f32.mxu0 %vm166_vm1, %v12489_v27  ;;  %v17878_v27 = vld [vmem:[%s21768_s0 + $0x198] sm:$0xff] }
  0x34   :  { %14662 = vmatmul.mubr.msk.f32.gmra.mrb[24].mxu0 %vm166_vm1, %v12490_v28  ;;  %v17883_v28 = vld [vmem:[%s21768_s0 + $0x1a0] sm:$0xff] }
  0x35   :  { %14664 = vmatprep.mubr.msk.f32.mxu0 %vm166_vm1, %v12491_v29  ;;  %v17892_v29 = vld [vmem:[%s21768_s0 + $0x1a8] sm:$0xff] }
  0x38   :  { %14665 = vmatmul.mubr.msk.f32.gmra.mrb[26].mxu0 %vm166_vm1, %v12492_v30  ;;  %v17897_v30 = vld [vmem:[%s21768_s0 + $0x1b0] sm:$0xff] }
  0x39   :  { %14667 = vmatprep.mubr.msk.f32.mxu0 %vm166_vm1, %v12493_v31  ;;  %v17906_v31 = vld [vmem:[%s21768_s0 + $0x1b8] sm:$0xff] }
  0x3c   :  { %14668 = vmatmul.mubr.msk.f32.gmra.mrb[28].mxu0 %vm166_vm1, %v12494_v32  ;;  %v17911_v32 = vld [vmem:[%s21768_s0 + $0x1c0] sm:$0xff] }
  0x3d   :  { %14670 = vmatprep.mubr.msk.f32.mxu0 %vm166_vm1, %v12495_v33  ;;  %v17920_v33 = vld [vmem:[%s21768_s0 + $0x1c8] sm:$0xff] }
  0x40   :  { %14671 = vmatmul.mubr.msk.f32.gmra.mrb[30].mxu0 %vm166_vm1, %v12496_v34  ;;  %v17925_v34 = vld [vmem:[%s21768_s0 + $0x1d0] sm:$0xff] }
  0x41   :  { %14673 = vmatprep.mubr.msk.f32.mxu0 %vm166_vm1, %v12497_v35  ;;  %v17934_v35 = vld [vmem:[%s21768_s0 + $0x1d8] sm:$0xff] }
  0x44   :  { %14674 = vmatmul.mubr.msk.f32.gmra.mrb[32].mxu0 %vm166_vm1, %v12498_v36  ;;  %v17939_v36 = vld [vmem:[%s21768_s0 + $0x1e0] sm:$0xff] }
  0x45   :  { %14676 = vmatprep.mubr.msk.f32.mxu0 %vm166_vm1, %v12499_v37  ;;  %v17948_v37 = vld [vmem:[%s21768_s0 + $0x1e8] sm:$0xff] }
  0x46   :  { %21820 = vst [vmem:[#allocation2_spill] sm:$0xff] %v17948_v37 }
  0x48   :  { %14677 = vmatmul.mubr.msk.f32.gmra.mrb[34].mxu0 %vm166_vm1, %v12500_v38  ;;  %v17953_v38 = vld [vmem:[%s21768_s0 + $0x1f0] sm:$0xff] }
  0x49   :  { %14723 = vmatprep.mubr.msk.f32.mxu0 %vm166_vm1, %v34_v39  ;;  %v17962_v39 = vld [vmem:[%s21768_s0 + $0x1f8] sm:$0xff] }
  0x4c   :  { %14724 = vmatmul.mubr.msk.f32.vlgmr.msra.gmra.mrb[0].mxu0 %vm166_vm1, %v17519_v40 }
  0x4d   :  { %14820 = vmatpush3.msk.msra.mxu0 %vm359_vm0, %v17398_v11  ;;  %14726 = vmatprep.mubr.msk.f32.mxu0 %vm166_vm1, %v17524_v41  ;;  %v17766_v11 = vld [vmem:[%s21768_s0 + $0x118] sm:$0xff] }
  0x4e   :  { %14917 = vmatprep.subr.msk.mxu0 %vm359_vm0, %v17531_v42 }
  0x50   :  { %14727 = vmatmul.mubr.msk.f32.gmra.mrb[2].mxu0 %vm166_vm1, %v17540_v43 }
  0x51   :  { %14729 = vmatprep.mubr.msk.f32.mxu0 %vm166_vm1, %v17545_v44 }
  0x54   :  { %14730 = vmatmul.mubr.msk.f32.gmra.mrb[4].mxu0 %vm166_vm1, %v17556_v45 }
  0x55   :  { %14732 = vmatprep.mubr.msk.f32.mxu0 %vm166_vm1, %v17561_v46 }
  0x58   :  { %14733 = vmatmul.mubr.msk.f32.gmra.mrb[6].mxu0 %vm166_vm1, %v17570_v47 }
  0x59   :  { %14735 = vmatprep.mubr.msk.f32.mxu0 %vm166_vm1, %v17575_v48 }
  0x5c   :  { %14736 = vmatmul.mubr.msk.f32.gmra.mrb[8].mxu0 %vm166_vm1, %v17584_v49 }
  0x5d   :  { %14738 = vmatprep.mubr.msk.f32.mxu0 %vm166_vm1, %v17589_v50 }
  0x60   :  { %14739 = vmatmul.mubr.msk.f32.gmra.mrb[10].mxu0 %vm166_vm1, %v17598_v51 }
  0x61   :  { %14741 = vmatprep.mubr.msk.f32.mxu0 %vm166_vm1, %v17603_v52 }
  0x64   :  { %14742 = vmatmul.mubr.msk.f32.gmra.mrb[12].mxu0 %vm166_vm1, %v17612_v53 }
  0x65   :  { %14744 = vmatprep.mubr.msk.f32.mxu0 %vm166_vm1, %v17617_v54 }
  0x68   :  { %14745 = vmatmul.mubr.msk.f32.gmra.mrb[14].mxu0 %vm166_vm1, %v17626_v55 }
  0x69   :  { %14747 = vmatprep.mubr.msk.f32.mxu0 %vm166_vm1, %v17631_v56 }
  0x6c   :  { %14748 = vmatmul.mubr.msk.f32.gmra.mrb[16].mxu0 %vm166_vm1, %v17640_v57 }
  0x6d   :  { %14750 = vmatprep.mubr.msk.f32.mxu0 %vm166_vm1, %v17645_v58 }
  0x70   :  { %14751 = vmatmul.mubr.msk.f32.gmra.mrb[18].mxu0 %vm166_vm1, %v17654_v59 }
  0x71   :  { %14753 = vmatprep.mubr.msk.f32.mxu0 %vm166_vm1, %v17659_v60 }
  0x74   :  { %14754 = vmatmul.mubr.msk.f32.gmra.mrb[20].mxu0 %vm166_vm1, %v17668_v61 }
  0x75   :  { %14756 = vmatprep.mubr.msk.f32.mxu0 %vm166_vm1, %v17673_v62 }
  0x78   :  { %14757 = vmatmul.mubr.msk.f32.gmra.mrb[22].mxu0 %vm166_vm1, %v17682_v63 }
  0x79   :  { %14759 = vmatprep.mubr.msk.f32.mxu0 %vm166_vm1, %v17687_v0 }
  0x7c   :  { %14760 = vmatmul.mubr.msk.f32.gmra.mrb[24].mxu0 %vm166_vm1, %v17696_v1 }
  0x7d   :  { %14762 = vmatprep.mubr.msk.f32.mxu0 %vm166_vm1, %v17701_v2 }
  0x80   :  { %14763 = vmatmul.mubr.msk.f32.gmra.mrb[26].mxu0 %vm166_vm1, %v17710_v3 }
  0x81   :  { %14765 = vmatprep.mubr.msk.f32.mxu0 %vm166_vm1, %v17715_v4 }
  0x84   :  { %14766 = vmatmul.mubr.msk.f32.gmra.mrb[28].mxu0 %vm166_vm1, %v17724_v5 }
  0x85   :  { %14768 = vmatprep.mubr.msk.f32.mxu0 %vm166_vm1, %v17729_v6 }
  0x88   :  { %14769 = vmatmul.mubr.msk.f32.gmra.mrb[30].mxu0 %vm166_vm1, %v17738_v7 }
  0x89   :  { %14771 = vmatprep.mubr.msk.f32.mxu0 %vm166_vm1, %v17743_v8 }
  0x8c   :  { %14772 = vmatmul.mubr.msk.f32.gmra.mrb[32].mxu0 %vm166_vm1, %v17752_v9 }
  0x8d   :  { %14774 = vmatprep.mubr.msk.f32.mxu0 %vm166_vm1, %v17757_v10 }
  0x90   :  { %14775 = vmatmul.mubr.msk.f32.gmra.mrb[34].mxu0 %vm166_vm1, %v17766_v11 }
  0x91   :  { %14777 = vmatprep.mubr.msk.f32.mxu0 %vm166_vm1, %v17771_v12 }
  0x94   :  { %14778 = vmatmul.mubr.msk.f32.gmra.mrb[36].mxu0 %vm166_vm1, %v17780_v13 }
  0x95   :  { %14780 = vmatprep.mubr.msk.f32.mxu0 %vm166_vm1, %v17785_v14 }
  0x98   :  { %14781 = vmatmul.mubr.msk.f32.gmra.mrb[38].mxu0 %vm166_vm1, %v17794_v15 }
  0x99   :  { %14783 = vmatprep.mubr.msk.f32.mxu0 %vm166_vm1, %v17799_v16 }
  0x9c   :  { %14784 = vmatmul.mubr.msk.f32.gmra.mrb[40].mxu0 %vm166_vm1, %v17808_v17 }
  0x9d   :  { %14786 = vmatprep.mubr.msk.f32.mxu0 %vm166_vm1, %v17813_v18 }
  0xa0   :  { %14787 = vmatmul.mubr.msk.f32.gmra.mrb[42].mxu0 %vm166_vm1, %v17822_v19 }
  0xa1   :  { %14789 = vmatprep.mubr.msk.f32.mxu0 %vm166_vm1, %v17827_v20 }
  0xa4   :  { %14790 = vmatmul.mubr.msk.f32.gmra.mrb[44].mxu0 %vm166_vm1, %v17836_v21 }
  0xa5   :  { %14792 = vmatprep.mubr.msk.f32.mxu0 %vm166_vm1, %v17841_v22 }
  0xa8   :  { %14793 = vmatmul.mubr.msk.f32.gmra.mrb[46].mxu0 %vm166_vm1, %v17850_v23 }
  0xa9   :  { %14795 = vmatprep.mubr.msk.f32.mxu0 %vm166_vm1, %v17855_v24 }
  0xac   :  { %14796 = vmatmul.mubr.msk.f32.gmra.mrb[48].mxu0 %vm166_vm1, %v17864_v25 }
  0xad   :  { %14798 = vmatprep.mubr.msk.f32.mxu0 %vm166_vm1, %v17869_v26 }
  0xb0   :  { %14799 = vmatmul.mubr.msk.f32.gmra.mrb[50].mxu0 %vm166_vm1, %v17878_v27 }
  0xb1   :  { %14801 = vmatprep.mubr.msk.f32.mxu0 %vm166_vm1, %v17883_v28 }
  0xb4   :  { %14802 = vmatmul.mubr.msk.f32.gmra.mrb[52].mxu0 %vm166_vm1, %v17892_v29 }
  0xb5   :  { %14804 = vmatprep.mubr.msk.f32.mxu0 %vm166_vm1, %v17897_v30 }
  0xb8   :  { %14805 = vmatmul.mubr.msk.f32.gmra.mrb[54].mxu0 %vm166_vm1, %v17906_v31 }
  0xb9   :  { %14807 = vmatprep.mubr.msk.f32.mxu0 %vm166_vm1, %v17911_v32 }
  0xbc   :  { %14808 = vmatmul.mubr.msk.f32.gmra.mrb[56].mxu0 %vm166_vm1, %v17920_v33 }
  0xbd   :  { %14810 = vmatprep.mubr.msk.f32.mxu0 %vm166_vm1, %v17925_v34 }
  0xc0   :  { %14811 = vmatmul.mubr.msk.f32.gmra.mrb[58].mxu0 %vm166_vm1, %v17934_v35 }
  0xc1   :  { %14813 = vmatprep.mubr.msk.f32.mxu0 %vm166_vm1, %v17939_v36 }
  0xc4   :  { %14814 = vmatmul.mubr.msk.f32.gmra.mrb[60].mxu0 %vm166_vm1, %v17948_v37  ;;  %v17973_v37 = vld [vmem:[%s21767_s1 + $0x10] sm:$0xf] }
  0xc5   :  { %14816 = vmatprep.mubr.msk.f32.mxu0 %vm166_vm1, %v17953_v38 }
  0xc8   :  { %14817 = vmatmul.mubr.msk.f32.gmra.mrb[62].mxu0 %vm166_vm1, %v17962_v39 }
  0xc9   :  { %14821 = vmatprep.mubr.msk.f32.mxu0 %vm166_vm1, %v17519_v40  ;;  %v21821_v40 = vld [vmem:[#allocation2_spill] sm:$0xff] }
  0xcc   :  { %14822 = vmatmul.mubr.msk.f32.vlgmr.msra.gmra.mrb[0].mxu0 %vm166_vm1, %v17524_v41  ;;  %v18104_v41 = vld [vmem:[%s21768_s0 + $0x200] sm:$0xff] }
  0xcd   :  { %14918 = vmatpush3.msk.msra.mxu0 %vm359_vm0, %v17531_v42  ;;  %14824 = vmatprep.mubr.msk.f32.mxu0 %vm166_vm1, %v17540_v43  ;;  %21822 = vst [vmem:[#allocation2_spill] sm:$0xff] %v18104_v41  ;;  %v12726_v42 = vld [vmem:[%s21768_s0 + $0x500] sm:$0xff]  ;;  %v18115_v43 = vld [vmem:[%s21768_s0 + $0x508] sm:$0xff] }
  0xce   :  { %15015 = vmatprep.subr.msk.mxu0 %vm359_vm0, %v17973_v37 }
  0xd0   :  { %14825 = vmatmul.mubr.msk.f32.gmra.mrb[2].mxu0 %vm166_vm1, %v17545_v44  ;;  %v18120_v44 = vld [vmem:[%s21768_s0 + $0x510] sm:$0xff] }
  0xd1   :  { %14827 = vmatprep.mubr.msk.f32.mxu0 %vm166_vm1, %v17556_v45  ;;  %v18127_v45 = vld [vmem:[%s21767_s1 + $0x14] sm:$0xf] }
  0xd4   :  { %14828 = vmatmul.mubr.msk.f32.gmra.mrb[4].mxu0 %vm166_vm1, %v17561_v46  ;;  %v18136_v46 = vld [vmem:[%s21768_s0 + $0x518] sm:$0xff] }
  0xd5   :  { %14830 = vmatprep.mubr.msk.f32.mxu0 %vm166_vm1, %v17570_v47  ;;  %v18141_v47 = vld [vmem:[%s21768_s0 + $0x520] sm:$0xff] }
  0xd8   :  { %14831 = vmatmul.mubr.msk.f32.gmra.mrb[6].mxu0 %vm166_vm1, %v17575_v48  ;;  %v18152_v48 = vld [vmem:[%s21768_s0 + $0x528] sm:$0xff] }
  0xd9   :  { %14833 = vmatprep.mubr.msk.f32.mxu0 %vm166_vm1, %v17584_v49  ;;  %v18157_v49 = vld [vmem:[%s21768_s0 + $0x530] sm:$0xff] }
  0xdc   :  { %14834 = vmatmul.mubr.msk.f32.gmra.mrb[8].mxu0 %vm166_vm1, %v17589_v50  ;;  %v18166_v50 = vld [vmem:[%s21768_s0 + $0x538] sm:$0xff] }
  0xdd   :  { %14836 = vmatprep.mubr.msk.f32.mxu0 %vm166_vm1, %v17598_v51  ;;  %v18171_v51 = vld [vmem:[%s21768_s0 + $0x540] sm:$0xff] }
  0xe0   :  { %14837 = vmatmul.mubr.msk.f32.gmra.mrb[10].mxu0 %vm166_vm1, %v17603_v52  ;;  %v18180_v52 = vld [vmem:[%s21768_s0 + $0x548] sm:$0xff] }
  0xe1   :  { %14839 = vmatprep.mubr.msk.f32.mxu0 %vm166_vm1, %v17612_v53  ;;  %v18185_v53 = vld [vmem:[%s21768_s0 + $0x550] sm:$0xff] }
  0xe4   :  { %14840 = vmatmul.mubr.msk.f32.gmra.mrb[12].mxu0 %vm166_vm1, %v17617_v54  ;;  %v18194_v54 = vld [vmem:[%s21768_s0 + $0x558] sm:$0xff] }
  0xe5   :  { %14842 = vmatprep.mubr.msk.f32.mxu0 %vm166_vm1, %v17626_v55  ;;  %v18199_v55 = vld [vmem:[%s21768_s0 + $0x560] sm:$0xff] }
  0xe8   :  { %14843 = vmatmul.mubr.msk.f32.gmra.mrb[14].mxu0 %vm166_vm1, %v17631_v56  ;;  %v18208_v56 = vld [vmem:[%s21768_s0 + $0x568] sm:$0xff] }
  0xe9   :  { %14845 = vmatprep.mubr.msk.f32.mxu0 %vm166_vm1, %v17640_v57  ;;  %v18213_v57 = vld [vmem:[%s21768_s0 + $0x570] sm:$0xff] }
  0xec   :  { %14846 = vmatmul.mubr.msk.f32.gmra.mrb[16].mxu0 %vm166_vm1, %v17645_v58  ;;  %v18222_v58 = vld [vmem:[%s21768_s0 + $0x578] sm:$0xff] }
  0xed   :  { %14848 = vmatprep.mubr.msk.f32.mxu0 %vm166_vm1, %v17654_v59  ;;  %v18227_v59 = vld [vmem:[%s21768_s0 + $0x580] sm:$0xff] }
  0xf0   :  { %14849 = vmatmul.mubr.msk.f32.gmra.mrb[18].mxu0 %vm166_vm1, %v17659_v60  ;;  %v18236_v60 = vld [vmem:[%s21768_s0 + $0x588] sm:$0xff] }
  0xf1   :  { %14851 = vmatprep.mubr.msk.f32.mxu0 %vm166_vm1, %v17668_v61  ;;  %v18241_v61 = vld [vmem:[%s21768_s0 + $0x590] sm:$0xff] }
  0xf4   :  { %14852 = vmatmul.mubr.msk.f32.gmra.mrb[20].mxu0 %vm166_vm1, %v17673_v62  ;;  %v18250_v62 = vld [vmem:[%s21768_s0 + $0x598] sm:$0xff] }
  0xf5   :  { %14854 = vmatprep.mubr.msk.f32.mxu0 %vm166_vm1, %v17682_v63  ;;  %v18255_v63 = vld [vmem:[%s21768_s0 + $0x5a0] sm:$0xff] }
  0xf8   :  { %14855 = vmatmul.mubr.msk.f32.gmra.mrb[22].mxu0 %vm166_vm1, %v17687_v0  ;;  %v18264_v0 = vld [vmem:[%s21768_s0 + $0x5a8] sm:$0xff] }
  0xf9   :  { %14857 = vmatprep.mubr.msk.f32.mxu0 %vm166_vm1, %v17696_v1  ;;  %v18269_v1 = vld [vmem:[%s21768_s0 + $0x5b0] sm:$0xff] }
  0xfc   :  { %14858 = vmatmul.mubr.msk.f32.gmra.mrb[24].mxu0 %vm166_vm1, %v17701_v2  ;;  %v18278_v2 = vld [vmem:[%s21768_s0 + $0x5b8] sm:$0xff] }
  0xfd   :  { %14860 = vmatprep.mubr.msk.f32.mxu0 %vm166_vm1, %v17710_v3  ;;  %v18283_v3 = vld [vmem:[%s21768_s0 + $0x5c0] sm:$0xff] }
 0x100   :  { %14861 = vmatmul.mubr.msk.f32.gmra.mrb[26].mxu0 %vm166_vm1, %v17715_v4  ;;  %v18292_v4 = vld [vmem:[%s21768_s0 + $0x5c8] sm:$0xff] }
 0x101   :  { %14863 = vmatprep.mubr.msk.f32.mxu0 %vm166_vm1, %v17724_v5  ;;  %v18297_v5 = vld [vmem:[%s21768_s0 + $0x5d0] sm:$0xff] }
 0x104   :  { %14864 = vmatmul.mubr.msk.f32.gmra.mrb[28].mxu0 %vm166_vm1, %v17729_v6  ;;  %v18306_v6 = vld [vmem:[%s21768_s0 + $0x5d8] sm:$0xff] }
 0x105   :  { %14866 = vmatprep.mubr.msk.f32.mxu0 %vm166_vm1, %v17738_v7  ;;  %v18311_v7 = vld [vmem:[%s21768_s0 + $0x5e0] sm:$0xff] }
 0x108   :  { %14867 = vmatmul.mubr.msk.f32.gmra.mrb[30].mxu0 %vm166_vm1, %v17743_v8  ;;  %v18320_v8 = vld [vmem:[%s21768_s0 + $0x5e8] sm:$0xff] }
 0x109   :  { %14869 = vmatprep.mubr.msk.f32.mxu0 %vm166_vm1, %v17752_v9  ;;  %v18325_v9 = vld [vmem:[%s21768_s0 + $0x5f0] sm:$0xff] }
 0x10c   :  { %14870 = vmatmul.mubr.msk.f32.gmra.mrb[32].mxu0 %vm166_vm1, %v17757_v10  ;;  %v18334_v10 = vld [vmem:[%s21768_s0 + $0x5f8] sm:$0xff] }
 0x10d   :  { %14872 = vmatprep.mubr.msk.f32.mxu0 %vm166_vm1, %v17766_v11  ;;  %v18339_v11 = vld [vmem:[%s21768_s0 + $0x600] sm:$0xff] }
 0x110   :  { %14873 = vmatmul.mubr.msk.f32.gmra.mrb[34].mxu0 %vm166_vm1, %v17771_v12  ;;  %v18348_v12 = vld [vmem:[%s21768_s0 + $0x608] sm:$0xff] }
 0x111   :  { %14875 = vmatprep.mubr.msk.f32.mxu0 %vm166_vm1, %v17780_v13  ;;  %v18353_v13 = vld [vmem:[%s21768_s0 + $0x610] sm:$0xff] }
 0x114   :  { %14876 = vmatmul.mubr.msk.f32.gmra.mrb[36].mxu0 %vm166_vm1, %v17785_v14  ;;  %v18362_v14 = vld [vmem:[%s21768_s0 + $0x618] sm:$0xff] }
 0x115   :  { %14878 = vmatprep.mubr.msk.f32.mxu0 %vm166_vm1, %v17794_v15  ;;  %v18367_v15 = vld [vmem:[%s21768_s0 + $0x620] sm:$0xff] }
 0x118   :  { %14879 = vmatmul.mubr.msk.f32.gmra.mrb[38].mxu0 %vm166_vm1, %v17799_v16  ;;  %v18376_v16 = vld [vmem:[%s21768_s0 + $0x628] sm:$0xff] }
 0x119   :  { %14881 = vmatprep.mubr.msk.f32.mxu0 %vm166_vm1, %v17808_v17  ;;  %v18381_v17 = vld [vmem:[%s21768_s0 + $0x630] sm:$0xff] }
 0x11c   :  { %14882 = vmatmul.mubr.msk.f32.gmra.mrb[40].mxu0 %vm166_vm1, %v17813_v18  ;;  %v18390_v18 = vld [vmem:[%s21768_s0 + $0x638] sm:$0xff] }
 0x11d   :  { %14884 = vmatprep.mubr.msk.f32.mxu0 %vm166_vm1, %v17822_v19  ;;  %v18395_v19 = vld [vmem:[%s21768_s0 + $0x640] sm:$0xff] }
 0x120   :  { %14885 = vmatmul.mubr.msk.f32.gmra.mrb[42].mxu0 %vm166_vm1, %v17827_v20  ;;  %v18404_v20 = vld [vmem:[%s21768_s0 + $0x648] sm:$0xff] }
 0x121   :  { %14887 = vmatprep.mubr.msk.f32.mxu0 %vm166_vm1, %v17836_v21  ;;  %v18409_v21 = vld [vmem:[%s21768_s0 + $0x650] sm:$0xff] }
 0x124   :  { %14888 = vmatmul.mubr.msk.f32.gmra.mrb[44].mxu0 %vm166_vm1, %v17841_v22  ;;  %v18418_v22 = vld [vmem:[%s21768_s0 + $0x658] sm:$0xff] }
 0x125   :  { %14890 = vmatprep.mubr.msk.f32.mxu0 %vm166_vm1, %v17850_v23  ;;  %v18423_v23 = vld [vmem:[%s21768_s0 + $0x660] sm:$0xff] }
 0x128   :  { %14891 = vmatmul.mubr.msk.f32.gmra.mrb[46].mxu0 %vm166_vm1, %v17855_v24  ;;  %v18432_v24 = vld [vmem:[%s21768_s0 + $0x668] sm:$0xff] }
 0x129   :  { %14893 = vmatprep.mubr.msk.f32.mxu0 %vm166_vm1, %v17864_v25  ;;  %v18437_v25 = vld [vmem:[%s21768_s0 + $0x670] sm:$0xff] }
 0x12c   :  { %14894 = vmatmul.mubr.msk.f32.gmra.mrb[48].mxu0 %vm166_vm1, %v17869_v26  ;;  %v18446_v26 = vld [vmem:[%s21768_s0 + $0x678] sm:$0xff] }
 0x12d   :  { %14896 = vmatprep.mubr.msk.f32.mxu0 %vm166_vm1, %v17878_v27  ;;  %v18451_v27 = vld [vmem:[%s21768_s0 + $0x680] sm:$0xff] }
 0x130   :  { %14897 = vmatmul.mubr.msk.f32.gmra.mrb[50].mxu0 %vm166_vm1, %v17883_v28  ;;  %v18460_v28 = vld [vmem:[%s21768_s0 + $0x688] sm:$0xff] }
 0x131   :  { %14899 = vmatprep.mubr.msk.f32.mxu0 %vm166_vm1, %v17892_v29  ;;  %v18465_v29 = vld [vmem:[%s21768_s0 + $0x690] sm:$0xff] }
 0x134   :  { %14900 = vmatmul.mubr.msk.f32.gmra.mrb[52].mxu0 %vm166_vm1, %v17897_v30  ;;  %v18474_v30 = vld [vmem:[%s21768_s0 + $0x698] sm:$0xff] }
 0x135   :  { %14902 = vmatprep.mubr.msk.f32.mxu0 %vm166_vm1, %v17906_v31  ;;  %v18479_v31 = vld [vmem:[%s21768_s0 + $0x6a0] sm:$0xff] }
 0x138   :  { %14903 = vmatmul.mubr.msk.f32.gmra.mrb[54].mxu0 %vm166_vm1, %v17911_v32  ;;  %v18488_v32 = vld [vmem:[%s21768_s0 + $0x6a8] sm:$0xff] }
 0x139   :  { %14905 = vmatprep.mubr.msk.f32.mxu0 %vm166_vm1, %v17920_v33  ;;  %v18493_v33 = vld [vmem:[%s21768_s0 + $0x6b0] sm:$0xff] }
 0x13c   :  { %14906 = vmatmul.mubr.msk.f32.gmra.mrb[56].mxu0 %vm166_vm1, %v17925_v34  ;;  %v18502_v34 = vld [vmem:[%s21768_s0 + $0x6b8] sm:$0xff] }
 0x13d   :  { %14908 = vmatprep.mubr.msk.f32.mxu0 %vm166_vm1, %v17934_v35  ;;  %v18507_v35 = vld [vmem:[%s21768_s0 + $0x6c0] sm:$0xff] }
 0x140   :  { %14909 = vmatmul.mubr.msk.f32.gmra.mrb[58].mxu0 %vm166_vm1, %v17939_v36  ;;  %v18516_v36 = vld [vmem:[%s21768_s0 + $0x6c8] sm:$0xff] }
 0x141   :  { %14911 = vmatprep.mubr.msk.f32.mxu0 %vm166_vm1, %v21821_v40  ;;  %v18544_v40 = vld [vmem:[%s21768_s0 + $0x6e8] sm:$0xff] }
 0x142   :  { %21825 = vst [vmem:[#allocation5_spill] sm:$0xff] %v18544_v40 }
 0x144   :  { %14912 = vmatmul.mubr.msk.f32.gmra.mrb[60].mxu0 %vm166_vm1, %v17953_v38  ;;  %v18530_v38 = vld [vmem:[%s21768_s0 + $0x6d8] sm:$0xff] }
 0x145   :  { %14914 = vmatprep.mubr.msk.f32.mxu0 %vm166_vm1, %v17962_v39  ;;  %21823 = vst [vmem:[#allocation3_spill] sm:$0xff] %v18530_v38  ;;  %v18535_v39 = vld [vmem:[%s21768_s0 + $0x6e0] sm:$0xff] }
 0x146   :  { %21824 = vst [vmem:[#allocation4_spill] sm:$0xff] %v18535_v39 }
 0x148   :  { %14915 = vmatmul.mubr.msk.f32.gmra.mrb[62].mxu0 %vm166_vm1, %v18104_v41  ;;  %v18558_v41 = vld [vmem:[%s21768_s0 + $0x6f8] sm:$0xff] }
 0x149   :  { %14919 = vmatprep.mubr.msk.f32.mxu0 %vm166_vm1, %v12726_v42  ;;  %v18549_v42 = vld [vmem:[%s21768_s0 + $0x6f0] sm:$0xff]  ;;  %21827 = vst [vmem:[#allocation7_spill] sm:$0xff] %v18558_v41 }
 0x14a   :  { %21826 = vst [vmem:[#allocation6_spill] sm:$0xff] %v18549_v42 }
 0x14c   :  { %14920 = vmatmul.mubr.msk.f32.vlgmr.msra.gmra.mrb[0].mxu0 %vm166_vm1, %v18115_v43 }
 0x14d   :  { %15016 = vmatpush3.msk.msra.mxu0 %vm359_vm0, %v17973_v37  ;;  %14922 = vmatprep.mubr.msk.f32.mxu0 %vm166_vm1, %v18120_v44  ;;  %v18521_v37 = vld [vmem:[%s21768_s0 + $0x6d0] sm:$0xff] }
 0x14e   :  { %15113 = vmatprep.subr.msk.mxu0 %vm359_vm0, %v18127_v45 }
 0x150   :  { %14923 = vmatmul.mubr.msk.f32.gmra.mrb[2].mxu0 %vm166_vm1, %v18136_v46 }
 0x151   :  { %14925 = vmatprep.mubr.msk.f32.mxu0 %vm166_vm1, %v18141_v47 }
 0x154   :  { %14926 = vmatmul.mubr.msk.f32.gmra.mrb[4].mxu0 %vm166_vm1, %v18152_v48 }
 0x155   :  { %14928 = vmatprep.mubr.msk.f32.mxu0 %vm166_vm1, %v18157_v49 }
 0x158   :  { %14929 = vmatmul.mubr.msk.f32.gmra.mrb[6].mxu0 %vm166_vm1, %v18166_v50 }
 0x159   :  { %14931 = vmatprep.mubr.msk.f32.mxu0 %vm166_vm1, %v18171_v51 }
 0x15c   :  { %14932 = vmatmul.mubr.msk.f32.gmra.mrb[8].mxu0 %vm166_vm1, %v18180_v52 }
 0x15d   :  { %14934 = vmatprep.mubr.msk.f32.mxu0 %vm166_vm1, %v18185_v53 }
 0x160   :  { %14935 = vmatmul.mubr.msk.f32.gmra.mrb[10].mxu0 %vm166_vm1, %v18194_v54 }
 0x161   :  { %14937 = vmatprep.mubr.msk.f32.mxu0 %vm166_vm1, %v18199_v55 }
 0x164   :  { %14938 = vmatmul.mubr.msk.f32.gmra.mrb[12].mxu0 %vm166_vm1, %v18208_v56 }
 0x165   :  { %14940 = vmatprep.mubr.msk.f32.mxu0 %vm166_vm1, %v18213_v57 }
 0x168   :  { %14941 = vmatmul.mubr.msk.f32.gmra.mrb[14].mxu0 %vm166_vm1, %v18222_v58 }
 0x169   :  { %14943 = vmatprep.mubr.msk.f32.mxu0 %vm166_vm1, %v18227_v59 }
 0x16c   :  { %14944 = vmatmul.mubr.msk.f32.gmra.mrb[16].mxu0 %vm166_vm1, %v18236_v60 }
 0x16d   :  { %14946 = vmatprep.mubr.msk.f32.mxu0 %vm166_vm1, %v18241_v61 }
 0x170   :  { %14947 = vmatmul.mubr.msk.f32.gmra.mrb[18].mxu0 %vm166_vm1, %v18250_v62 }
 0x171   :  { %14949 = vmatprep.mubr.msk.f32.mxu0 %vm166_vm1, %v18255_v63 }
 0x174   :  { %14950 = vmatmul.mubr.msk.f32.gmra.mrb[20].mxu0 %vm166_vm1, %v18264_v0 }
 0x175   :  { %14952 = vmatprep.mubr.msk.f32.mxu0 %vm166_vm1, %v18269_v1 }
 0x178   :  { %14953 = vmatmul.mubr.msk.f32.gmra.mrb[22].mxu0 %vm166_vm1, %v18278_v2 }
 0x179   :  { %14955 = vmatprep.mubr.msk.f32.mxu0 %vm166_vm1, %v18283_v3 }
 0x17c   :  { %14956 = vmatmul.mubr.msk.f32.gmra.mrb[24].mxu0 %vm166_vm1, %v18292_v4 }
 0x17d   :  { %14958 = vmatprep.mubr.msk.f32.mxu0 %vm166_vm1, %v18297_v5 }
 0x180   :  { %14959 = vmatmul.mubr.msk.f32.gmra.mrb[26].mxu0 %vm166_vm1, %v18306_v6 }
 0x181   :  { %14961 = vmatprep.mubr.msk.f32.mxu0 %vm166_vm1, %v18311_v7 }
 0x184   :  { %14962 = vmatmul.mubr.msk.f32.gmra.mrb[28].mxu0 %vm166_vm1, %v18320_v8 }
 0x185   :  { %14964 = vmatprep.mubr.msk.f32.mxu0 %vm166_vm1, %v18325_v9 }
 0x188   :  { %14965 = vmatmul.mubr.msk.f32.gmra.mrb[30].mxu0 %vm166_vm1, %v18334_v10 }
 0x189   :  { %14967 = vmatprep.mubr.msk.f32.mxu0 %vm166_vm1, %v18339_v11 }
 0x18c   :  { %14968 = vmatmul.mubr.msk.f32.gmra.mrb[32].mxu0 %vm166_vm1, %v18348_v12 }
 0x18d   :  { %14970 = vmatprep.mubr.msk.f32.mxu0 %vm166_vm1, %v18353_v13 }
 0x190   :  { %14971 = vmatmul.mubr.msk.f32.gmra.mrb[34].mxu0 %vm166_vm1, %v18362_v14 }
 0x191   :  { %14973 = vmatprep.mubr.msk.f32.mxu0 %vm166_vm1, %v18367_v15 }
 0x194   :  { %14974 = vmatmul.mubr.msk.f32.gmra.mrb[36].mxu0 %vm166_vm1, %v18376_v16 }
 0x195   :  { %14976 = vmatprep.mubr.msk.f32.mxu0 %vm166_vm1, %v18381_v17 }
 0x198   :  { %14977 = vmatmul.mubr.msk.f32.gmra.mrb[38].mxu0 %vm166_vm1, %v18390_v18 }
 0x199   :  { %14979 = vmatprep.mubr.msk.f32.mxu0 %vm166_vm1, %v18395_v19 }
 0x19c   :  { %14980 = vmatmul.mubr.msk.f32.gmra.mrb[40].mxu0 %vm166_vm1, %v18404_v20 }
 0x19d   :  { %14982 = vmatprep.mubr.msk.f32.mxu0 %vm166_vm1, %v18409_v21 }
 0x1a0   :  { %14983 = vmatmul.mubr.msk.f32.gmra.mrb[42].mxu0 %vm166_vm1, %v18418_v22 }
 0x1a1   :  { %14985 = vmatprep.mubr.msk.f32.mxu0 %vm166_vm1, %v18423_v23 }
 0x1a4   :  { %14986 = vmatmul.mubr.msk.f32.gmra.mrb[44].mxu0 %vm166_vm1, %v18432_v24 }
 0x1a5   :  { %14988 = vmatprep.mubr.msk.f32.mxu0 %vm166_vm1, %v18437_v25 }
 0x1a8   :  { %14989 = vmatmul.mubr.msk.f32.gmra.mrb[46].mxu0 %vm166_vm1, %v18446_v26 }
 0x1a9   :  { %14991 = vmatprep.mubr.msk.f32.mxu0 %vm166_vm1, %v18451_v27 }
 0x1ac   :  { %14992 = vmatmul.mubr.msk.f32.gmra.mrb[48].mxu0 %vm166_vm1, %v18460_v28 }
 0x1ad   :  { %14994 = vmatprep.mubr.msk.f32.mxu0 %vm166_vm1, %v18465_v29 }
 0x1b0   :  { %14995 = vmatmul.mubr.msk.f32.gmra.mrb[50].mxu0 %vm166_vm1, %v18474_v30 }
 0x1b1   :  { %14997 = vmatprep.mubr.msk.f32.mxu0 %vm166_vm1, %v18479_v31 }
 0x1b4   :  { %14998 = vmatmul.mubr.msk.f32.gmra.mrb[52].mxu0 %vm166_vm1, %v18488_v32 }
 0x1b5   :  { %15000 = vmatprep.mubr.msk.f32.mxu0 %vm166_vm1, %v18493_v33 }
 0x1b8   :  { %15001 = vmatmul.mubr.msk.f32.gmra.mrb[54].mxu0 %vm166_vm1, %v18502_v34 }
 0x1b9   :  { %15003 = vmatprep.mubr.msk.f32.mxu0 %vm166_vm1, %v18507_v35 }
 0x1bc   :  { %15004 = vmatmul.mubr.msk.f32.gmra.mrb[56].mxu0 %vm166_vm1, %v18516_v36 }
 0x1bd   :  { %15006 = vmatprep.mubr.msk.f32.mxu0 %vm166_vm1, %v18521_v37 }
 0x1c0   :  { %15007 = vmatmul.mubr.msk.f32.gmra.mrb[58].mxu0 %vm166_vm1, %v18530_v38  ;;  %v18576_v38 = vld [vmem:[%s21767_s1 + $0x18] sm:$0xf] }
 0x1c1   :  { %15009 = vmatprep.mubr.msk.f32.mxu0 %vm166_vm1, %v18535_v39  ;;  %v12856_v39 = vld [vmem:[%s21768_s0 + $0x780] sm:$0xff] }
 0x1c4   :  { %15010 = vmatmul.mubr.msk.f32.gmra.mrb[60].mxu0 %vm166_vm1, %v18544_v40  ;;  %v12857_v40 = vld [vmem:[%s21768_s0 + $0x788] sm:$0xff] }
 0x1c5   :  { %15012 = vmatprep.mubr.msk.f32.mxu0 %vm166_vm1, %v18549_v42  ;;  %v12858_v42 = vld [vmem:[%s21768_s0 + $0x790] sm:$0xff] }
 0x1c8   :  { %15013 = vmatmul.mubr.msk.f32.gmra.mrb[62].mxu0 %vm166_vm1, %v18558_v41  ;;  %v12860_v41 = vld [vmem:[%s21768_s0 + $0x7a0] sm:$0xff] }
 0x1c9   :  { %15017 = vmatprep.mubr.msk.f32.mxu0 %vm166_vm1, %v12856_v39  ;;  %v12859_v39 = vld [vmem:[%s21768_s0 + $0x798] sm:$0xff] }
 0x1cc   :  { %15018 = vmatmul.mubr.msk.f32.vlgmr.msra.gmra.mrb[0].mxu0 %vm166_vm1, %v12857_v40  ;;  %v12862_v40 = vld [vmem:[%s21768_s0 + $0x7b0] sm:$0xff] }
 0x1cd   :  { %15114 = vmatpush3.msk.msra.mxu0 %vm359_vm0, %v18127_v45  ;;  %15020 = vmatprep.mubr.msk.f32.mxu0 %vm166_vm1, %v12858_v42  ;;  %v12861_v45 = vld [vmem:[%s21768_s0 + $0x7a8] sm:$0xff]  ;;  %v12863_v42 = vld [vmem:[%s21768_s0 + $0x7b8] sm:$0xff] }
 0x1ce   :  { %15211 = vmatprep.subr.msk.mxu0 %vm359_vm0, %v18576_v38 }
 0x1d0   :  { %15021 = vmatmul.mubr.msk.f32.gmra.mrb[2].mxu0 %vm166_vm1, %v12859_v39  ;;  %v12865_v39 = vld [vmem:[%s21768_s0 + $0x7c8] sm:$0xff] }
 0x1d1   :  { %15023 = vmatprep.mubr.msk.f32.mxu0 %vm166_vm1, %v12860_v41  ;;  %v12864_v41 = vld [vmem:[%s21768_s0 + $0x7c0] sm:$0xff] }
 0x1d4   :  { %15024 = vmatmul.mubr.msk.f32.gmra.mrb[4].mxu0 %vm166_vm1, %v12861_v45  ;;  %v12866_v45 = vld [vmem:[%s21768_s0 + $0x7d0] sm:$0xff] }
 0x1d5   :  { %15026 = vmatprep.mubr.msk.f32.mxu0 %vm166_vm1, %v12862_v40  ;;  %v12867_v40 = vld [vmem:[%s21768_s0 + $0x7d8] sm:$0xff] }
 0x1d8   :  { %15027 = vmatmul.mubr.msk.f32.gmra.mrb[6].mxu0 %vm166_vm1, %v12863_v42  ;;  %v12868_v42 = vld [vmem:[%s21768_s0 + $0x7e0] sm:$0xff] }
 0x1d9   :  { %15029 = vmatprep.mubr.msk.f32.mxu0 %vm166_vm1, %v12864_v41  ;;  %v12869_v41 = vld [vmem:[%s21768_s0 + $0x7e8] sm:$0xff] }
 0x1dc   :  { %15030 = vmatmul.mubr.msk.f32.gmra.mrb[8].mxu0 %vm166_vm1, %v12865_v39  ;;  %v12870_v39 = vld [vmem:[%s21768_s0 + $0x7f0] sm:$0xff] }
 0x1dd   :  { %15032 = vmatprep.mubr.msk.f32.mxu0 %vm166_vm1, %v12866_v45  ;;  %v12871_v45 = vld [vmem:[%s21768_s0 + $0x7f8] sm:$0xff] }
 0x1e0   :  { %15033 = vmatmul.mubr.msk.f32.gmra.mrb[10].mxu0 %vm166_vm1, %v12867_v40  ;;  %v12872_v40 = vld [vmem:[%s21768_s0 + $0x800] sm:$0xff] }
 0x1e1   :  { %15035 = vmatprep.mubr.msk.f32.mxu0 %vm166_vm1, %v12868_v42  ;;  %v12873_v42 = vld [vmem:[%s21768_s0 + $0x808] sm:$0xff] }
 0x1e4   :  { %15036 = vmatmul.mubr.msk.f32.gmra.mrb[12].mxu0 %vm166_vm1, %v12869_v41  ;;  %v12874_v41 = vld [vmem:[%s21768_s0 + $0x810] sm:$0xff] }
 0x1e5   :  { %15038 = vmatprep.mubr.msk.f32.mxu0 %vm166_vm1, %v12870_v39  ;;  %v12875_v39 = vld [vmem:[%s21768_s0 + $0x818] sm:$0xff] }
 0x1e8   :  { %15039 = vmatmul.mubr.msk.f32.gmra.mrb[14].mxu0 %vm166_vm1, %v12871_v45  ;;  %v12876_v45 = vld [vmem:[%s21768_s0 + $0x820] sm:$0xff] }
 0x1e9   :  { %15041 = vmatprep.mubr.msk.f32.mxu0 %vm166_vm1, %v12872_v40  ;;  %v12877_v40 = vld [vmem:[%s21768_s0 + $0x828] sm:$0xff] }
 0x1ec   :  { %15042 = vmatmul.mubr.msk.f32.gmra.mrb[16].mxu0 %vm166_vm1, %v12873_v42  ;;  %v12878_v42 = vld [vmem:[%s21768_s0 + $0x830] sm:$0xff] }
 0x1ed   :  { %15044 = vmatprep.mubr.msk.f32.mxu0 %vm166_vm1, %v12874_v41  ;;  %v12879_v41 = vld [vmem:[%s21768_s0 + $0x838] sm:$0xff] }
 0x1f0   :  { %15045 = vmatmul.mubr.msk.f32.gmra.mrb[18].mxu0 %vm166_vm1, %v12875_v39  ;;  %v12880_v39 = vld [vmem:[%s21768_s0 + $0x840] sm:$0xff] }
 0x1f1   :  { %15047 = vmatprep.mubr.msk.f32.mxu0 %vm166_vm1, %v12876_v45  ;;  %v12881_v45 = vld [vmem:[%s21768_s0 + $0x848] sm:$0xff] }
 0x1f4   :  { %15048 = vmatmul.mubr.msk.f32.gmra.mrb[20].mxu0 %vm166_vm1, %v12877_v40  ;;  %v12882_v40 = vld [vmem:[%s21768_s0 + $0x850] sm:$0xff] }
 0x1f5   :  { %15050 = vmatprep.mubr.msk.f32.mxu0 %vm166_vm1, %v12878_v42  ;;  %v12883_v42 = vld [vmem:[%s21768_s0 + $0x858] sm:$0xff] }
 0x1f8   :  { %15051 = vmatmul.mubr.msk.f32.gmra.mrb[22].mxu0 %vm166_vm1, %v12879_v41  ;;  %v12884_v41 = vld [vmem:[%s21768_s0 + $0x860] sm:$0xff] }
 0x1f9   :  { %15053 = vmatprep.mubr.msk.f32.mxu0 %vm166_vm1, %v12880_v39  ;;  %v12885_v39 = vld [vmem:[%s21768_s0 + $0x868] sm:$0xff] }
 0x1fc   :  { %15054 = vmatmul.mubr.msk.f32.gmra.mrb[24].mxu0 %vm166_vm1, %v12881_v45  ;;  %v12886_v45 = vld [vmem:[%s21768_s0 + $0x870] sm:$0xff] }
 0x1fd   :  { %15056 = vmatprep.mubr.msk.f32.mxu0 %vm166_vm1, %v12882_v40  ;;  %v12887_v40 = vld [vmem:[%s21768_s0 + $0x878] sm:$0xff] }
 0x200   :  { %15057 = vmatmul.mubr.msk.f32.gmra.mrb[26].mxu0 %vm166_vm1, %v12883_v42  ;;  %v12888_v42 = vld [vmem:[%s21768_s0 + $0x880] sm:$0xff] }
 0x201   :  { %15059 = vmatprep.mubr.msk.f32.mxu0 %vm166_vm1, %v12884_v41  ;;  %v12889_v41 = vld [vmem:[%s21768_s0 + $0x888] sm:$0xff] }
 0x204   :  { %15060 = vmatmul.mubr.msk.f32.gmra.mrb[28].mxu0 %vm166_vm1, %v12885_v39  ;;  %v12890_v39 = vld [vmem:[%s21768_s0 + $0x890] sm:$0xff] }
 0x205   :  { %15062 = vmatprep.mubr.msk.f32.mxu0 %vm166_vm1, %v12886_v45  ;;  %v12891_v45 = vld [vmem:[%s21768_s0 + $0x898] sm:$0xff] }
 0x208   :  { %15063 = vmatmul.mubr.msk.f32.gmra.mrb[30].mxu0 %vm166_vm1, %v12887_v40  ;;  %v12892_v40 = vld [vmem:[%s21768_s0 + $0x8a0] sm:$0xff] }
 0x209   :  { %15065 = vmatprep.mubr.msk.f32.mxu0 %vm166_vm1, %v12888_v42  ;;  %v12893_v42 = vld [vmem:[%s21768_s0 + $0x8a8] sm:$0xff] }
 0x20c   :  { %15066 = vmatmul.mubr.msk.f32.gmra.mrb[32].mxu0 %vm166_vm1, %v12889_v41  ;;  %v12894_v41 = vld [vmem:[%s21768_s0 + $0x8b0] sm:$0xff] }
 0x20d   :  { %15068 = vmatprep.mubr.msk.f32.mxu0 %vm166_vm1, %v12890_v39  ;;  %v12895_v39 = vld [vmem:[%s21768_s0 + $0x8b8] sm:$0xff] }
 0x210   :  { %15069 = vmatmul.mubr.msk.f32.gmra.mrb[34].mxu0 %vm166_vm1, %v12891_v45  ;;  %v12896_v45 = vld [vmem:[%s21768_s0 + $0x8c0] sm:$0xff] }
 0x211   :  { %15071 = vmatprep.mubr.msk.f32.mxu0 %vm166_vm1, %v12892_v40  ;;  %v12897_v40 = vld [vmem:[%s21768_s0 + $0x8c8] sm:$0xff] }
 0x214   :  { %15072 = vmatmul.mubr.msk.f32.gmra.mrb[36].mxu0 %vm166_vm1, %v12893_v42  ;;  %v12898_v42 = vld [vmem:[%s21768_s0 + $0x8d0] sm:$0xff] }
 0x215   :  { %15074 = vmatprep.mubr.msk.f32.mxu0 %vm166_vm1, %v12894_v41  ;;  %v12899_v41 = vld [vmem:[%s21768_s0 + $0x8d8] sm:$0xff] }
 0x218   :  { %15075 = vmatmul.mubr.msk.f32.gmra.mrb[38].mxu0 %vm166_vm1, %v12895_v39  ;;  %v12900_v39 = vld [vmem:[%s21768_s0 + $0x8e0] sm:$0xff] }
 0x219   :  { %15077 = vmatprep.mubr.msk.f32.mxu0 %vm166_vm1, %v12896_v45  ;;  %v12901_v45 = vld [vmem:[%s21768_s0 + $0x8e8] sm:$0xff] }
 0x21c   :  { %15078 = vmatmul.mubr.msk.f32.gmra.mrb[40].mxu0 %vm166_vm1, %v12897_v40  ;;  %v12902_v40 = vld [vmem:[%s21768_s0 + $0x8f0] sm:$0xff] }
 0x21d   :  { %15080 = vmatprep.mubr.msk.f32.mxu0 %vm166_vm1, %v12898_v42  ;;  %v12903_v42 = vld [vmem:[%s21768_s0 + $0x8f8] sm:$0xff] }
 0x220   :  { %15081 = vmatmul.mubr.msk.f32.gmra.mrb[42].mxu0 %vm166_vm1, %v12899_v41  ;;  %v12904_v41 = vld [vmem:[%s21768_s0 + $0x900] sm:$0xff] }
 0x221   :  { %15083 = vmatprep.mubr.msk.f32.mxu0 %vm166_vm1, %v12900_v39  ;;  %v12905_v39 = vld [vmem:[%s21768_s0 + $0x908] sm:$0xff] }
 0x224   :  { %15084 = vmatmul.mubr.msk.f32.gmra.mrb[44].mxu0 %vm166_vm1, %v12901_v45  ;;  %v12906_v45 = vld [vmem:[%s21768_s0 + $0x910] sm:$0xff] }
 0x225   :  { %15086 = vmatprep.mubr.msk.f32.mxu0 %vm166_vm1, %v12902_v40  ;;  %v12907_v40 = vld [vmem:[%s21768_s0 + $0x918] sm:$0xff] }
 0x228   :  { %15087 = vmatmul.mubr.msk.f32.gmra.mrb[46].mxu0 %vm166_vm1, %v12903_v42  ;;  %v12908_v42 = vld [vmem:[%s21768_s0 + $0x920] sm:$0xff] }
 0x229   :  { %15089 = vmatprep.mubr.msk.f32.mxu0 %vm166_vm1, %v12904_v41  ;;  %v12909_v41 = vld [vmem:[%s21768_s0 + $0x928] sm:$0xff] }
 0x22c   :  { %15090 = vmatmul.mubr.msk.f32.gmra.mrb[48].mxu0 %vm166_vm1, %v12905_v39  ;;  %v12910_v39 = vld [vmem:[%s21768_s0 + $0x930] sm:$0xff] }
 0x22d   :  { %15092 = vmatprep.mubr.msk.f32.mxu0 %vm166_vm1, %v12906_v45  ;;  %v12911_v45 = vld [vmem:[%s21768_s0 + $0x938] sm:$0xff] }
 0x230   :  { %15093 = vmatmul.mubr.msk.f32.gmra.mrb[50].mxu0 %vm166_vm1, %v12907_v40  ;;  %v12912_v40 = vld [vmem:[%s21768_s0 + $0x940] sm:$0xff] }
 0x231   :  { %15095 = vmatprep.mubr.msk.f32.mxu0 %vm166_vm1, %v12908_v42  ;;  %v12913_v42 = vld [vmem:[%s21768_s0 + $0x948] sm:$0xff] }
 0x234   :  { %15096 = vmatmul.mubr.msk.f32.gmra.mrb[52].mxu0 %vm166_vm1, %v12909_v41  ;;  %v12914_v41 = vld [vmem:[%s21768_s0 + $0x950] sm:$0xff] }
 0x235   :  { %15098 = vmatprep.mubr.msk.f32.mxu0 %vm166_vm1, %v12910_v39  ;;  %v12915_v39 = vld [vmem:[%s21768_s0 + $0x958] sm:$0xff] }
 0x238   :  { %15099 = vmatmul.mubr.msk.f32.gmra.mrb[54].mxu0 %vm166_vm1, %v12911_v45  ;;  %v12916_v45 = vld [vmem:[%s21768_s0 + $0x960] sm:$0xff] }
 0x239   :  { %15101 = vmatprep.mubr.msk.f32.mxu0 %vm166_vm1, %v12912_v40  ;;  %v12917_v40 = vld [vmem:[%s21768_s0 + $0x968] sm:$0xff] }
 0x23c   :  { %15102 = vmatmul.mubr.msk.f32.gmra.mrb[56].mxu0 %vm166_vm1, %v12913_v42  ;;  %v12918_v42 = vld [vmem:[%s21768_s0 + $0x970] sm:$0xff] }
 0x23d   :  { %15104 = vmatprep.mubr.msk.f32.mxu0 %vm166_vm1, %v12914_v41  ;;  %v12919_v41 = vld [vmem:[%s21768_s0 + $0x978] sm:$0xff] }
 0x240   :  { %15105 = vmatmul.mubr.msk.f32.gmra.mrb[58].mxu0 %vm166_vm1, %v12915_v39  ;;  %v18834_v39 = vld [vmem:[%s21767_s1 + $0x1c] sm:$0xf] }
 0x241   :  { %15107 = vmatprep.mubr.msk.f32.mxu0 %vm166_vm1, %v12916_v45  ;;  %v19335_v45 = vld [vmem:[%s21768_s0 + $0x180] sm:$0xff] }
 0x242   :  { %21841 = vst [vmem:[#allocation11_spill] sm:$0xff] %v19335_v45 }
 0x244   :  { %15108 = vmatmul.mubr.msk.f32.gmra.mrb[60].mxu0 %vm166_vm1, %v12917_v40  ;;  %v19344_v40 = vld [vmem:[%s21768_s0 + $0x400] sm:$0xff] }
 0x245   :  { %15110 = vmatprep.mubr.msk.f32.mxu0 %vm166_vm1, %v12918_v42  ;;  %v19351_v42 = vld [vmem:[%s21768_s0 + $0x188] sm:$0xff] }
 0x246   :  { %21842 = vst [vmem:[#allocation12_spill] sm:$0xff] %v19351_v42 }
 0x248   :  { %15111 = vmatmul.mubr.msk.f32.gmra.mrb[62].mxu0 %vm166_vm1, %v12919_v41  ;;  %v19356_v41 = vld [vmem:[%s21768_s0 + $0x408] sm:$0xff] }
 0x249   :  { %15115 = vmatprep.mubr.msk.f32.mxu0 %vm166_vm1, %v18115_v43  ;;  %v21828_v43 = vld [vmem:[#allocation3_spill] sm:$0xff] }
 0x24c   :  { %15116 = vmatmul.mubr.msk.f32.vlgmr.msra.gmra.mrb[0].mxu0 %vm166_vm1, %v18120_v44  ;;  %v21829_v44 = vld [vmem:[#allocation4_spill] sm:$0xff] }
 0x24d   :  { %15212 = vmatpush3.msk.msra.mxu0 %vm359_vm0, %v18576_v38  ;;  %15118 = vmatprep.mubr.msk.f32.mxu0 %vm166_vm1, %v18136_v46  ;;  %v21830_v46 = vld [vmem:[#allocation5_spill] sm:$0xff] }
 0x24e   :  { %15309 = vmatprep.subr.msk.mxu0 %vm359_vm0, %v18834_v39  ;;  %v19328_v38 = vld [vmem:[%s21768_s0 + $0x3f8] sm:$0xff] }
 0x250   :  { %15119 = vmatmul.mubr.msk.f32.gmra.mrb[2].mxu0 %vm166_vm1, %v18141_v47  ;;  %v21831_v47 = vld [vmem:[#allocation6_spill] sm:$0xff] }
 0x251   :  { %15121 = vmatprep.mubr.msk.f32.mxu0 %vm166_vm1, %v18152_v48  ;;  %v21832_v48 = vld [vmem:[#allocation7_spill] sm:$0xff] }
 0x254   :  { %15122 = vmatmul.mubr.msk.f32.gmra.mrb[4].mxu0 %vm166_vm1, %v18157_v49  ;;  %v13049_v49 = vld [vmem:[%s21768_s0 + $0x700] sm:$0xff] }
 0x255   :  { %15124 = vmatprep.mubr.msk.f32.mxu0 %vm166_vm1, %v18166_v50  ;;  %v4170_v50 = vld [vmem:[%s21768_s0 + $0x40] sm:$0xff] }
 0x258   :  { %15125 = vmatmul.mubr.msk.f32.gmra.mrb[6].mxu0 %vm166_vm1, %v18171_v51  ;;  %v18973_v51 = vld [vmem:[%s21768_s0 + $0x48] sm:$0xff] }
 0x259   :  { %15127 = vmatprep.mubr.msk.f32.mxu0 %vm166_vm1, %v18180_v52  ;;  %v18978_v52 = vld [vmem:[%s21768_s0 + $0x50] sm:$0xff] }
 0x25c   :  { %15128 = vmatmul.mubr.msk.f32.gmra.mrb[8].mxu0 %vm166_vm1, %v18185_v53  ;;  %v18985_v53 = vld [vmem:[%s21767_s1 + $0x20] sm:$0xf] }
 0x25d   :  { %15130 = vmatprep.mubr.msk.f32.mxu0 %vm166_vm1, %v18194_v54  ;;  %v18994_v54 = vld [vmem:[%s21768_s0 + $0x58] sm:$0xff] }
 0x260   :  { %15131 = vmatmul.mubr.msk.f32.gmra.mrb[10].mxu0 %vm166_vm1, %v18199_v55  ;;  %v18999_v55 = vld [vmem:[%s21768_s0 + $0x60] sm:$0xff] }
 0x261   :  { %15133 = vmatprep.mubr.msk.f32.mxu0 %vm166_vm1, %v18208_v56  ;;  %v19010_v56 = vld [vmem:[%s21768_s0 + $0x68] sm:$0xff] }
 0x264   :  { %15134 = vmatmul.mubr.msk.f32.gmra.mrb[12].mxu0 %vm166_vm1, %v18213_v57  ;;  %v19015_v57 = vld [vmem:[%s21768_s0 + $0x70] sm:$0xff] }
 0x265   :  { %15136 = vmatprep.mubr.msk.f32.mxu0 %vm166_vm1, %v18222_v58  ;;  %v19024_v58 = vld [vmem:[%s21768_s0 + $0x78] sm:$0xff] }
 0x268   :  { %15137 = vmatmul.mubr.msk.f32.gmra.mrb[14].mxu0 %vm166_vm1, %v18227_v59  ;;  %v19029_v59 = vld [vmem:[%s21768_s0 + $0x80] sm:$0xff] }
 0x269   :  { %15139 = vmatprep.mubr.msk.f32.mxu0 %vm166_vm1, %v18236_v60  ;;  %v19038_v60 = vld [vmem:[%s21768_s0 + $0x88] sm:$0xff] }
 0x26c   :  { %15140 = vmatmul.mubr.msk.f32.gmra.mrb[16].mxu0 %vm166_vm1, %v18241_v61  ;;  %v19043_v61 = vld [vmem:[%s21768_s0 + $0x90] sm:$0xff] }
 0x26d   :  { %15142 = vmatprep.mubr.msk.f32.mxu0 %vm166_vm1, %v18250_v62  ;;  %v19052_v62 = vld [vmem:[%s21768_s0 + $0x98] sm:$0xff] }
 0x270   :  { %15143 = vmatmul.mubr.msk.f32.gmra.mrb[18].mxu0 %vm166_vm1, %v18255_v63  ;;  %v19057_v63 = vld [vmem:[%s21768_s0 + $0xa0] sm:$0xff] }
 0x271   :  { %15145 = vmatprep.mubr.msk.f32.mxu0 %vm166_vm1, %v18264_v0  ;;  %v19066_v0 = vld [vmem:[%s21768_s0 + $0xa8] sm:$0xff] }
 0x274   :  { %15146 = vmatmul.mubr.msk.f32.gmra.mrb[20].mxu0 %vm166_vm1, %v18269_v1  ;;  %v19071_v1 = vld [vmem:[%s21768_s0 + $0xb0] sm:$0xff] }
 0x275   :  { %15148 = vmatprep.mubr.msk.f32.mxu0 %vm166_vm1, %v18278_v2  ;;  %v19080_v2 = vld [vmem:[%s21768_s0 + $0xb8] sm:$0xff] }
 0x278   :  { %15149 = vmatmul.mubr.msk.f32.gmra.mrb[22].mxu0 %vm166_vm1, %v18283_v3  ;;  %v19085_v3 = vld [vmem:[%s21768_s0 + $0xc0] sm:$0xff] }
 0x279   :  { %15151 = vmatprep.mubr.msk.f32.mxu0 %vm166_vm1, %v18292_v4  ;;  %v19094_v4 = vld [vmem:[%s21768_s0 + $0xc8] sm:$0xff] }
 0x27c   :  { %15152 = vmatmul.mubr.msk.f32.gmra.mrb[24].mxu0 %vm166_vm1, %v18297_v5  ;;  %v19099_v5 = vld [vmem:[%s21768_s0 + $0xd0] sm:$0xff] }
 0x27d   :  { %15154 = vmatprep.mubr.msk.f32.mxu0 %vm166_vm1, %v18306_v6  ;;  %v19108_v6 = vld [vmem:[%s21768_s0 + $0xd8] sm:$0xff] }
 0x280   :  { %15155 = vmatmul.mubr.msk.f32.gmra.mrb[26].mxu0 %vm166_vm1, %v18311_v7  ;;  %v19113_v7 = vld [vmem:[%s21768_s0 + $0xe0] sm:$0xff] }
 0x281   :  { %15157 = vmatprep.mubr.msk.f32.mxu0 %vm166_vm1, %v18320_v8  ;;  %v19122_v8 = vld [vmem:[%s21768_s0 + $0xe8] sm:$0xff] }
 0x284   :  { %15158 = vmatmul.mubr.msk.f32.gmra.mrb[28].mxu0 %vm166_vm1, %v18325_v9  ;;  %v19127_v9 = vld [vmem:[%s21768_s0 + $0xf0] sm:$0xff] }
 0x285   :  { %15160 = vmatprep.mubr.msk.f32.mxu0 %vm166_vm1, %v18334_v10  ;;  %v19136_v10 = vld [vmem:[%s21768_s0 + $0xf8] sm:$0xff] }
 0x288   :  { %15161 = vmatmul.mubr.msk.f32.gmra.mrb[30].mxu0 %vm166_vm1, %v18339_v11  ;;  %v19141_v11 = vld [vmem:[%s21768_s0 + $0x100] sm:$0xff] }
 0x289   :  { %15163 = vmatprep.mubr.msk.f32.mxu0 %vm166_vm1, %v18348_v12  ;;  %v19150_v12 = vld [vmem:[%s21768_s0 + $0x108] sm:$0xff] }
 0x28c   :  { %15164 = vmatmul.mubr.msk.f32.gmra.mrb[32].mxu0 %vm166_vm1, %v18353_v13  ;;  %v19155_v13 = vld [vmem:[%s21768_s0 + $0x110] sm:$0xff] }
 0x28d   :  { %15166 = vmatprep.mubr.msk.f32.mxu0 %vm166_vm1, %v18362_v14  ;;  %v19164_v14 = vld [vmem:[%s21768_s0 + $0x118] sm:$0xff] }
 0x290   :  { %15167 = vmatmul.mubr.msk.f32.gmra.mrb[34].mxu0 %vm166_vm1, %v18367_v15  ;;  %v19169_v15 = vld [vmem:[%s21768_s0 + $0x120] sm:$0xff] }
 0x291   :  { %15169 = vmatprep.mubr.msk.f32.mxu0 %vm166_vm1, %v18376_v16  ;;  %v19176_v16 = vld [vmem:[%s21768_s0 + $0x3a0] sm:$0xff] }
 0x292   :  { %14679 = vmatprep.mubr.msk.f32.mxu1 %vm166_vm1, %v19176_v16 }
 0x294   :  { %15170 = vmatmul.mubr.msk.f32.gmra.mrb[36].mxu0 %vm166_vm1, %v18381_v17  ;;  %v19183_v17 = vld [vmem:[%s21768_s0 + $0x128] sm:$0xff] }
 0x295   :  { %15172 = vmatprep.mubr.msk.f32.mxu0 %vm166_vm1, %v18390_v18  ;;  %v19188_v18 = vld [vmem:[%s21768_s0 + $0x3a8] sm:$0xff] }
 0x296   :  { %14680 = vmatmul.mubr.msk.f32.vlgmr.msra.gmra.mrb[0].mxu1 %vm166_vm1, %v19188_v18 }
 0x298   :  { %15173 = vmatmul.mubr.msk.f32.gmra.mrb[38].mxu0 %vm166_vm1, %v18395_v19  ;;  %v19195_v19 = vld [vmem:[%s21768_s0 + $0x130] sm:$0xff] }
 0x299   :  { %15175 = vmatprep.mubr.msk.f32.mxu0 %vm166_vm1, %v18404_v20  ;;  %v19204_v20 = vld [vmem:[%s21768_s0 + $0x3b0] sm:$0xff] }
 0x29a   :  { %14682 = vmatprep.mubr.msk.f32.mxu1 %vm166_vm1, %v19204_v20 }
 0x29c   :  { %15176 = vmatmul.mubr.msk.f32.gmra.mrb[40].mxu0 %vm166_vm1, %v18409_v21  ;;  %v19211_v21 = vld [vmem:[%s21768_s0 + $0x138] sm:$0xff] }
 0x29d   :  { %15178 = vmatprep.mubr.msk.f32.mxu0 %vm166_vm1, %v18418_v22  ;;  %v19216_v22 = vld [vmem:[%s21768_s0 + $0x3b8] sm:$0xff] }
 0x29e   :  { %14683 = vmatmul.mubr.msk.f32.gmra.mrb[2].mxu1 %vm166_vm1, %v19216_v22 }
 0x2a0   :  { %15179 = vmatmul.mubr.msk.f32.gmra.mrb[42].mxu0 %vm166_vm1, %v18423_v23  ;;  %v19223_v23 = vld [vmem:[%s21768_s0 + $0x140] sm:$0xff] }
 0x2a1   :  { %15181 = vmatprep.mubr.msk.f32.mxu0 %vm166_vm1, %v18432_v24  ;;  %21833 = vst [vmem:[#allocation3_spill] sm:$0xff] %v19223_v23  ;;  %v19232_v24 = vld [vmem:[%s21768_s0 + $0x3c0] sm:$0xff] }
 0x2a2   :  { %14685 = vmatprep.mubr.msk.f32.mxu1 %vm166_vm1, %v19232_v24 }
 0x2a4   :  { %15182 = vmatmul.mubr.msk.f32.gmra.mrb[44].mxu0 %vm166_vm1, %v18437_v25  ;;  %v19239_v25 = vld [vmem:[%s21768_s0 + $0x148] sm:$0xff] }
 0x2a5   :  { %15184 = vmatprep.mubr.msk.f32.mxu0 %vm166_vm1, %v18446_v26  ;;  %21834 = vst [vmem:[#allocation4_spill] sm:$0xff] %v19239_v25  ;;  %v19244_v26 = vld [vmem:[%s21768_s0 + $0x3c8] sm:$0xff] }
 0x2a6   :  { %14686 = vmatmul.mubr.msk.f32.gmra.mrb[4].mxu1 %vm166_vm1, %v19244_v26 }
 0x2a8   :  { %15185 = vmatmul.mubr.msk.f32.gmra.mrb[46].mxu0 %vm166_vm1, %v18451_v27  ;;  %v19251_v27 = vld [vmem:[%s21768_s0 + $0x150] sm:$0xff] }
 0x2a9   :  { %15187 = vmatprep.mubr.msk.f32.mxu0 %vm166_vm1, %v18460_v28  ;;  %21835 = vst [vmem:[#allocation5_spill] sm:$0xff] %v19251_v27  ;;  %v19260_v28 = vld [vmem:[%s21768_s0 + $0x3d0] sm:$0xff] }
 0x2aa   :  { %14688 = vmatprep.mubr.msk.f32.mxu1 %vm166_vm1, %v19260_v28 }
 0x2ac   :  { %15188 = vmatmul.mubr.msk.f32.gmra.mrb[48].mxu0 %vm166_vm1, %v18465_v29  ;;  %v19267_v29 = vld [vmem:[%s21768_s0 + $0x158] sm:$0xff] }
 0x2ad   :  { %15190 = vmatprep.mubr.msk.f32.mxu0 %vm166_vm1, %v18474_v30  ;;  %21836 = vst [vmem:[#allocation6_spill] sm:$0xff] %v19267_v29  ;;  %v19272_v30 = vld [vmem:[%s21768_s0 + $0x3d8] sm:$0xff] }
 0x2ae   :  { %14689 = vmatmul.mubr.msk.f32.gmra.mrb[6].mxu1 %vm166_vm1, %v19272_v30 }
 0x2b0   :  { %15191 = vmatmul.mubr.msk.f32.gmra.mrb[50].mxu0 %vm166_vm1, %v18479_v31  ;;  %v19279_v31 = vld [vmem:[%s21768_s0 + $0x160] sm:$0xff] }
 0x2b1   :  { %15193 = vmatprep.mubr.msk.f32.mxu0 %vm166_vm1, %v18488_v32  ;;  %21837 = vst [vmem:[#allocation7_spill] sm:$0xff] %v19279_v31  ;;  %v19288_v32 = vld [vmem:[%s21768_s0 + $0x3e0] sm:$0xff] }
 0x2b2   :  { %14691 = vmatprep.mubr.msk.f32.mxu1 %vm166_vm1, %v19288_v32 }
 0x2b4   :  { %15194 = vmatmul.mubr.msk.f32.gmra.mrb[52].mxu0 %vm166_vm1, %v18493_v33  ;;  %v19295_v33 = vld [vmem:[%s21768_s0 + $0x168] sm:$0xff] }
 0x2b5   :  { %15196 = vmatprep.mubr.msk.f32.mxu0 %vm166_vm1, %v18502_v34  ;;  %21838 = vst [vmem:[#allocation8_spill] sm:$0xff] %v19295_v33  ;;  %v19300_v34 = vld [vmem:[%s21768_s0 + $0x3e8] sm:$0xff] }
 0x2b6   :  { %14692 = vmatmul.mubr.msk.f32.gmra.mrb[8].mxu1 %vm166_vm1, %v19300_v34 }
 0x2b8   :  { %15197 = vmatmul.mubr.msk.f32.gmra.mrb[54].mxu0 %vm166_vm1, %v18507_v35  ;;  %v19307_v35 = vld [vmem:[%s21768_s0 + $0x170] sm:$0xff] }
 0x2b9   :  { %15199 = vmatprep.mubr.msk.f32.mxu0 %vm166_vm1, %v18516_v36  ;;  %21839 = vst [vmem:[#allocation9_spill] sm:$0xff] %v19307_v35  ;;  %v19316_v36 = vld [vmem:[%s21768_s0 + $0x3f0] sm:$0xff] }
 0x2ba   :  { %14694 = vmatprep.mubr.msk.f32.mxu1 %vm166_vm1, %v19316_v36 }
 0x2bb   :  { %14695 = vmatmul.mubr.msk.f32.gmra.mrb[10].mxu1 %vm166_vm1, %v19328_v38 }
 0x2bc   :  { %15200 = vmatmul.mubr.msk.f32.gmra.mrb[56].mxu0 %vm166_vm1, %v18521_v37  ;;  %v19323_v37 = vld [vmem:[%s21768_s0 + $0x178] sm:$0xff]  ;;  %14697 = vmatprep.mubr.msk.f32.mxu1 %vm166_vm1, %v19344_v40 }
 0x2bd   :  { %15202 = vmatprep.mubr.msk.f32.mxu0 %vm166_vm1, %v21828_v43  ;;  %21840 = vst [vmem:[#allocation10_spill] sm:$0xff] %v19323_v37  ;;  %v19372_v43 = vld [vmem:[%s21768_s0 + $0x410] sm:$0xff] }
 0x2bf   :  { %14698 = vmatmul.mubr.msk.f32.gmra.mrb[12].mxu1 %vm166_vm1, %v19356_v41 }
 0x2c0   :  { %15203 = vmatmul.mubr.msk.f32.gmra.mrb[58].mxu0 %vm166_vm1, %v21829_v44  ;;  %v19379_v44 = vld [vmem:[%s21768_s0 + $0x198] sm:$0xff]  ;;  %14700 = vmatprep.mubr.msk.f32.mxu1 %vm166_vm1, %v19372_v43 }
 0x2c1   :  { %15205 = vmatprep.mubr.msk.f32.mxu0 %vm166_vm1, %v21830_v46  ;;  %21844 = vst [vmem:[#allocation14_spill] sm:$0xff] %v19379_v44  ;;  %v19384_v46 = vld [vmem:[%s21768_s0 + $0x418] sm:$0xff] }
 0x2c3   :  { %14701 = vmatmul.mubr.msk.f32.gmra.mrb[14].mxu1 %vm166_vm1, %v19384_v46 }
 0x2c4   :  { %15206 = vmatmul.mubr.msk.f32.gmra.mrb[60].mxu0 %vm166_vm1, %v21831_v47  ;;  %v19391_v47 = vld [vmem:[%s21768_s0 + $0x1a0] sm:$0xff] }
 0x2c5   :  { %15208 = vmatprep.mubr.msk.f32.mxu0 %vm166_vm1, %v21832_v48  ;;  %21845 = vst [vmem:[#allocation15_spill] sm:$0xff] %v19391_v47  ;;  %v19400_v48 = vld [vmem:[%s21768_s0 + $0x420] sm:$0xff] }
 0x2c6   :  { %14703 = vmatprep.mubr.msk.f32.mxu1 %vm166_vm1, %v19400_v48 }
 0x2c8   :  { %15209 = vmatmul.mubr.msk.f32.gmra.mrb[62].mxu0 %vm166_vm1, %v13049_v49  ;;  %v19407_v49 = vld [vmem:[%s21768_s0 + $0x1a8] sm:$0xff] }
 0x2c9   :  { %15213 = vmatprep.mubr.msk.f32.mxu0 %vm166_vm1, %v4170_v50  ;;  %21846 = vst [vmem:[#allocation16_spill] sm:$0xff] %v19407_v49  ;;  %v19412_v50 = vld [vmem:[%s21768_s0 + $0x428] sm:$0xff] }
 0x2ca   :  { %14704 = vmatmul.mubr.msk.f32.gmra.mrb[16].mxu1 %vm166_vm1, %v19412_v50 }
 0x2cc   :  { %15214 = vmatmul.mubr.msk.f32.vlgmr.msra.gmra.mrb[0].mxu0 %vm166_vm1, %v18973_v51 }
 0x2cd   :  { %15310 = vmatpush3.msk.msra.mxu0 %vm359_vm0, %v18834_v39  ;;  %15216 = vmatprep.mubr.msk.f32.mxu0 %vm166_vm1, %v18978_v52  ;;  %v19363_v39 = vld [vmem:[%s21768_s0 + $0x190] sm:$0xff] }
 0x2ce   :  { %15407 = vmatprep.subr.msk.mxu0 %vm359_vm0, %v18985_v53  ;;  %21843 = vst [vmem:[#allocation13_spill] sm:$0xff] %v19363_v39 }
 0x2d0   :  { %15217 = vmatmul.mubr.msk.f32.gmra.mrb[2].mxu0 %vm166_vm1, %v18994_v54 }
 0x2d1   :  { %15219 = vmatprep.mubr.msk.f32.mxu0 %vm166_vm1, %v18999_v55 }
 0x2d4   :  { %15220 = vmatmul.mubr.msk.f32.gmra.mrb[4].mxu0 %vm166_vm1, %v19010_v56 }
 0x2d5   :  { %15222 = vmatprep.mubr.msk.f32.mxu0 %vm166_vm1, %v19015_v57 }
 0x2d8   :  { %15223 = vmatmul.mubr.msk.f32.gmra.mrb[6].mxu0 %vm166_vm1, %v19024_v58 }
 0x2d9   :  { %15225 = vmatprep.mubr.msk.f32.mxu0 %vm166_vm1, %v19029_v59 }
 0x2dc   :  { %15226 = vmatmul.mubr.msk.f32.gmra.mrb[8].mxu0 %vm166_vm1, %v19038_v60 }
 0x2dd   :  { %15228 = vmatprep.mubr.msk.f32.mxu0 %vm166_vm1, %v19043_v61 }
 0x2e0   :  { %15229 = vmatmul.mubr.msk.f32.gmra.mrb[10].mxu0 %vm166_vm1, %v19052_v62 }
 0x2e1   :  { %15231 = vmatprep.mubr.msk.f32.mxu0 %vm166_vm1, %v19057_v63 }
 0x2e4   :  { %15232 = vmatmul.mubr.msk.f32.gmra.mrb[12].mxu0 %vm166_vm1, %v19066_v0 }
 0x2e5   :  { %15234 = vmatprep.mubr.msk.f32.mxu0 %vm166_vm1, %v19071_v1 }
 0x2e8   :  { %15235 = vmatmul.mubr.msk.f32.gmra.mrb[14].mxu0 %vm166_vm1, %v19080_v2 }
 0x2e9   :  { %15237 = vmatprep.mubr.msk.f32.mxu0 %vm166_vm1, %v19085_v3 }
 0x2ec   :  { %15238 = vmatmul.mubr.msk.f32.gmra.mrb[16].mxu0 %vm166_vm1, %v19094_v4 }
 0x2ed   :  { %15240 = vmatprep.mubr.msk.f32.mxu0 %vm166_vm1, %v19099_v5 }
 0x2f0   :  { %15241 = vmatmul.mubr.msk.f32.gmra.mrb[18].mxu0 %vm166_vm1, %v19108_v6 }
 0x2f1   :  { %15243 = vmatprep.mubr.msk.f32.mxu0 %vm166_vm1, %v19113_v7 }
 0x2f4   :  { %15244 = vmatmul.mubr.msk.f32.gmra.mrb[20].mxu0 %vm166_vm1, %v19122_v8 }
 0x2f5   :  { %15246 = vmatprep.mubr.msk.f32.mxu0 %vm166_vm1, %v19127_v9 }
 0x2f8   :  { %15247 = vmatmul.mubr.msk.f32.gmra.mrb[22].mxu0 %vm166_vm1, %v19136_v10 }
 0x2f9   :  { %15249 = vmatprep.mubr.msk.f32.mxu0 %vm166_vm1, %v19141_v11 }
 0x2fc   :  { %15250 = vmatmul.mubr.msk.f32.gmra.mrb[24].mxu0 %vm166_vm1, %v19150_v12 }
 0x2fd   :  { %15252 = vmatprep.mubr.msk.f32.mxu0 %vm166_vm1, %v19155_v13 }
 0x300   :  { %15253 = vmatmul.mubr.msk.f32.gmra.mrb[26].mxu0 %vm166_vm1, %v19164_v14 }
 0x301   :  { %15255 = vmatprep.mubr.msk.f32.mxu0 %vm166_vm1, %v19169_v15 }
 0x304   :  { %15256 = vmatmul.mubr.msk.f32.gmra.mrb[28].mxu0 %vm166_vm1, %v19183_v17 }
 0x305   :  { %15258 = vmatprep.mubr.msk.f32.mxu0 %vm166_vm1, %v19195_v19 }
 0x308   :  { %15259 = vmatmul.mubr.msk.f32.gmra.mrb[30].mxu0 %vm166_vm1, %v19211_v21 }
 0x309   :  { %15261 = vmatprep.mubr.msk.f32.mxu0 %vm166_vm1, %v19223_v23  ;;  %v19570_v23 = vld [vmem:[%s21768_s0 + $0x210] sm:$0xff] }
 0x30a   :  { %21859 = vst [vmem:[#allocation27_spill] sm:$0xff] %v19570_v23 }
 0x30c   :  { %15262 = vmatmul.mubr.msk.f32.gmra.mrb[32].mxu0 %vm166_vm1, %v19239_v25  ;;  %v19552_v25 = vld [vmem:[%s21768_s0 + $0x478] sm:$0xff] }
 0x30d   :  { %15264 = vmatprep.mubr.msk.f32.mxu0 %vm166_vm1, %v19251_v27  ;;  %v19547_v27 = vld [vmem:[%s21768_s0 + $0x1f8] sm:$0xff] }
 0x30e   :  { %21856 = vst [vmem:[#allocation26_spill] sm:$0xff] %v19547_v27 }
 0x310   :  { %15265 = vmatmul.mubr.msk.f32.gmra.mrb[34].mxu0 %vm166_vm1, %v19267_v29  ;;  %v19524_v29 = vld [vmem:[%s21768_s0 + $0x468] sm:$0xff] }
 0x311   :  { %15267 = vmatprep.mubr.msk.f32.mxu0 %vm166_vm1, %v19279_v31  ;;  %v19519_v31 = vld [vmem:[%s21768_s0 + $0x1e8] sm:$0xff] }
 0x312   :  { %21854 = vst [vmem:[#allocation24_spill] sm:$0xff] %v19519_v31 }
 0x314   :  { %15268 = vmatmul.mubr.msk.f32.gmra.mrb[36].mxu0 %vm166_vm1, %v19295_v33  ;;  %v19496_v33 = vld [vmem:[%s21768_s0 + $0x458] sm:$0xff] }
 0x315   :  { %15270 = vmatprep.mubr.msk.f32.mxu0 %vm166_vm1, %v19307_v35  ;;  %v19491_v35 = vld [vmem:[%s21768_s0 + $0x1d8] sm:$0xff] }
 0x316   :  { %21852 = vst [vmem:[#allocation22_spill] sm:$0xff] %v19491_v35 }
 0x318   :  { %15271 = vmatmul.mubr.msk.f32.gmra.mrb[38].mxu0 %vm166_vm1, %v19323_v37  ;;  %v19468_v37 = vld [vmem:[%s21768_s0 + $0x448] sm:$0xff] }
 0x319   :  { %15273 = vmatprep.mubr.msk.f32.mxu0 %vm166_vm1, %v19335_v45  ;;  %v19463_v45 = vld [vmem:[%s21768_s0 + $0x1c8] sm:$0xff] }
 0x31a   :  { %21850 = vst [vmem:[#allocation20_spill] sm:$0xff] %v19463_v45 }
 0x31c   :  { %15274 = vmatmul.mubr.msk.f32.gmra.mrb[40].mxu0 %vm166_vm1, %v19351_v42  ;;  %v19440_v42 = vld [vmem:[%s21768_s0 + $0x438] sm:$0xff] }
 0x31d   :  { %15276 = vmatprep.mubr.msk.f32.mxu0 %vm166_vm1, %v19363_v39  ;;  %v19435_v39 = vld [vmem:[%s21768_s0 + $0x1b8] sm:$0xff] }
 0x31e   :  { %21848 = vst [vmem:[#allocation18_spill] sm:$0xff] %v19435_v39 }
 0x320   :  { %15277 = vmatmul.mubr.msk.f32.gmra.mrb[42].mxu0 %vm166_vm1, %v19379_v44  ;;  %v19419_v44 = vld [vmem:[%s21768_s0 + $0x1b0] sm:$0xff] }
 0x321   :  { %15279 = vmatprep.mubr.msk.f32.mxu0 %vm166_vm1, %v19391_v47  ;;  %21847 = vst [vmem:[#allocation17_spill] sm:$0xff] %v19419_v44  ;;  %v19428_v47 = vld [vmem:[%s21768_s0 + $0x430] sm:$0xff] }
 0x322   :  { %14706 = vmatprep.mubr.msk.f32.mxu1 %vm166_vm1, %v19428_v47 }
 0x323   :  { %14707 = vmatmul.mubr.msk.f32.gmra.mrb[18].mxu1 %vm166_vm1, %v19440_v42 }
 0x324   :  { %15280 = vmatmul.mubr.msk.f32.gmra.mrb[44].mxu0 %vm166_vm1, %v19407_v49  ;;  %v19447_v49 = vld [vmem:[%s21768_s0 + $0x1c0] sm:$0xff] }
 0x325   :  { %15282 = vmatprep.mubr.msk.f32.mxu0 %vm166_vm1, %v19419_v44  ;;  %21849 = vst [vmem:[#allocation19_spill] sm:$0xff] %v19447_v49  ;;  %v19456_v44 = vld [vmem:[%s21768_s0 + $0x440] sm:$0xff] }
 0x326   :  { %14709 = vmatprep.mubr.msk.f32.mxu1 %vm166_vm1, %v19456_v44 }
 0x327   :  { %14710 = vmatmul.mubr.msk.f32.gmra.mrb[20].mxu1 %vm166_vm1, %v19468_v37 }
 0x328   :  { %15283 = vmatmul.mubr.msk.f32.gmra.mrb[46].mxu0 %vm166_vm1, %v19435_v39  ;;  %v19475_v39 = vld [vmem:[%s21768_s0 + $0x1d0] sm:$0xff] }
 0x329   :  { %15285 = vmatprep.mubr.msk.f32.mxu0 %vm166_vm1, %v19447_v49  ;;  %21851 = vst [vmem:[#allocation21_spill] sm:$0xff] %v19475_v39  ;;  %v19484_v49 = vld [vmem:[%s21768_s0 + $0x450] sm:$0xff] }
 0x32a   :  { %14712 = vmatprep.mubr.msk.f32.mxu1 %vm166_vm1, %v19484_v49 }
 0x32b   :  { %14713 = vmatmul.mubr.msk.f32.gmra.mrb[22].mxu1 %vm166_vm1, %v19496_v33 }
 0x32c   :  { %15286 = vmatmul.mubr.msk.f32.gmra.mrb[48].mxu0 %vm166_vm1, %v19463_v45  ;;  %v19503_v45 = vld [vmem:[%s21768_s0 + $0x1e0] sm:$0xff] }
 0x32d   :  { %15288 = vmatprep.mubr.msk.f32.mxu0 %vm166_vm1, %v19475_v39  ;;  %21853 = vst [vmem:[#allocation23_spill] sm:$0xff] %v19503_v45  ;;  %v19512_v39 = vld [vmem:[%s21768_s0 + $0x460] sm:$0xff] }
 0x32e   :  { %14715 = vmatprep.mubr.msk.f32.mxu1 %vm166_vm1, %v19512_v39 }
 0x32f   :  { %14716 = vmatmul.mubr.msk.f32.gmra.mrb[24].mxu1 %vm166_vm1, %v19524_v29 }
 0x330   :  { %15289 = vmatmul.mubr.msk.f32.gmra.mrb[50].mxu0 %vm166_vm1, %v19491_v35  ;;  %v19531_v35 = vld [vmem:[%s21768_s0 + $0x1f0] sm:$0xff] }
 0x331   :  { %15291 = vmatprep.mubr.msk.f32.mxu0 %vm166_vm1, %v19503_v45  ;;  %21855 = vst [vmem:[#allocation25_spill] sm:$0xff] %v19531_v35  ;;  %v19540_v45 = vld [vmem:[%s21768_s0 + $0x470] sm:$0xff] }
 0x332   :  { %14718 = vmatprep.mubr.msk.f32.mxu1 %vm166_vm1, %v19540_v45 }
 0x333   :  { %14719 = vmatmul.mubr.msk.f32.gmra.mrb[26].mxu1 %vm166_vm1, %v19552_v25 }
 0x334   :  { %15292 = vmatmul.mubr.msk.f32.gmra.mrb[52].mxu0 %vm166_vm1, %v19519_v31  ;;  %v19565_v31 = vld [vmem:[%s21768_s0 + $0x208] sm:$0xff] }
 0x335   :  { %15294 = vmatprep.mubr.msk.f32.mxu0 %vm166_vm1, %v19531_v35  ;;  %v21857_v35 = vld [vmem:[#allocation2_spill] sm:$0xff] }
 0x336   :  { %21858 = vst [vmem:[#allocation2_spill] sm:$0xff] %v19565_v31 }
 0x338   :  { %15295 = vmatmul.mubr.msk.f32.gmra.mrb[54].mxu0 %vm166_vm1, %v19547_v27  ;;  %v19584_v27 = vld [vmem:[%s21768_s0 + $0x220] sm:$0xff] }
 0x339   :  { %15297 = vmatprep.mubr.msk.f32.mxu0 %vm166_vm1, %v21857_v35  ;;  %v19579_v35 = vld [vmem:[%s21768_s0 + $0x218] sm:$0xff]  ;;  %21861 = vst [vmem:[#allocation29_spill] sm:$0xff] %v19584_v27 }
 0x33a   :  { %21860 = vst [vmem:[#allocation28_spill] sm:$0xff] %v19579_v35 }
 0x33c   :  { %15298 = vmatmul.mubr.msk.f32.gmra.mrb[56].mxu0 %vm166_vm1, %v19565_v31  ;;  %v19598_v31 = vld [vmem:[%s21768_s0 + $0x230] sm:$0xff] }
 0x33d   :  { %15300 = vmatprep.mubr.msk.f32.mxu0 %vm166_vm1, %v19570_v23  ;;  %v19593_v23 = vld [vmem:[%s21768_s0 + $0x228] sm:$0xff]  ;;  %21863 = vst [vmem:[#allocation31_spill] sm:$0xff] %v19598_v31 }
 0x33e   :  { %21862 = vst [vmem:[#allocation30_spill] sm:$0xff] %v19593_v23 }
 0x340   :  { %15301 = vmatmul.mubr.msk.f32.gmra.mrb[58].mxu0 %vm166_vm1, %v19579_v35  ;;  %v13182_v35 = vld [vmem:[%s21768_s0 + $0x2c0] sm:$0xff] }
 0x341   :  { %15303 = vmatprep.mubr.msk.f32.mxu0 %vm166_vm1, %v19584_v27  ;;  %v19607_v27 = vld [vmem:[%s21768_s0 + $0x238] sm:$0xff] }
 0x342   :  { %21864 = vst [vmem:[#allocation32_spill] sm:$0xff] %v19607_v27 }
 0x344   :  { %15304 = vmatmul.mubr.msk.f32.gmra.mrb[60].mxu0 %vm166_vm1, %v19593_v23  ;;  %v13183_v23 = vld [vmem:[%s21768_s0 + $0x2c8] sm:$0xff] }
 0x345   :  { %15306 = vmatprep.mubr.msk.f32.mxu0 %vm166_vm1, %v19598_v31  ;;  %v13184_v31 = vld [vmem:[%s21768_s0 + $0x2d0] sm:$0xff] }
 0x348   :  { %15307 = vmatmul.mubr.msk.f32.gmra.mrb[62].mxu0 %vm166_vm1, %v19607_v27  ;;  %v13185_v27 = vld [vmem:[%s21768_s0 + $0x2d8] sm:$0xff] }
 0x349   :  { %15311 = vmatprep.mubr.msk.f32.mxu0 %vm166_vm1, %v13182_v35  ;;  %v13186_v35 = vld [vmem:[%s21768_s0 + $0x2e0] sm:$0xff] }
 0x34c   :  { %15312 = vmatmul.mubr.msk.f32.vlgmr.msra.gmra.mrb[0].mxu0 %vm166_vm1, %v13183_v23  ;;  %v13187_v23 = vld [vmem:[%s21768_s0 + $0x2e8] sm:$0xff] }
 0x34d   :  { %15408 = vmatpush3.msk.msra.mxu0 %vm359_vm0, %v18985_v53  ;;  %15314 = vmatprep.mubr.msk.f32.mxu0 %vm166_vm1, %v13184_v31  ;;  %v13188_v53 = vld [vmem:[%s21768_s0 + $0x2f0] sm:$0xff]  ;;  %v13189_v31 = vld [vmem:[%s21768_s0 + $0x2f8] sm:$0xff] }
 0x350   :  { %15315 = vmatmul.mubr.msk.f32.gmra.mrb[2].mxu0 %vm166_vm1, %v13185_v27  ;;  %v13190_v27 = vld [vmem:[%s21768_s0 + $0x300] sm:$0xff] }
 0x351   :  { %15317 = vmatprep.mubr.msk.f32.mxu0 %vm166_vm1, %v13186_v35  ;;  %v13191_v35 = vld [vmem:[%s21768_s0 + $0x308] sm:$0xff] }
 0x354   :  { %15318 = vmatmul.mubr.msk.f32.gmra.mrb[4].mxu0 %vm166_vm1, %v13187_v23  ;;  %v13192_v23 = vld [vmem:[%s21768_s0 + $0x310] sm:$0xff] }
 0x355   :  { %15320 = vmatprep.mubr.msk.f32.mxu0 %vm166_vm1, %v13188_v53  ;;  %v13193_v53 = vld [vmem:[%s21768_s0 + $0x318] sm:$0xff] }
 0x358   :  { %15321 = vmatmul.mubr.msk.f32.gmra.mrb[6].mxu0 %vm166_vm1, %v13189_v31  ;;  %v13194_v31 = vld [vmem:[%s21768_s0 + $0x320] sm:$0xff] }
 0x359   :  { %15323 = vmatprep.mubr.msk.f32.mxu0 %vm166_vm1, %v13190_v27  ;;  %v13195_v27 = vld [vmem:[%s21768_s0 + $0x328] sm:$0xff] }
 0x35c   :  { %15324 = vmatmul.mubr.msk.f32.gmra.mrb[8].mxu0 %vm166_vm1, %v13191_v35  ;;  %v13196_v35 = vld [vmem:[%s21768_s0 + $0x330] sm:$0xff] }
 0x35d   :  { %15326 = vmatprep.mubr.msk.f32.mxu0 %vm166_vm1, %v13192_v23  ;;  %v13197_v23 = vld [vmem:[%s21768_s0 + $0x338] sm:$0xff] }
 0x360   :  { %15327 = vmatmul.mubr.msk.f32.gmra.mrb[10].mxu0 %vm166_vm1, %v13193_v53  ;;  %v13198_v53 = vld [vmem:[%s21768_s0 + $0x340] sm:$0xff] }
 0x361   :  { %15329 = vmatprep.mubr.msk.f32.mxu0 %vm166_vm1, %v13194_v31  ;;  %v13199_v31 = vld [vmem:[%s21768_s0 + $0x348] sm:$0xff] }
 0x364   :  { %15330 = vmatmul.mubr.msk.f32.gmra.mrb[12].mxu0 %vm166_vm1, %v13195_v27  ;;  %v13200_v27 = vld [vmem:[%s21768_s0 + $0x350] sm:$0xff] }
 0x365   :  { %15332 = vmatprep.mubr.msk.f32.mxu0 %vm166_vm1, %v13196_v35  ;;  %v13201_v35 = vld [vmem:[%s21768_s0 + $0x358] sm:$0xff] }
 0x368   :  { %15333 = vmatmul.mubr.msk.f32.gmra.mrb[14].mxu0 %vm166_vm1, %v13197_v23  ;;  %v13202_v23 = vld [vmem:[%s21768_s0 + $0x360] sm:$0xff] }
 0x369   :  { %15335 = vmatprep.mubr.msk.f32.mxu0 %vm166_vm1, %v13198_v53  ;;  %v13203_v53 = vld [vmem:[%s21768_s0 + $0x368] sm:$0xff] }
 0x36c   :  { %15336 = vmatmul.mubr.msk.f32.gmra.mrb[16].mxu0 %vm166_vm1, %v13199_v31  ;;  %v13204_v31 = vld [vmem:[%s21768_s0 + $0x370] sm:$0xff] }
 0x36d   :  { %15338 = vmatprep.mubr.msk.f32.mxu0 %vm166_vm1, %v13200_v27  ;;  %v13205_v27 = vld [vmem:[%s21768_s0 + $0x378] sm:$0xff] }
 0x370   :  { %15339 = vmatmul.mubr.msk.f32.gmra.mrb[18].mxu0 %vm166_vm1, %v13201_v35  ;;  %v13206_v35 = vld [vmem:[%s21768_s0 + $0x380] sm:$0xff] }
 0x371   :  { %15341 = vmatprep.mubr.msk.f32.mxu0 %vm166_vm1, %v13202_v23  ;;  %v13207_v23 = vld [vmem:[%s21768_s0 + $0x388] sm:$0xff] }
 0x374   :  { %15342 = vmatmul.mubr.msk.f32.gmra.mrb[20].mxu0 %vm166_vm1, %v13203_v53  ;;  %v13208_v53 = vld [vmem:[%s21768_s0 + $0x390] sm:$0xff] }
 0x375   :  { %15344 = vmatprep.mubr.msk.f32.mxu0 %vm166_vm1, %v13204_v31  ;;  %v13209_v31 = vld [vmem:[%s21768_s0 + $0x398] sm:$0xff] }
 0x378   :  { %15345 = vmatmul.mubr.msk.f32.gmra.mrb[22].mxu0 %vm166_vm1, %v13205_v27 }
 0x379   :  { %15347 = vmatprep.mubr.msk.f32.mxu0 %vm166_vm1, %v13206_v35 }
 0x37c   :  { %15348 = vmatmul.mubr.msk.f32.gmra.mrb[24].mxu0 %vm166_vm1, %v13207_v23 }
 0x37d   :  { %15350 = vmatprep.mubr.msk.f32.mxu0 %vm166_vm1, %v13208_v53 }
 0x380   :  { %15351 = vmatmul.mubr.msk.f32.gmra.mrb[26].mxu0 %vm166_vm1, %v13209_v31 }
 0x381   :  { %15353 = vmatprep.mubr.msk.f32.mxu0 %vm166_vm1, %v19176_v16  ;;  %v13238_v16 = vld [vmem:[%s21768_s0 + $0x480] sm:$0xff] }
 0x384   :  { %15354 = vmatmul.mubr.msk.f32.gmra.mrb[28].mxu0 %vm166_vm1, %v19188_v18  ;;  %v13239_v18 = vld [vmem:[%s21768_s0 + $0x488] sm:$0xff] }
 0x385   :  { %15356 = vmatprep.mubr.msk.f32.mxu0 %vm166_vm1, %v19204_v20  ;;  %v13240_v20 = vld [vmem:[%s21768_s0 + $0x490] sm:$0xff] }
 0x388   :  { %15357 = vmatmul.mubr.msk.f32.gmra.mrb[30].mxu0 %vm166_vm1, %v19216_v22  ;;  %v13241_v22 = vld [vmem:[%s21768_s0 + $0x498] sm:$0xff] }
 0x389   :  { %15359 = vmatprep.mubr.msk.f32.mxu0 %vm166_vm1, %v19232_v24  ;;  %v13242_v24 = vld [vmem:[%s21768_s0 + $0x4a0] sm:$0xff] }
 0x38c   :  { %15360 = vmatmul.mubr.msk.f32.gmra.mrb[32].mxu0 %vm166_vm1, %v19244_v26  ;;  %v13244_v26 = vld [vmem:[%s21768_s0 + $0x4b0] sm:$0xff] }
 0x38d   :  { %15362 = vmatprep.mubr.msk.f32.mxu0 %vm166_vm1, %v19260_v28  ;;  %v13245_v28 = vld [vmem:[%s21768_s0 + $0x4b8] sm:$0xff] }
 0x390   :  { %15363 = vmatmul.mubr.msk.f32.gmra.mrb[34].mxu0 %vm166_vm1, %v19272_v30  ;;  %v6435_v30 = vld [vmem:[%s21769_s3] sm:$0xff] }
 0x391   :  { %15365 = vmatprep.mubr.msk.f32.mxu0 %vm166_vm1, %v19288_v32  ;;  %v6436_v32 = vld [vmem:[%s21769_s3 + $0x8] sm:$0xff] }
 0x394   :  { %15366 = vmatmul.mubr.msk.f32.gmra.mrb[36].mxu0 %vm166_vm1, %v19300_v34  ;;  %v16240_v34 = vpack.c.bf16 %v6436_v32, %v6435_v30 }
 0x395   :  { %15368 = vmatprep.mubr.msk.f32.mxu0 %vm166_vm1, %v19316_v36  ;;  %v6438_v36 = vld [vmem:[%s21769_s3 + $0x18] sm:$0xff] }
 0x398   :  { %15369 = vmatmul.mubr.msk.f32.gmra.mrb[38].mxu0 %vm166_vm1, %v19328_v38  ;;  %v21895_v38 = vld [vmem:[#allocation30_spill] sm:$0xff] }
 0x399   :  { %15371 = vmatprep.mubr.msk.f32.mxu0 %vm166_vm1, %v19344_v40  ;;  %v21897_v40 = vld [vmem:[#allocation32_spill] sm:$0xff] }
 0x39c   :  { %15372 = vmatmul.mubr.msk.f32.gmra.mrb[40].mxu0 %vm166_vm1, %v19356_v41  ;;  %v19972_v41 = vpop.f32.mrb[0].mxu1 }
 0x39d   :  { %15374 = vmatprep.mubr.msk.f32.mxu0 %vm166_vm1, %v19372_v43 }
 0x3a0   :  { %15375 = vmatmul.mubr.msk.f32.gmra.mrb[42].mxu0 %vm166_vm1, %v19384_v46 }
 0x3a1   :  { %15377 = vmatprep.mubr.msk.f32.mxu0 %vm166_vm1, %v19400_v48 }
 0x3a4   :  { %15378 = vmatmul.mubr.msk.f32.gmra.mrb[44].mxu0 %vm166_vm1, %v19412_v50 }
 0x3a5   :  { %15380 = vmatprep.mubr.msk.f32.mxu0 %vm166_vm1, %v19428_v47 }
 0x3a8   :  { %15381 = vmatmul.mubr.msk.f32.gmra.mrb[46].mxu0 %vm166_vm1, %v19440_v42  ;;  %v5653_v42 = vld [vmem:[%s21768_s0 + $0x240] sm:$0xff] }
 0x3a9   :  { %15383 = vmatprep.mubr.msk.f32.mxu0 %vm166_vm1, %v19456_v44 }
 0x3ac   :  { %15384 = vmatmul.mubr.msk.f32.gmra.mrb[48].mxu0 %vm166_vm1, %v19468_v37  ;;  %v21894_v37 = vld [vmem:[#allocation29_spill] sm:$0xff] }
 0x3ad   :  { %15386 = vmatprep.mubr.msk.f32.mxu0 %vm166_vm1, %v19484_v49 }
 0x3b0   :  { %15387 = vmatmul.mubr.msk.f32.gmra.mrb[50].mxu0 %vm166_vm1, %v19496_v33 }
 0x3b1   :  { %15389 = vmatprep.mubr.msk.f32.mxu0 %vm166_vm1, %v19512_v39  ;;  %v19974_v39 = vpop.f32.mrb[1].mxu1 }
 0x3b2   :  { %v19976_v43 = vpop.f32.mrb[2].mxu1 }
 0x3b3   :  { %v19978_v44 = vpop.f32.mrb[3].mxu1 }
 0x3b4   :  { %15390 = vmatmul.mubr.msk.f32.gmra.mrb[52].mxu0 %vm166_vm1, %v19524_v29  ;;  %v21818_v29 = vmov 0.0|0.0   ;;  %v19980_v46 = vpop.f32.mrb[4].mxu1 }
 0x3b5   :  { %15392 = vmatprep.mubr.msk.f32.mxu0 %vm166_vm1, %v19540_v45  ;;  %16239 = vmatprep.subr.bf16.mxu1 %v21818_v29  ;;  %v21896_v45 = vld [vmem:[#allocation31_spill] sm:$0xff]  ;;  %v19982_v47 = vpop.f32.mrb[5].mxu1 }
 0x3b6   :  { %16242 = vmatpush3.bf16.xpose.msk.msra.mxu1 %vm19824_vm3, %v16240_v34  ;;  %v19984_v48 = vpop.f32.mrb[6].mxu1 }
 0x3b7   :  { %16243 = vmatprep.subr.bf16.mxu1 %v21818_v29  ;;  %v19986_v49 = vpop.f32.mrb[7].mxu1 }
 0x3b8   :  { %15393 = vmatmul.mubr.msk.f32.gmra.mrb[54].mxu0 %vm166_vm1, %v19552_v25  ;;  %v13243_v25 = vld [vmem:[%s21768_s0 + $0x4a8] sm:$0xff]  ;;  %v19988_v50 = vpop.f32.mrb[8].mxu1 }
 0x3b9   :  { %15395 = vmatprep.mubr.msk.f32.mxu0 %vm166_vm1, %v13238_v16  ;;  %v19990_v27 = vpop.f32.mrb[9].mxu1 }
 0x3ba   :  { %v19992_v35 = vpop.f32.mrb[10].mxu1 }
 0x3bb   :  { %v19994_v23 = vpop.f32.mrb[11].mxu1 }
 0x3bc   :  { %15396 = vmatmul.mubr.msk.f32.gmra.mrb[56].mxu0 %vm166_vm1, %v13239_v18  ;;  %v19996_v53 = vpop.f32.mrb[12].mxu1 }
 0x3bd   :  { %15398 = vmatprep.mubr.msk.f32.mxu0 %vm166_vm1, %v13240_v20  ;;  %v19998_v31 = vpop.f32.mrb[13].mxu1 }
 0x3be   :  { %v20000_v16 = vpop.f32.mrb[14].mxu1 }
 0x3bf   :  { %v20002_v18 = vpop.f32.mrb[15].mxu1 }
 0x3c0   :  { %15399 = vmatmul.mubr.msk.f32.gmra.mrb[58].mxu0 %vm166_vm1, %v13241_v22  ;;  %v20004_v20 = vpop.f32.mrb[16].mxu1 }
 0x3c1   :  { %15401 = vmatprep.mubr.msk.f32.mxu0 %vm166_vm1, %v13242_v24  ;;  %v20006_v22 = vpop.f32.mrb[17].mxu1 }
 0x3c4   :  { %15402 = vmatmul.mubr.msk.f32.gmra.mrb[60].mxu0 %vm166_vm1, %v13243_v25 }
 0x3c5   :  { %15404 = vmatprep.mubr.msk.f32.mxu0 %vm166_vm1, %v13244_v26 }
 0x3c8   :  { %15405 = vmatmul.mubr.msk.f32.gmra.mrb[62].mxu0 %vm166_vm1, %v13245_v28 }
 0x3c9   :  { %15409 = vmatprep.mubr.msk.f32.mxu0 %vm166_vm1, %v18973_v51  ;;  %v6437_v51 = vld [vmem:[%s21769_s3 + $0x10] sm:$0xff] }
 0x3cc   :  { %15410 = vmatmul.mubr.msk.f32.vlgmr.msra.gmra.mrb[0].mxu0 %vm166_vm1, %v18978_v52  ;;  %v16244_v52 = vpack.c.bf16 %v6438_v36, %v6437_v51 }
 0x3cd   :  { %15412 = vmatprep.mubr.msk.f32.mxu0 %vm166_vm1, %v18994_v54  ;;  %v21867_v54 = vld [vmem:[#allocation3_spill] sm:$0xff] }
 0x3ce   :  { %16246 = vmatpush3.bf16.xpose.msk.msra.mxu1 %vm19824_vm3, %v16244_v52 }
 0x3cf   :  { %16247 = vmatprep.subr.bf16.mxu1 %v21818_v29 }
 0x3d0   :  { %15413 = vmatmul.mubr.msk.f32.gmra.mrb[2].mxu0 %vm166_vm1, %v18999_v55  ;;  %v21868_v55 = vld [vmem:[#allocation4_spill] sm:$0xff] }
 0x3d1   :  { %15415 = vmatprep.mubr.msk.f32.mxu0 %vm166_vm1, %v19010_v56  ;;  %v21869_v56 = vld [vmem:[#allocation5_spill] sm:$0xff] }
 0x3d4   :  { %15416 = vmatmul.mubr.msk.f32.gmra.mrb[4].mxu0 %vm166_vm1, %v19015_v57  ;;  %v21870_v57 = vld [vmem:[#allocation6_spill] sm:$0xff] }
 0x3d5   :  { %15418 = vmatprep.mubr.msk.f32.mxu0 %vm166_vm1, %v19024_v58  ;;  %v21871_v58 = vld [vmem:[#allocation7_spill] sm:$0xff] }
 0x3d8   :  { %15419 = vmatmul.mubr.msk.f32.gmra.mrb[6].mxu0 %vm166_vm1, %v19029_v59  ;;  %v21872_v59 = vld [vmem:[#allocation8_spill] sm:$0xff] }
 0x3d9   :  { %15421 = vmatprep.mubr.msk.f32.mxu0 %vm166_vm1, %v19038_v60  ;;  %v21873_v60 = vld [vmem:[#allocation9_spill] sm:$0xff] }
 0x3dc   :  { %15422 = vmatmul.mubr.msk.f32.gmra.mrb[8].mxu0 %vm166_vm1, %v19043_v61  ;;  %v21874_v61 = vld [vmem:[#allocation10_spill] sm:$0xff] }
 0x3dd   :  { %15424 = vmatprep.mubr.msk.f32.mxu0 %vm166_vm1, %v19052_v62  ;;  %v21875_v62 = vld [vmem:[#allocation11_spill] sm:$0xff] }
 0x3e0   :  { %15425 = vmatmul.mubr.msk.f32.gmra.mrb[10].mxu0 %vm166_vm1, %v19057_v63  ;;  %v21876_v63 = vld [vmem:[#allocation12_spill] sm:$0xff] }
 0x3e1   :  { %15427 = vmatprep.mubr.msk.f32.mxu0 %vm166_vm1, %v19066_v0  ;;  %v21877_v0 = vld [vmem:[#allocation13_spill] sm:$0xff] }
 0x3e4   :  { %15428 = vmatmul.mubr.msk.f32.gmra.mrb[12].mxu0 %vm166_vm1, %v19071_v1  ;;  %v21878_v1 = vld [vmem:[#allocation14_spill] sm:$0xff] }
 0x3e5   :  { %15430 = vmatprep.mubr.msk.f32.mxu0 %vm166_vm1, %v19080_v2  ;;  %v21879_v2 = vld [vmem:[#allocation15_spill] sm:$0xff] }
 0x3e8   :  { %15431 = vmatmul.mubr.msk.f32.gmra.mrb[14].mxu0 %vm166_vm1, %v19085_v3  ;;  %v21880_v3 = vld [vmem:[#allocation16_spill] sm:$0xff] }
 0x3e9   :  { %15433 = vmatprep.mubr.msk.f32.mxu0 %vm166_vm1, %v19094_v4  ;;  %v21881_v4 = vld [vmem:[#allocation17_spill] sm:$0xff] }
 0x3ec   :  { %15434 = vmatmul.mubr.msk.f32.gmra.mrb[16].mxu0 %vm166_vm1, %v19099_v5  ;;  %v21816_v5 = vmov 0.0  }
 0x3ed   :  { %15436 = vmatprep.mubr.msk.f32.mxu0 %vm166_vm1, %v19108_v6  ;;  %15513 = vmatprep.mubr.msk.f32.mxu1 %vm17291_vm4, %v21816_v5  ;;  %v21882_v6 = vld [vmem:[#allocation18_spill] sm:$0xff] }
 0x3f0   :  { %15437 = vmatmul.mubr.msk.f32.gmra.mrb[18].mxu0 %vm166_vm1, %v19113_v7  ;;  %v21883_v7 = vld [vmem:[#allocation19_spill] sm:$0xff] }
 0x3f1   :  { %15439 = vmatprep.mubr.msk.f32.mxu0 %vm166_vm1, %v19122_v8  ;;  %v21884_v8 = vld [vmem:[#allocation20_spill] sm:$0xff] }
 0x3f4   :  { %15440 = vmatmul.mubr.msk.f32.gmra.mrb[20].mxu0 %vm166_vm1, %v19127_v9  ;;  %v21885_v9 = vld [vmem:[#allocation21_spill] sm:$0xff] }
 0x3f5   :  { %15442 = vmatprep.mubr.msk.f32.mxu0 %vm166_vm1, %v19136_v10  ;;  %v21886_v10 = vld [vmem:[#allocation22_spill] sm:$0xff] }
 0x3f6   :  { %v20008_v24 = vpop.f32.mrb[18].mxu1 }
 0x3f7   :  { %v20010_v25 = vpop.f32.mrb[19].mxu1 }
 0x3f8   :  { %15443 = vmatmul.mubr.msk.f32.gmra.mrb[22].mxu0 %vm166_vm1, %v19141_v11  ;;  %v21887_v11 = vld [vmem:[#allocation23_spill] sm:$0xff] }
 0x3f9   :  { %15445 = vmatprep.mubr.msk.f32.mxu0 %vm166_vm1, %v19150_v12  ;;  %v21888_v12 = vld [vmem:[#allocation24_spill] sm:$0xff] }
 0x3fa   :  { %v20012_v26 = vpop.f32.mrb[20].mxu1 }
 0x3fb   :  { %v20014_v28 = vpop.f32.mrb[21].mxu1 }
 0x3fc   :  { %15446 = vmatmul.mubr.msk.f32.gmra.mrb[24].mxu0 %vm166_vm1, %v19155_v13  ;;  %v21889_v13 = vld [vmem:[#allocation25_spill] sm:$0xff] }
 0x3fd   :  { %15448 = vmatprep.mubr.msk.f32.mxu0 %vm166_vm1, %v19164_v14  ;;  %v21890_v14 = vld [vmem:[#allocation26_spill] sm:$0xff] }
 0x3fe   :  { %v20016_v30 = vpop.f32.mrb[22].mxu1 }
 0x3ff   :  { %v20018_v32 = vpop.f32.mrb[23].mxu1 }
 0x400   :  { %15449 = vmatmul.mubr.msk.f32.gmra.mrb[26].mxu0 %vm166_vm1, %v19169_v15  ;;  %v5645_v15 = vld [vmem:[%s21768_s0 + $0x200] sm:$0xff] }
 0x401   :  { %15451 = vmatprep.mubr.msk.f32.mxu0 %vm166_vm1, %v19183_v17  ;;  %v21891_v17 = vld [vmem:[#allocation2_spill] sm:$0xff] }
 0x402   :  { %v20020_v34 = vpop.f32.mrb[24].mxu1 }
 0x403   :  { %v20022_v51 = vpop.f32.mrb[25].mxu1 }
 0x404   :  { %15452 = vmatmul.mubr.msk.f32.gmra.mrb[28].mxu0 %vm166_vm1, %v19195_v19  ;;  %v21892_v19 = vld [vmem:[#allocation27_spill] sm:$0xff] }
 0x405   :  { %15454 = vmatprep.mubr.msk.f32.mxu0 %vm166_vm1, %v19211_v21  ;;  %v21893_v21 = vld [vmem:[#allocation28_spill] sm:$0xff] }
 0x406   :  { %v20024_v36 = vpop.f32.mrb[26].mxu1 }
 0x407   :  { %v20026_v52 = vpop.f32.mrb[27].mxu1 }
 0x408   :  { %15455 = vmatmul.mubr.msk.f32.gmra.mrb[30].mxu0 %vm166_vm1, %v21867_v54  ;;  %v20031_v54 = vld [vmem:[%s21770_s2] ss:$0 sm:$0xff] }
 0x409   :  { %15457 = vmatprep.mubr.msk.f32.mxu0 %vm166_vm1, %v21868_v55 }
 0x40c   :  { %15458 = vmatmul.mubr.msk.f32.gmra.mrb[32].mxu0 %vm166_vm1, %v21869_v56  ;;  %v6439_v56 = vld [vmem:[%s21769_s3 + $0x20] sm:$0xff] }
 0x40d   :  { %15460 = vmatprep.mubr.msk.f32.mxu0 %vm166_vm1, %v21870_v57  ;;  %v6440_v57 = vld [vmem:[%s21769_s3 + $0x28] sm:$0xff] }
 0x410   :  { %15461 = vmatmul.mubr.msk.f32.gmra.mrb[34].mxu0 %vm166_vm1, %v21871_v58 }
 0x411   :  { %15463 = vmatprep.mubr.msk.f32.mxu0 %vm166_vm1, %v21872_v59 }
 0x414   :  { %15464 = vmatmul.mubr.msk.f32.gmra.mrb[36].mxu0 %vm166_vm1, %v21873_v60  ;;  %v16248_v60 = vpack.c.bf16 %v6440_v57, %v6439_v56  ;;  %v6447_v57 = vld [vmem:[%s21769_s3 + $0x60] sm:$0xff] }
 0x415   :  { %15466 = vmatprep.mubr.msk.f32.mxu0 %vm166_vm1, %v21874_v61 }
 0x418   :  { %15467 = vmatmul.mubr.msk.f32.gmra.mrb[38].mxu0 %vm166_vm1, %v21875_v62 }
 0x419   :  { %15469 = vmatprep.mubr.msk.f32.mxu0 %vm166_vm1, %v21876_v63 }
 0x41c   :  { %15470 = vmatmul.mubr.msk.f32.gmra.mrb[40].mxu0 %vm166_vm1, %v21877_v0 }
 0x41d   :  { %15472 = vmatprep.mubr.msk.f32.mxu0 %vm166_vm1, %v21878_v1  ;;  %v6441_v1 = vld [vmem:[%s21769_s3 + $0x30] sm:$0xff] }
 0x420   :  { %15473 = vmatmul.mubr.msk.f32.gmra.mrb[42].mxu0 %vm166_vm1, %v21879_v2  ;;  %v6442_v2 = vld [vmem:[%s21769_s3 + $0x38] sm:$0xff] }
 0x421   :  { %15475 = vmatprep.mubr.msk.f32.mxu0 %vm166_vm1, %v21880_v3 }
 0x424   :  { %15476 = vmatmul.mubr.msk.f32.gmra.mrb[44].mxu0 %vm166_vm1, %v21881_v4  ;;  %v16252_v4 = vpack.c.bf16 %v6442_v2, %v6441_v1 }
 0x425   :  { %15478 = vmatprep.mubr.msk.f32.mxu0 %vm166_vm1, %v21882_v6 }
 0x428   :  { %15479 = vmatmul.mubr.msk.f32.gmra.mrb[46].mxu0 %vm166_vm1, %v21883_v7 }
 0x429   :  { %15481 = vmatprep.mubr.msk.f32.mxu0 %vm166_vm1, %v21884_v8 }
 0x42c   :  { %15482 = vmatmul.mubr.msk.f32.gmra.mrb[48].mxu0 %vm166_vm1, %v21885_v9 }
 0x42d   :  { %15484 = vmatprep.mubr.msk.f32.mxu0 %vm166_vm1, %v21886_v10  ;;  %v6443_v10 = vld [vmem:[%s21769_s3 + $0x40] sm:$0xff] }
 0x430   :  { %15485 = vmatmul.mubr.msk.f32.gmra.mrb[50].mxu0 %vm166_vm1, %v21887_v11  ;;  %v6444_v11 = vld [vmem:[%s21769_s3 + $0x48] sm:$0xff] }
 0x431   :  { %15487 = vmatprep.mubr.msk.f32.mxu0 %vm166_vm1, %v21888_v12 }
 0x434   :  { %15488 = vmatmul.mubr.msk.f32.gmra.mrb[52].mxu0 %vm166_vm1, %v21889_v13  ;;  %v16256_v13 = vpack.c.bf16 %v6444_v11, %v6443_v10 }
 0x435   :  { %15490 = vmatprep.mubr.msk.f32.mxu0 %vm166_vm1, %v21890_v14 }
 0x438   :  { %15491 = vmatmul.mubr.msk.f32.gmra.mrb[54].mxu0 %vm166_vm1, %v5645_v15 }
 0x439   :  { %15493 = vmatprep.mubr.msk.f32.mxu0 %vm166_vm1, %v21891_v17 }
 0x43c   :  { %15494 = vmatmul.mubr.msk.f32.gmra.mrb[56].mxu0 %vm166_vm1, %v21892_v19 }
 0x43d   :  { %15496 = vmatprep.mubr.msk.f32.mxu0 %vm166_vm1, %v21893_v21  ;;  %v6445_v21 = vld [vmem:[%s21769_s3 + $0x50] sm:$0xff] }
 0x440   :  { %15497 = vmatmul.mubr.msk.f32.gmra.mrb[58].mxu0 %vm166_vm1, %v21894_v37  ;;  %v6446_v37 = vld [vmem:[%s21769_s3 + $0x58] sm:$0xff] }
 0x441   :  { %15499 = vmatprep.mubr.msk.f32.mxu0 %vm166_vm1, %v21895_v38 }
 0x444   :  { %15500 = vmatmul.mubr.msk.f32.gmra.mrb[60].mxu0 %vm166_vm1, %v21896_v45  ;;  %v16260_v45 = vpack.c.bf16 %v6446_v37, %v6445_v21 }
 0x445   :  { %15502 = vmatprep.mubr.msk.f32.mxu0 %vm166_vm1, %v21897_v40 }
 0x448   :  { %15503 = vmatmul.mubr.msk.f32.gmra.mrb[62].mxu0 %vm166_vm1, %v5653_v42 }
 0x49f   :  { %v15411_v55 = vpop.f32.mrb[0].mxu0 }
 0x4a0   :  { %v5917_v58 = vpop.f32.mrb[1].mxu0  ;;  %v6308_v8 = vadd.f32 %v15411_v55, %v20031_v54 }
 0x4a1   :  { %v6307_v59 = vadd.f32 %v20031_v54, %v5917_v58  ;;  %v6448_v58 = vld [vmem:[%s21769_s3 + $0x68] sm:$0xff] }
 0x4a2   :  { %v6372_v14 = vmax.f32 %v6308_v8, 0.0  ;;  %v6450_v8 = vld [vmem:[%s21769_s3 + $0x78] sm:$0xff] }
 0x4a3   :  { %v6371_v61 = vmax.f32 %v6307_v59, 0.0  ;;  %v15414_v62 = vpop.f32.mrb[2].mxu0 }
 0x4a4   :  { %v5927_v63 = vpop.f32.mrb[3].mxu0  ;;  %v6310_v21 = vadd.f32 %v15414_v62, %v20031_v54 }
 0x4a5   :  { %15514 = vmatmul.mubr.msk.f32.vlgmr.msra.gmra.mrb[28].mxu1 %vm6691_vm2, %v6371_v61  ;;  %v6309_v55 = vadd.f32 %v20031_v54, %v5927_v63 }
 0x4a6   :  { %16250 = vmatpush3.bf16.xpose.msk.msra.mxu1 %vm19824_vm3, %v16248_v60  ;;  %15524 = vmatprep.mubr.msk.f32.mxu1 %vm17291_vm4, %v21816_v5  ;;  %v16264_v60 = vpack.c.bf16 %v6448_v58, %v6447_v57 }
 0x4a7   :  { %v20045_v0 = vpop.f32.mrb[4].mxu0  ;;  %16251 = vmatprep.subr.bf16.mxu1 %v21818_v29  ;;  %v6373_v61 = vmax.f32 %v6309_v55, 0.0  ;;  %v6452_v55 = vld [vmem:[%s21769_s3 + $0x88] sm:$0xff] }
 0x4a8   :  { %v20054_v3 = vpop.f32.mrb[5].mxu0 }
 0x4ab   :  { %v20056_v6 = vpop.f32.mrb[6].mxu0 }
 0x4ac   :  { %v20058_v7 = vpop.f32.mrb[7].mxu0 }
 0x4ae   :  { %16254 = vmatpush3.bf16.xpose.msk.msra.mxu1 %vm19824_vm3, %v16252_v4  ;;  %v6449_v4 = vld [vmem:[%s21769_s3 + $0x70] sm:$0xff] }
 0x4af   :  { %v20063_v9 = vpop.f32.mrb[8].mxu0  ;;  %16255 = vmatprep.subr.bf16.mxu1 %v21818_v29  ;;  %v16268_v11 = vpack.c.bf16 %v6450_v8, %v6449_v4  ;;  %v6453_v8 = vld [vmem:[%s21769_s3 + $0x90] sm:$0xff] }
 0x4b0   :  { %v20072_v12 = vpop.f32.mrb[9].mxu0 }
 0x4b3   :  { %v20074_v15 = vpop.f32.mrb[10].mxu0 }
 0x4b4   :  { %v20076_v17 = vpop.f32.mrb[11].mxu0 }
 0x4b5   :  { %15525 = vmatmul.mubr.msk.f32.vlgmr.msra.gmra.mrb[30].mxu1 %vm6691_vm2, %v6372_v14 }
 0x4b6   :  { %16258 = vmatpush3.bf16.xpose.msk.msra.mxu1 %vm19824_vm3, %v16256_v13  ;;  %15535 = vmatprep.mubr.msk.f32.mxu1 %vm17291_vm4, %v21816_v5 }
 0x4b7   :  { %v20083_v19 = vpop.f32.mrb[12].mxu0  ;;  %16259 = vmatprep.subr.bf16.mxu1 %v21818_v29 }
 0x4b8   :  { %v20092_v38 = vpop.f32.mrb[13].mxu0 }
 0x4bb   :  { %v20094_v40 = vpop.f32.mrb[14].mxu0 }
 0x4bc   :  { %v20096_v42 = vpop.f32.mrb[15].mxu0 }
 0x4be   :  { %16262 = vmatpush3.bf16.xpose.msk.msra.mxu1 %vm19824_vm3, %v16260_v45  ;;  %v6451_v45 = vld [vmem:[%s21769_s3 + $0x80] sm:$0xff] }
 0x4bf   :  { %v20101_v56 = vpop.f32.mrb[16].mxu0  ;;  %16263 = vmatprep.subr.bf16.mxu1 %v21818_v29  ;;  %v16272_v58 = vpack.c.bf16 %v6452_v55, %v6451_v45 }
 0x4c0   :  { %v20110_v59 = vpop.f32.mrb[17].mxu0 }
 0x4c3   :  { %v20112_v1 = vpop.f32.mrb[18].mxu0 }
 0x4c4   :  { %v20114_v2 = vpop.f32.mrb[19].mxu0 }
 0x4c5   :  { %15536 = vmatmul.mubr.msk.f32.vlgmr.msra.gmra.mrb[32].mxu1 %vm6691_vm2, %v6373_v61 }
 0x4c6   :  { %16266 = vmatpush3.bf16.xpose.msk.msra.mxu1 %vm19824_vm3, %v16264_v60  ;;  %15546 = vmatprep.mubr.msk.f32.mxu1 %vm17291_vm4, %v21816_v5  ;;  %v6374_v60 = vmax.f32 %v6310_v21, 0.0 }
 0x4c7   :  { %v20121_v63 = vpop.f32.mrb[20].mxu0  ;;  %16267 = vmatprep.subr.bf16.mxu1 %v21818_v29 }
 0x4c8   :  { %v20130_v10 = vpop.f32.mrb[21].mxu0 }
 0x4cb   :  { %v20132_v13 = vpop.f32.mrb[22].mxu0 }
 0x4cc   :  { %v20134_v14 = vpop.f32.mrb[23].mxu0 }
 0x4ce   :  { %16270 = vmatpush3.bf16.xpose.msk.msra.mxu1 %vm19824_vm3, %v16268_v11  ;;  %v6454_v11 = vld [vmem:[%s21769_s3 + $0x98] sm:$0xff] }
 0x4cf   :  { %v20139_v37 = vpop.f32.mrb[24].mxu0  ;;  %16271 = vmatprep.subr.bf16.mxu1 %v21818_v29  ;;  %v16276_v45 = vpack.c.bf16 %v6454_v11, %v6453_v8  ;;  %v6456_v8 = vld [vmem:[%s21769_s3 + $0xa8] sm:$0xff] }
 0x4d0   :  { %v20148_v57 = vpop.f32.mrb[25].mxu0 }
 0x4d3   :  { %v20150_v61 = vpop.f32.mrb[26].mxu0 }
 0x4d4   :  { %21898 = vst [vmem:[#allocation3_spill] sm:$0xff] %v20150_v61  ;;  %v20152_v4 = vpop.f32.mrb[27].mxu0 }
 0x4d5   :  { %21899 = vst [vmem:[#allocation4_spill] sm:$0xff] %v20152_v4  ;;  %15547 = vmatmul.mubr.msk.f32.vlgmr.msra.gmra.mrb[34].mxu1 %vm6691_vm2, %v6374_v60  ;;  %v6311_v60 = vadd.f32 %v20031_v54, %v20054_v3  ;;  %v21908_v3 = vmov 0.0  }
 0x4d6   :  { %16274 = vmatpush3.bf16.xpose.msk.msra.mxu1 %vm19824_vm3, %v16272_v58  ;;  %15557 = vmatprep.mubr.msk.f32.mxu1 %vm17291_vm4, %v21816_v5 }
 0x4d7   :  { %v20159_v62 = vpop.f32.mrb[28].mxu0  ;;  %16275 = vmatprep.subr.bf16.mxu1 %v21818_v29 }
 0x4d8   :  { %21900 = vst [vmem:[#allocation5_spill] sm:$0xff] %v20159_v62  ;;  %v20168_v21 = vpop.f32.mrb[29].mxu0  ;;  %v6455_v62 = vld [vmem:[%s21769_s3 + $0xa0] sm:$0xff] }
 0x4d9   :  { %21901 = vst [vmem:[#allocation6_spill] sm:$0xff] %v20168_v21 }
 0x4db   :  { %v20170_v55 = vpop.f32.mrb[30].mxu0 }
 0x4dc   :  { %21902 = vst [vmem:[#allocation7_spill] sm:$0xff] %v20170_v55  ;;  %v20172_v58 = vpop.f32.mrb[31].mxu0  ;;  %v16280_v55 = vpack.c.bf16 %v6456_v8, %v6455_v62  ;;  %v6457_v62 = vld [vmem:[%s21769_s3 + $0xb0] sm:$0xff] }
 0x4dd   :  { %21903 = vst [vmem:[#allocation8_spill] sm:$0xff] %v20172_v58  ;;  %v6375_v58 = vmax.f32 %v6311_v60, 0.0  ;;  %v6458_v60 = vld [vmem:[%s21769_s3 + $0xb8] sm:$0xff] }
 0x4de   :  { %16278 = vmatpush3.bf16.xpose.msk.msra.mxu1 %vm19824_vm3, %v16276_v45 }
 0x4df   :  { %v20178_v5 = vpop.f32.mrb[32].mxu0  ;;  %16279 = vmatprep.subr.bf16.mxu1 %v21818_v29 }
 0x4e0   :  { %21904 = vst [vmem:[#allocation9_spill] sm:$0xff] %v20178_v5  ;;  %v20187_v11 = vpop.f32.mrb[33].mxu0  ;;  %v21909_v5 = vmov 0.0|0.0  }
 0x4e1   :  { %21905 = vst [vmem:[#allocation10_spill] sm:$0xff] %v20187_v11 }
 0x4e3   :  { %v20189_v45 = vpop.f32.mrb[34].mxu0 }
 0x4e4   :  { %21906 = vst [vmem:[#allocation11_spill] sm:$0xff] %v20189_v45  ;;  %v20191_v21 = vpop.f32.mrb[35].mxu0  ;;  %v16284_v45 = vpack.c.bf16 %v6458_v60, %v6457_v62 }
 0x4e5   :  { %21907 = vst [vmem:[#allocation12_spill] sm:$0xff] %v20191_v21  ;;  %15558 = vmatmul.mubr.msk.f32.vlgmr.msra.gmra.mrb[36].mxu1 %vm6691_vm2, %v6375_v58 }
 0x4e6   :  { %16282 = vmatpush3.bf16.xpose.msk.msra.mxu1 %vm19824_vm3, %v16280_v55  ;;  %15568 = vmatprep.mubr.msk.f32.mxu1 %vm17291_vm4, %v21908_v3 }
 0x4e7   :  { %v15465_v29 = vpop.f32.mrb[36].mxu0  ;;  %16283 = vmatprep.subr.bf16.mxu1 %v21909_v5 }
 0x4e8   :  { %v20206_v8 = vadd.f32 %v15465_v29, %v19972_v41  ;;  %v6097_v58 = vpop.f32.mrb[37].mxu0  ;;  %v6312_v29 = vadd.f32 %v20045_v0, %v20031_v54 }
 0x4e9   :  { %v20209_v55 = vadd.f32 %v6097_v58, %v19974_v39  ;;  %v6459_v39 = vld [vmem:[%s21769_s3 + $0xc0] sm:$0xff] }
 0x4ea   :  { %v6376_v0 = vmax.f32 %v6312_v29, 0.0 }
 0x4eb   :  { %v15468_v21 = vpop.f32.mrb[38].mxu0 }
 0x4ec   :  { %v20212_v11 = vadd.f32 %v15468_v21, %v19976_v43  ;;  %v6107_v61 = vpop.f32.mrb[39].mxu0  ;;  %v6460_v43 = vld [vmem:[%s21769_s3 + $0xc8] sm:$0xff] }
 0x4ed   :  { %v20215_v4 = vadd.f32 %v6107_v61, %v19978_v44 }
 0x4ee   :  { %21910 = vst [vmem:[#allocation13_spill] sm:$0xff] %v20212_v11  ;;  %16286 = vmatpush3.bf16.xpose.msk.msra.mxu1 %vm19824_vm3, %v16284_v45  ;;  %v16288_v45 = vpack.c.bf16 %v6460_v43, %v6459_v39 }
 0x4ef   :  { %v15471_v41 = vpop.f32.mrb[40].mxu0  ;;  %16287 = vmatprep.subr.bf16.mxu1 %v21909_v5 }
 0x4f0   :  { %v20229_v44 = vadd.f32 %v15471_v41, %v19980_v46  ;;  %v6117_v61 = vpop.f32.mrb[41].mxu0 }
 0x4f1   :  { %v20232_v21 = vadd.f32 %v6117_v61, %v19982_v47  ;;  %v6461_v47 = vld [vmem:[%s21769_s3 + $0xd0] sm:$0xff] }
 0x4f3   :  { %v15474_v62 = vpop.f32.mrb[42].mxu0 }
 0x4f4   :  { %v20235_v60 = vadd.f32 %v15474_v62, %v19984_v48  ;;  %v6127_v58 = vpop.f32.mrb[43].mxu0  ;;  %v6462_v48 = vld [vmem:[%s21769_s3 + $0xd8] sm:$0xff] }
 0x4f5   :  { %v20238_v11 = vadd.f32 %v6127_v58, %v19986_v49  ;;  %15569 = vmatmul.mubr.msk.f32.vlgmr.msra.gmra.mrb[38].mxu1 %vm6691_vm2, %v6376_v0  ;;  %v16292_v39 = vpack.c.bf16 %v6462_v48, %v6461_v47 }
 0x4f6   :  { %16290 = vmatpush3.bf16.xpose.msk.msra.mxu1 %vm19824_vm3, %v16288_v45  ;;  %15579 = vmatprep.mubr.msk.f32.mxu1 %vm17291_vm4, %v21908_v3 }
 0x4f7   :  { %v15477_v46 = vpop.f32.mrb[44].mxu0  ;;  %16291 = vmatprep.subr.bf16.mxu1 %v21909_v5 }
 0x4f8   :  { %v20253_v49 = vadd.f32 %v15477_v46, %v19988_v50  ;;  %v6137_v29 = vpop.f32.mrb[45].mxu0  ;;  %v6313_v50 = vadd.f32 %v20031_v54, %v20058_v7 }
 0x4f9   :  { %v20256_v41 = vadd.f32 %v6137_v29, %v19990_v27  ;;  %v6463_v27 = vld [vmem:[%s21769_s3 + $0xe0] sm:$0xff] }
 0x4fa   :  { %v6377_v7 = vmax.f32 %v6313_v50, 0.0 }
 0x4fb   :  { %v15480_v43 = vpop.f32.mrb[46].mxu0 }
 0x4fc   :  { %v20259_v61 = vadd.f32 %v15480_v43, %v19992_v35  ;;  %v6147_v45 = vpop.f32.mrb[47].mxu0  ;;  %v6464_v35 = vld [vmem:[%s21769_s3 + $0xe8] sm:$0xff] }
 0x4fd   :  { %v20262_v0 = vadd.f32 %v6147_v45, %v19994_v23  ;;  %v16296_v47 = vpack.c.bf16 %v6464_v35, %v6463_v27 }
 0x4fe   :  { %16294 = vmatpush3.bf16.xpose.msk.msra.mxu1 %vm19824_vm3, %v16292_v39 }
 0x4ff   :  { %v15483_v62 = vpop.f32.mrb[48].mxu0  ;;  %16295 = vmatprep.subr.bf16.mxu1 %v21909_v5 }
 0x500   :  { %v20276_v23 = vadd.f32 %v15483_v62, %v19996_v53  ;;  %v6157_v58 = vpop.f32.mrb[49].mxu0 }
 0x501   :  { %v20279_v46 = vadd.f32 %v6157_v58, %v19998_v31  ;;  %v6465_v31 = vld [vmem:[%s21769_s3 + $0xf0] sm:$0xff] }
 0x503   :  { %v15486_v48 = vpop.f32.mrb[50].mxu0 }
 0x504   :  { %v20282_v29 = vadd.f32 %v15486_v48, %v20000_v16  ;;  %v6167_v39 = vpop.f32.mrb[51].mxu0  ;;  %v6466_v16 = vld [vmem:[%s21769_s3 + $0xf8] sm:$0xff] }
 0x505   :  { %v20285_v43 = vadd.f32 %v6167_v39, %v20002_v18  ;;  %15580 = vmatmul.mubr.msk.f32.vlgmr.msra.gmra.mrb[40].mxu1 %vm6691_vm2, %v6377_v7  ;;  %v16300_v62 = vpack.c.bf16 %v6466_v16, %v6465_v31 }
 0x506   :  { %16298 = vmatpush3.bf16.xpose.msk.msra.mxu1 %vm19824_vm3, %v16296_v47  ;;  %15590 = vmatprep.mubr.msk.f32.mxu1 %vm17291_vm4, %v21908_v3 }
 0x507   :  { %v15489_v53 = vpop.f32.mrb[52].mxu0  ;;  %16299 = vmatprep.subr.bf16.mxu1 %v21909_v5 }
 0x508   :  { %v20300_v18 = vadd.f32 %v15489_v53, %v20004_v20  ;;  %v6177_v45 = vpop.f32.mrb[53].mxu0  ;;  %v6314_v20 = vadd.f32 %v20056_v6, %v20031_v54 }
 0x509   :  { %v20303_v50 = vadd.f32 %v6177_v45, %v20006_v22  ;;  %v6467_v22 = vld [vmem:[%s21769_s3 + $0x100] sm:$0xff] }
 0x50a   :  { %v6378_v6 = vmax.f32 %v6314_v20, 0.0 }
 0x50b   :  { %v15492_v27 = vpop.f32.mrb[54].mxu0 }
 0x50c   :  { %v20306_v35 = vadd.f32 %v15492_v27, %v20008_v24  ;;  %v6187_v58 = vpop.f32.mrb[55].mxu0  ;;  %v6468_v24 = vld [vmem:[%s21769_s3 + $0x108] sm:$0xff] }
 0x50d   :  { %v20309_v47 = vadd.f32 %v6187_v58, %v20010_v25  ;;  %v16304_v53 = vpack.c.bf16 %v6468_v24, %v6467_v22 }
 0x50e   :  { %16302 = vmatpush3.bf16.xpose.msk.msra.mxu1 %vm19824_vm3, %v16300_v62 }
 0x50f   :  { %v15495_v7 = vpop.f32.mrb[56].mxu0  ;;  %16303 = vmatprep.subr.bf16.mxu1 %v21909_v5 }
 0x510   :  { %v20323_v25 = vadd.f32 %v15495_v7, %v20012_v26  ;;  %v6197_v48 = vpop.f32.mrb[57].mxu0 }
 0x511   :  { %v20326_v39 = vadd.f32 %v6197_v48, %v20014_v28  ;;  %v6469_v28 = vld [vmem:[%s21769_s3 + $0x110] sm:$0xff] }
 0x513   :  { %v15498_v31 = vpop.f32.mrb[58].mxu0 }
 0x514   :  { %v20329_v16 = vadd.f32 %v15498_v31, %v20016_v30  ;;  %v6207_v45 = vpop.f32.mrb[59].mxu0  ;;  %v6470_v30 = vld [vmem:[%s21769_s3 + $0x118] sm:$0xff] }
 0x515   :  { %v20332_v62 = vadd.f32 %v6207_v45, %v20018_v32  ;;  %15591 = vmatmul.mubr.msk.f32.vlgmr.msra.gmra.mrb[42].mxu1 %vm6691_vm2, %v6378_v6  ;;  %v16308_v20 = vpack.c.bf16 %v6470_v30, %v6469_v28  ;;  %v6316_v45 = vadd.f32 %v20063_v9, %v20031_v54  ;;  %v6476_v28 = vld [vmem:[%s21769_s3 + $0x148] sm:$0xff]  ;;  %v6477_v9 = vld [vmem:[%s21769_s3 + $0x150] sm:$0xff] }
 0x516   :  { %16306 = vmatpush3.bf16.xpose.msk.msra.mxu1 %vm19824_vm3, %v16304_v53  ;;  %15601 = vmatprep.mubr.msk.f32.mxu1 %vm17291_vm4, %v21908_v3 }
 0x517   :  { %v15501_v26 = vpop.f32.mrb[60].mxu0  ;;  %16307 = vmatprep.subr.bf16.mxu1 %v21909_v5 }
 0x518   :  { %v20347_v32 = vadd.f32 %v15501_v26, %v20020_v34  ;;  %v6217_v27 = vpop.f32.mrb[61].mxu0  ;;  %v6315_v34 = vadd.f32 %v20031_v54, %v20072_v12  ;;  %v6474_v12 = vld [vmem:[%s21769_s3 + $0x138] sm:$0xff]  ;;  %v6475_v26 = vld [vmem:[%s21769_s3 + $0x140] sm:$0xff] }
 0x519   :  { %v20350_v58 = vadd.f32 %v6217_v27, %v20022_v51  ;;  %v6471_v51 = vld [vmem:[%s21769_s3 + $0x120] sm:$0xff]  ;;  %v16320_v30 = vpack.c.bf16 %v6476_v28, %v6475_v26  ;;  %v6380_v27 = vmax.f32 %v6316_v45, 0.0  ;;  %v6484_v45 = vld [vmem:[%s21769_s3 + $0x188] sm:$0xff] }
 0x51a   :  { %v6379_v6 = vmax.f32 %v6315_v34, 0.0  ;;  %v6479_v34 = vld [vmem:[%s21769_s3 + $0x160] sm:$0xff] }
 0x51b   :  { %v15504_v7 = vpop.f32.mrb[62].mxu0 }
 0x51c   :  { %v20353_v22 = vadd.f32 %v15504_v7, %v20024_v36  ;;  %v6227_v24 = vpop.f32.mrb[63].mxu0  ;;  %v6472_v36 = vld [vmem:[%s21769_s3 + $0x128] sm:$0xff] }
 0x51d   :  { %v20356_v48 = vadd.f32 %v6227_v24, %v20026_v52  ;;  %v16312_v53 = vpack.c.bf16 %v6472_v36, %v6471_v51  ;;  %v6473_v52 = vld [vmem:[%s21769_s3 + $0x130] sm:$0xff]  ;;  %v6317_v24 = vadd.f32 %v20031_v54, %v20076_v17  ;;  %v6480_v51 = vld [vmem:[%s21769_s3 + $0x168] sm:$0xff] }
 0x51e   :  { %16310 = vmatpush3.bf16.xpose.msk.msra.mxu1 %vm19824_vm3, %v16308_v20  ;;  %v16316_v31 = vpack.c.bf16 %v6474_v12, %v6473_v52  ;;  %v6478_v20 = vld [vmem:[%s21769_s3 + $0x158] sm:$0xff]  ;;  %v16328_v36 = vpack.c.bf16 %v6480_v51, %v6479_v34  ;;  %v6481_v17 = vld [vmem:[%s21769_s3 + $0x170] sm:$0xff]  ;;  %v6318_v12 = vadd.f32 %v20074_v15, %v20031_v54 }
 0x51f   :  { %16311 = vmatprep.subr.bf16.mxu1 %v21909_v5  ;;  %v16324_v7 = vpack.c.bf16 %v6478_v20, %v6477_v9  ;;  %v6485_v15 = vld [vmem:[%s21769_s3 + $0x190] sm:$0xff]  ;;  %v6319_v9 = vadd.f32 %v20031_v54, %v20092_v38  ;;  %v6487_v20 = vld [vmem:[%s21769_s3 + $0x1a0] sm:$0xff]  ;;  %v6490_v51 = vld [vmem:[%s21769_s3 + $0x1b8] sm:$0xff] }
 0x520   :  { %v6382_v28 = vmax.f32 %v6318_v12, 0.0  ;;  %v6489_v38 = vld [vmem:[%s21769_s3 + $0x1b0] sm:$0xff] }
 0x521   :  { %v6383_v34 = vmax.f32 %v6319_v9, 0.0 }
 0x525   :  { %15602 = vmatmul.mubr.msk.f32.vlgmr.msra.gmra.mrb[44].mxu1 %vm6691_vm2, %v6379_v6  ;;  %v6482_v6 = vld [vmem:[%s21769_s3 + $0x178] sm:$0xff] }
 0x526   :  { %16314 = vmatpush3.bf16.xpose.msk.msra.mxu1 %vm19824_vm3, %v16312_v53  ;;  %15612 = vmatprep.mubr.msk.f32.mxu1 %vm17291_vm4, %v21908_v3  ;;  %v6381_v53 = vmax.f32 %v6317_v24, 0.0  ;;  %v16332_v52 = vpack.c.bf16 %v6482_v6, %v6481_v17  ;;  %v6491_v17 = vld [vmem:[%s21769_s3 + $0x1c0] sm:$0xff]  ;;  %v6492_v6 = vld [vmem:[%s21769_s3 + $0x1c8] sm:$0xff] }
 0x527   :  { %16315 = vmatprep.subr.bf16.mxu1 %v21909_v5 }
 0x52e   :  { %16318 = vmatpush3.bf16.xpose.msk.msra.mxu1 %vm19824_vm3, %v16316_v31  ;;  %v6483_v31 = vld [vmem:[%s21769_s3 + $0x180] sm:$0xff] }
 0x52f   :  { %16319 = vmatprep.subr.bf16.mxu1 %v21909_v5  ;;  %v16336_v26 = vpack.c.bf16 %v6484_v45, %v6483_v31  ;;  %v6494_v31 = vld [vmem:[%s21769_s3 + $0x1d8] sm:$0xff] }
 0x535   :  { %15613 = vmatmul.mubr.msk.f32.vlgmr.msra.gmra.mrb[46].mxu1 %vm6691_vm2, %v6380_v27 }
 0x536   :  { %16322 = vmatpush3.bf16.xpose.msk.msra.mxu1 %vm19824_vm3, %v16320_v30  ;;  %15623 = vmatprep.mubr.msk.f32.mxu1 %vm17291_vm4, %v21908_v3  ;;  %v6486_v30 = vld [vmem:[%s21769_s3 + $0x198] sm:$0xff] }
 0x537   :  { %16323 = vmatprep.subr.bf16.mxu1 %v21909_v5  ;;  %v16340_v27 = vpack.c.bf16 %v6486_v30, %v6485_v15  ;;  %v6321_v15 = vadd.f32 %v20031_v54, %v20096_v42  ;;  %v6495_v30 = vld [vmem:[%s21769_s3 + $0x1e0] sm:$0xff]  ;;  %v6497_v42 = vld [vmem:[%s21769_s3 + $0x1f0] sm:$0xff] }
 0x53e   :  { %16326 = vmatpush3.bf16.xpose.msk.msra.mxu1 %vm19824_vm3, %v16324_v7  ;;  %v6488_v7 = vld [vmem:[%s21769_s3 + $0x1a8] sm:$0xff] }
 0x53f   :  { %16327 = vmatprep.subr.bf16.mxu1 %v21909_v5  ;;  %v16344_v24 = vpack.c.bf16 %v6488_v7, %v6487_v20  ;;  %v6385_v20 = vmax.f32 %v6321_v15, 0.0  ;;  %v6498_v7 = vld [vmem:[%s21769_s3 + $0x1f8] sm:$0xff] }
 0x545   :  { %15624 = vmatmul.mubr.msk.f32.vlgmr.msra.gmra.mrb[48].mxu1 %vm6691_vm2, %v6381_v53  ;;  %v6320_v53 = vadd.f32 %v20083_v19, %v20031_v54  ;;  %v6493_v19 = vld [vmem:[%s21769_s3 + $0x1d0] sm:$0xff] }
 0x546   :  { %16330 = vmatpush3.bf16.xpose.msk.msra.mxu1 %vm19824_vm3, %v16328_v36  ;;  %15634 = vmatprep.mubr.msk.f32.mxu1 %vm17291_vm4, %v21908_v3  ;;  %v16348_v36 = vpack.c.bf16 %v6490_v51, %v6489_v38 }
 0x547   :  { %16331 = vmatprep.subr.bf16.mxu1 %v21909_v5  ;;  %v6384_v12 = vmax.f32 %v6320_v53, 0.0  ;;  %v16364_v53 = vpack.c.bf16 %v6498_v7, %v6497_v42 }
 0x54e   :  { %16334 = vmatpush3.bf16.xpose.msk.msra.mxu1 %vm19824_vm3, %v16332_v52  ;;  %v16352_v52 = vpack.c.bf16 %v6492_v6, %v6491_v17  ;;  %v6322_v17 = vadd.f32 %v20094_v40, %v20031_v54  ;;  %v6499_v6 = vld [vmem:[%s21769_s3 + $0x200] sm:$0xff]  ;;  %v6501_v40 = vld [vmem:[%s21769_s3 + $0x210] sm:$0xff] }
 0x54f   :  { %16335 = vmatprep.subr.bf16.mxu1 %v21909_v5 }
 0x555   :  { %15635 = vmatmul.mubr.msk.f32.vlgmr.msra.gmra.mrb[50].mxu1 %vm6691_vm2, %v6382_v28  ;;  %v16356_v28 = vpack.c.bf16 %v6494_v31, %v6493_v19  ;;  %v6386_v19 = vmax.f32 %v6322_v17, 0.0  ;;  %v6502_v31 = vld [vmem:[%s21769_s3 + $0x218] sm:$0xff]  ;;  %v6324_v17 = vadd.f32 %v20101_v56, %v20031_v54  ;;  %v6509_v56 = vld [vmem:[%s21769_s3 + $0x250] sm:$0xff] }
 0x556   :  { %16338 = vmatpush3.bf16.xpose.msk.msra.mxu1 %vm19824_vm3, %v16336_v26  ;;  %15645 = vmatprep.mubr.msk.f32.mxu1 %vm17291_vm4, %v21908_v3 }
 0x557   :  { %16339 = vmatprep.subr.bf16.mxu1 %v21909_v5 }
 0x55e   :  { %16342 = vmatpush3.bf16.xpose.msk.msra.mxu1 %vm19824_vm3, %v16340_v27  ;;  %v6496_v27 = vld [vmem:[%s21769_s3 + $0x1e8] sm:$0xff] }
 0x55f   :  { %16343 = vmatprep.subr.bf16.mxu1 %v21909_v5  ;;  %v16360_v9 = vpack.c.bf16 %v6496_v27, %v6495_v30  ;;  %v16372_v30 = vpack.c.bf16 %v6502_v31, %v6501_v40  ;;  %v6323_v27 = vadd.f32 %v20031_v54, %v20110_v59  ;;  %v6505_v59 = vld [vmem:[%s21769_s3 + $0x230] sm:$0xff]  ;;  %v6510_v40 = vld [vmem:[%s21769_s3 + $0x258] sm:$0xff] }
 0x561   :  { %v6387_v7 = vmax.f32 %v6323_v27, 0.0  ;;  %v6511_v27 = vld [vmem:[%s21769_s3 + $0x260] sm:$0xff] }
 0x565   :  { %15646 = vmatmul.mubr.msk.f32.vlgmr.msra.gmra.mrb[52].mxu1 %vm6691_vm2, %v6383_v34 }
 0x566   :  { %16346 = vmatpush3.bf16.xpose.msk.msra.mxu1 %vm19824_vm3, %v16344_v24  ;;  %15656 = vmatprep.mubr.msk.f32.mxu1 %vm17291_vm4, %v21908_v3 }
 0x567   :  { %16347 = vmatprep.subr.bf16.mxu1 %v21909_v5 }
 0x56e   :  { %16350 = vmatpush3.bf16.xpose.msk.msra.mxu1 %vm19824_vm3, %v16348_v36 }
 0x56f   :  { %16351 = vmatprep.subr.bf16.mxu1 %v21909_v5 }
 0x575   :  { %15657 = vmatmul.mubr.msk.f32.vlgmr.msra.gmra.mrb[54].mxu1 %vm6691_vm2, %v6384_v12 }
 0x576   :  { %16354 = vmatpush3.bf16.xpose.msk.msra.mxu1 %vm19824_vm3, %v16352_v52  ;;  %15667 = vmatprep.mubr.msk.f32.mxu1 %vm17291_vm4, %v21908_v3  ;;  %v6500_v52 = vld [vmem:[%s21769_s3 + $0x208] sm:$0xff] }
 0x577   :  { %16355 = vmatprep.subr.bf16.mxu1 %v21909_v5  ;;  %v16368_v12 = vpack.c.bf16 %v6500_v52, %v6499_v6  ;;  %v6507_v6 = vld [vmem:[%s21769_s3 + $0x240] sm:$0xff]  ;;  %v6508_v52 = vld [vmem:[%s21769_s3 + $0x248] sm:$0xff] }
 0x578   :  { %v6773_v45 = vpop.f32.mrb[28].mxu1 }
 0x579   :  { %v15515_v26 = vpop.f32.mrb[29].mxu1  ;;  %v12133_v34 = vsel %vm12132_vm5, %v6773_v45, 0.0 }
 0x57e   :  { %16358 = vmatpush3.bf16.xpose.msk.msra.mxu1 %vm19824_vm3, %v16356_v28 }
 0x57f   :  { %16359 = vmatprep.subr.bf16.mxu1 %v21909_v5 }
 0x585   :  { %15668 = vmatmul.mubr.msk.f32.vlgmr.msra.gmra.mrb[56].mxu1 %vm6691_vm2, %v6385_v20  ;;  %v6504_v20 = vld [vmem:[%s21769_s3 + $0x228] sm:$0xff] }
 0x586   :  { %16362 = vmatpush3.bf16.xpose.msk.msra.mxu1 %vm19824_vm3, %v16360_v9  ;;  %15678 = vmatprep.mubr.msk.f32.mxu1 %vm17291_vm4, %v21908_v3  ;;  %v6503_v9 = vld [vmem:[%s21769_s3 + $0x220] sm:$0xff] }
 0x587   :  { %16363 = vmatprep.subr.bf16.mxu1 %v21909_v5  ;;  %v16376_v42 = vpack.c.bf16 %v6504_v20, %v6503_v9  ;;  %v6512_v9 = vld [vmem:[%s21769_s3 + $0x268] sm:$0xff] }
 0x588   :  { %v6858_v24 = vpop.f32.mrb[30].mxu1  ;;  %v16392_v20 = vpack.c.bf16 %v6512_v9, %v6511_v27  ;;  %v6522_v9 = vld [vmem:[%s21769_s3 + $0x2b8] sm:$0xff] }
 0x589   :  { %v12134_v38 = vsel %vm12132_vm5, %v6858_v24, 0.0  ;;  %v15526_v51 = vpop.f32.mrb[31].mxu1  ;;  %v6506_v24 = vld [vmem:[%s21769_s3 + $0x238] sm:$0xff] }
 0x58a   :  { %v12135_v36 = vadd.f32 %v12134_v38, %v12133_v34 }
 0x58e   :  { %16366 = vmatpush3.bf16.xpose.msk.msra.mxu1 %vm19824_vm3, %v16364_v53  ;;  %v16380_v53 = vpack.c.bf16 %v6506_v24, %v6505_v59 }
 0x58f   :  { %16367 = vmatprep.subr.bf16.mxu1 %v21909_v5 }
 0x595   :  { %15679 = vmatmul.mubr.msk.f32.vlgmr.msra.gmra.mrb[58].mxu1 %vm6691_vm2, %v6386_v19  ;;  %v6388_v19 = vmax.f32 %v6324_v17, 0.0  ;;  %v6516_v17 = vld [vmem:[%s21769_s3 + $0x288] sm:$0xff] }
 0x596   :  { %16370 = vmatpush3.bf16.xpose.msk.msra.mxu1 %vm19824_vm3, %v16368_v12  ;;  %15689 = vmatprep.mubr.msk.f32.mxu1 %vm17291_vm4, %v21908_v3  ;;  %v16384_v12 = vpack.c.bf16 %v6508_v52, %v6507_v6 }
 0x597   :  { %16371 = vmatprep.subr.bf16.mxu1 %v21909_v5 }
 0x598   :  { %v6943_v45 = vpop.f32.mrb[32].mxu1 }
 0x599   :  { %v12136_v26 = vsel %vm12132_vm5, %v6943_v45, 0.0  ;;  %v15537_v28 = vpop.f32.mrb[33].mxu1 }
 0x59a   :  { %v12137_v15 = vadd.f32 %v12136_v26, %v12135_v36 }
 0x59e   :  { %16374 = vmatpush3.bf16.xpose.msk.msra.mxu1 %vm19824_vm3, %v16372_v30  ;;  %v6325_v30 = vadd.f32 %v20031_v54, %v20114_v2  ;;  %v6513_v2 = vld [vmem:[%s21769_s3 + $0x270] sm:$0xff] }
 0x59f   :  { %16375 = vmatprep.subr.bf16.mxu1 %v21909_v5 }
 0x5a5   :  { %15690 = vmatmul.mubr.msk.f32.vlgmr.msra.gmra.mrb[60].mxu1 %vm6691_vm2, %v6387_v7  ;;  %v6514_v7 = vld [vmem:[%s21769_s3 + $0x278] sm:$0xff] }
 0x5a6   :  { %16378 = vmatpush3.bf16.xpose.msk.msra.mxu1 %vm19824_vm3, %v16376_v42  ;;  %15700 = vmatprep.mubr.msk.f32.mxu1 %vm17291_vm4, %v21908_v3  ;;  %v6389_v42 = vmax.f32 %v6325_v30, 0.0 }
 0x5a7   :  { %16379 = vmatprep.subr.bf16.mxu1 %v21909_v5 }
 0x5a8   :  { %v7028_v34 = vpop.f32.mrb[34].mxu1 }
 0x5a9   :  { %v12138_v38 = vsel %vm12132_vm5, %v7028_v34, 0.0  ;;  %v15548_v51 = vpop.f32.mrb[35].mxu1 }
 0x5aa   :  { %v12139_v36 = vadd.f32 %v12138_v38, %v12137_v15  ;;  %v16388_v15 = vpack.c.bf16 %v6510_v40, %v6509_v56  ;;  %v16396_v51 = vpack.c.bf16 %v6514_v7, %v6513_v2 }
 0x5ae   :  { %16382 = vmatpush3.bf16.xpose.msk.msra.mxu1 %vm19824_vm3, %v16380_v53  ;;  %v6515_v53 = vld [vmem:[%s21769_s3 + $0x280] sm:$0xff] }
 0x5af   :  { %16383 = vmatprep.subr.bf16.mxu1 %v21909_v5  ;;  %v16400_v6 = vpack.c.bf16 %v6516_v17, %v6515_v53  ;;  %v6526_v53 = vld [vmem:[%s21769_s3 + $0x2d8] sm:$0xff] }
 0x5b5   :  { %15701 = vmatmul.mubr.msk.f32.vlgmr.msra.gmra.mrb[62].mxu1 %vm6691_vm2, %v6388_v19 }
 0x5b6   :  { %16386 = vmatpush3.bf16.xpose.msk.msra.mxu1 %vm19824_vm3, %v16384_v12  ;;  %15711 = vmatprep.mubr.msk.f32.mxu1 %vm17291_vm4, %v21908_v3  ;;  %v6518_v12 = vld [vmem:[%s21769_s3 + $0x298] sm:$0xff] }
 0x5b7   :  { %16387 = vmatprep.subr.bf16.mxu1 %v21909_v5 }
 0x5b8   :  { %v7113_v31 = vpop.f32.mrb[36].mxu1 }
 0x5b9   :  { %v12140_v45 = vsel %vm12132_vm5, %v7113_v31, 0.0  ;;  %v15559_v26 = vpop.f32.mrb[37].mxu1 }
 0x5ba   :  { %v12141_v28 = vadd.f32 %v12140_v45, %v12139_v36  ;;  %v6326_v36 = vadd.f32 %v20112_v1, %v20031_v54  ;;  %v6517_v1 = vld [vmem:[%s21769_s3 + $0x290] sm:$0xff]  ;;  %v6327_v26 = vadd.f32 %v20031_v54, %v20130_v10 }
 0x5bb   :  { %v16404_v45 = vpack.c.bf16 %v6518_v12, %v6517_v1  ;;  %v6521_v10 = vld [vmem:[%s21769_s3 + $0x2b0] sm:$0xff] }
 0x5bc   :  { %v6390_v52 = vmax.f32 %v6326_v36, 0.0  ;;  %v6391_v27 = vmax.f32 %v6327_v26, 0.0  ;;  %v6530_v26 = vld [vmem:[%s21769_s3 + $0x2f8] sm:$0xff] }
 0x5be   :  { %16390 = vmatpush3.bf16.xpose.msk.msra.mxu1 %vm19824_vm3, %v16388_v15  ;;  %v6520_v15 = vld [vmem:[%s21769_s3 + $0x2a8] sm:$0xff] }
 0x5bf   :  { %16391 = vmatprep.subr.bf16.mxu1 %v21909_v5 }
 0x5c5   :  { %15712 = vmatmul.mubr.msk.f32.vlgmr.msra.gmra.mrb[64].mxu1 %vm6691_vm2, %v6389_v42 }
 0x5c6   :  { %16394 = vmatpush3.bf16.xpose.msk.msra.mxu1 %vm19824_vm3, %v16392_v20  ;;  %15722 = vmatprep.mubr.msk.f32.mxu1 %vm17291_vm4, %v21908_v3 }
 0x5c7   :  { %16395 = vmatprep.subr.bf16.mxu1 %v21909_v5 }
 0x5c8   :  { %v7198_v59 = vpop.f32.mrb[38].mxu1 }
 0x5c9   :  { %v12142_v24 = vsel %vm12132_vm5, %v7198_v59, 0.0  ;;  %v15570_v34 = vpop.f32.mrb[39].mxu1  ;;  %v16412_v59 = vpack.c.bf16 %v6522_v9, %v6521_v10  ;;  %v6330_v9 = vadd.f32 %v20132_v13, %v20031_v54  ;;  %v6533_v13 = vld [vmem:[%s21769_s3 + $0x310] sm:$0xff] }
 0x5ca   :  { %v12143_v38 = vadd.f32 %v12142_v24, %v12141_v28  ;;  %v6519_v28 = vld [vmem:[%s21769_s3 + $0x2a0] sm:$0xff]  ;;  %v6328_v24 = vadd.f32 %v20121_v63, %v20031_v54  ;;  %v6525_v63 = vld [vmem:[%s21769_s3 + $0x2d0] sm:$0xff] }
 0x5cb   :  { %v16408_v30 = vpack.c.bf16 %v6520_v15, %v6519_v28  ;;  %v6523_v34 = vld [vmem:[%s21769_s3 + $0x2c0] sm:$0xff]  ;;  %v16420_v12 = vpack.c.bf16 %v6526_v53, %v6525_v63  ;;  %v6331_v63 = vadd.f32 %v20031_v54, %v20148_v57  ;;  %v6537_v57 = vld [vmem:[%s21769_s3 + $0x330] sm:$0xff] }
 0x5cc   :  { %v6392_v36 = vmax.f32 %v6328_v24, 0.0  ;;  %v6535_v53 = vld [vmem:[%s21769_s3 + $0x320] sm:$0xff] }
 0x5ce   :  { %16398 = vmatpush3.bf16.xpose.msk.msra.mxu1 %vm19824_vm3, %v16396_v51 }
 0x5cf   :  { %16399 = vmatprep.subr.bf16.mxu1 %v21909_v5 }
 0x5d5   :  { %15723 = vmatmul.mubr.msk.f32.vlgmr.msra.gmra.mrb[66].mxu1 %vm6691_vm2, %v6390_v52 }
 0x5d6   :  { %16402 = vmatpush3.bf16.xpose.msk.msra.mxu1 %vm19824_vm3, %v16400_v6  ;;  %15733 = vmatprep.mubr.msk.f32.mxu1 %vm17291_vm4, %v21908_v3 }
 0x5d7   :  { %16403 = vmatprep.subr.bf16.mxu1 %v21909_v5 }
 0x5d8   :  { %v7283_v19 = vpop.f32.mrb[40].mxu1 }
 0x5d9   :  { %v12144_v56 = vsel %vm12132_vm5, %v7283_v19, 0.0  ;;  %v15581_v40 = vpop.f32.mrb[41].mxu1  ;;  %v6329_v19 = vadd.f32 %v20031_v54, %v20134_v14  ;;  %v6529_v14 = vld [vmem:[%s21769_s3 + $0x2f0] sm:$0xff] }
 0x5da   :  { %v12145_v31 = vadd.f32 %v12144_v56, %v12143_v38  ;;  %v6524_v38 = vld [vmem:[%s21769_s3 + $0x2c8] sm:$0xff]  ;;  %v6527_v56 = vld [vmem:[%s21769_s3 + $0x2e0] sm:$0xff]  ;;  %v16428_v10 = vpack.c.bf16 %v6530_v26, %v6529_v14 }
 0x5db   :  { %v16416_v51 = vpack.c.bf16 %v6524_v38, %v6523_v34  ;;  %v6528_v40 = vld [vmem:[%s21769_s3 + $0x2e8] sm:$0xff]  ;;  %v6539_v14 = vld [vmem:[%s21769_s3 + $0x340] sm:$0xff] }
 0x5dc   :  { %v6540_v26 = vld [vmem:[%s21769_s3 + $0x348] sm:$0xff] }
 0x5de   :  { %16406 = vmatpush3.bf16.xpose.msk.msra.mxu1 %vm19824_vm3, %v16404_v45  ;;  %v6393_v45 = vmax.f32 %v6329_v19, 0.0 }
 0x5df   :  { %16407 = vmatprep.subr.bf16.mxu1 %v21909_v5 }
 0x5e5   :  { %15734 = vmatmul.mubr.msk.f32.vlgmr.msra.gmra.mrb[68].mxu1 %vm6691_vm2, %v6391_v27 }
 0x5e6   :  { %16410 = vmatpush3.bf16.xpose.msk.msra.mxu1 %vm19824_vm3, %v16408_v30  ;;  %15744 = vmatprep.mubr.msk.f32.mxu1 %vm17291_vm4, %v21908_v3 }
 0x5e7   :  { %16411 = vmatprep.subr.bf16.mxu1 %v21909_v5 }
 0x5e8   :  { %v7368_v20 = vpop.f32.mrb[42].mxu1 }
 0x5e9   :  { %v12146_v42 = vsel %vm12132_vm5, %v7368_v20, 0.0  ;;  %v15592_v2 = vpop.f32.mrb[43].mxu1  ;;  %v6531_v20 = vld [vmem:[%s21769_s3 + $0x300] sm:$0xff] }
 0x5ea   :  { %v12147_v7 = vadd.f32 %v12146_v42, %v12145_v31  ;;  %v16424_v31 = vpack.c.bf16 %v6528_v40, %v6527_v56  ;;  %v6532_v42 = vld [vmem:[%s21769_s3 + $0x308] sm:$0xff] }
 0x5eb   :  { %v16432_v2 = vpack.c.bf16 %v6532_v42, %v6531_v20 }
 0x5ee   :  { %16414 = vmatpush3.bf16.xpose.msk.msra.mxu1 %vm19824_vm3, %v16412_v59  ;;  %v6534_v59 = vld [vmem:[%s21769_s3 + $0x318] sm:$0xff] }
 0x5ef   :  { %16415 = vmatprep.subr.bf16.mxu1 %v21909_v5 }
 0x5f5   :  { %15745 = vmatmul.mubr.msk.f32.vlgmr.msra.gmra.mrb[70].mxu1 %vm6691_vm2, %v6392_v36  ;;  %v16436_v36 = vpack.c.bf16 %v6534_v59, %v6533_v13  ;;  %v6543_v13 = vld [vmem:[%s21769_s3 + $0x360] sm:$0xff]  ;;  %v6544_v59 = vld [vmem:[%s21769_s3 + $0x368] sm:$0xff] }
 0x5f6   :  { %16418 = vmatpush3.bf16.xpose.msk.msra.mxu1 %vm19824_vm3, %v16416_v51  ;;  %15755 = vmatprep.mubr.msk.f32.mxu1 %vm17291_vm4, %v21908_v3 }
 0x5f7   :  { %16419 = vmatprep.subr.bf16.mxu1 %v21909_v5 }
 0x5f8   :  { %v7453_v17 = vpop.f32.mrb[44].mxu1 }
 0x5f9   :  { %v12148_v6 = vsel %vm12132_vm5, %v7453_v17, 0.0  ;;  %v15603_v52 = vpop.f32.mrb[45].mxu1  ;;  %v6536_v17 = vld [vmem:[%s21769_s3 + $0x328] sm:$0xff] }
 0x5fa   :  { %v12149_v1 = vadd.f32 %v12148_v6, %v12147_v7  ;;  %v6394_v7 = vmax.f32 %v6330_v9, 0.0  ;;  %v16440_v6 = vpack.c.bf16 %v6536_v17, %v6535_v53  ;;  %v6395_v52 = vmax.f32 %v6331_v63, 0.0 }
 0x5fe   :  { %16422 = vmatpush3.bf16.xpose.msk.msra.mxu1 %vm19824_vm3, %v16420_v12 }
 0x5ff   :  { %16423 = vmatprep.subr.bf16.mxu1 %v21909_v5 }
 0x605   :  { %15756 = vmatmul.mubr.msk.f32.vlgmr.msra.gmra.mrb[72].mxu1 %vm6691_vm2, %v6393_v45  ;;  %v6332_v45 = vadd.f32 %v20139_v37, %v20031_v54  ;;  %v6541_v37 = vld [vmem:[%s21769_s3 + $0x350] sm:$0xff] }
 0x606   :  { %16426 = vmatpush3.bf16.xpose.msk.msra.mxu1 %vm19824_vm3, %v16424_v31  ;;  %15766 = vmatprep.mubr.msk.f32.mxu1 %vm17291_vm4, %v21908_v3 }
 0x607   :  { %16427 = vmatprep.subr.bf16.mxu1 %v21909_v5 }
 0x608   :  { %v7538_v28 = vpop.f32.mrb[46].mxu1 }
 0x609   :  { %v12150_v15 = vsel %vm12132_vm5, %v7538_v28, 0.0  ;;  %v15614_v30 = vpop.f32.mrb[47].mxu1  ;;  %v16448_v28 = vpack.c.bf16 %v6540_v26, %v6539_v14 }
 0x60a   :  { %v12151_v27 = vadd.f32 %v12150_v15, %v12149_v1  ;;  %v6538_v1 = vld [vmem:[%s21769_s3 + $0x338] sm:$0xff]  ;;  %v6396_v15 = vmax.f32 %v6332_v45, 0.0 }
 0x60b   :  { %v16444_v31 = vpack.c.bf16 %v6538_v1, %v6537_v57  ;;  %v6542_v30 = vld [vmem:[%s21769_s3 + $0x358] sm:$0xff]  ;;  %v6547_v1 = vld [vmem:[%s21769_s3 + $0x380] sm:$0xff] }
 0x60c   :  { %v16452_v42 = vpack.c.bf16 %v6542_v30, %v6541_v37  ;;  %v21913_v37 = vld [vmem:[#allocation6_spill] sm:$0xff] }
 0x60e   :  { %16430 = vmatpush3.bf16.xpose.msk.msra.mxu1 %vm19824_vm3, %v16428_v10 }
 0x60f   :  { %16431 = vmatprep.subr.bf16.mxu1 %v21909_v5 }
 0x615   :  { %15767 = vmatmul.mubr.msk.f32.vlgmr.msra.gmra.mrb[74].mxu1 %vm6691_vm2, %v6394_v7 }
 0x616   :  { %16434 = vmatpush3.bf16.xpose.msk.msra.mxu1 %vm19824_vm3, %v16432_v2  ;;  %15777 = vmatprep.mubr.msk.f32.mxu1 %vm17291_vm4, %v21908_v3  ;;  %v21911_v2 = vld [vmem:[#allocation4_spill] sm:$0xff] }
 0x617   :  { %16435 = vmatprep.subr.bf16.mxu1 %v21909_v5  ;;  %v6333_v7 = vadd.f32 %v20031_v54, %v21911_v2  ;;  %v6545_v54 = vld [vmem:[%s21769_s3 + $0x370] sm:$0xff]  ;;  %v6554_v2 = vld [vmem:[%s21769_s3 + $0x3b8] sm:$0xff] }
 0x618   :  { %v7623_v24 = vpop.f32.mrb[48].mxu1 }
 0x619   :  { %v12152_v34 = vsel %vm12132_vm5, %v7623_v24, 0.0  ;;  %v15625_v38 = vpop.f32.mrb[49].mxu1  ;;  %v16456_v24 = vpack.c.bf16 %v6544_v59, %v6543_v13 }
 0x61a   :  { %v12153_v51 = vadd.f32 %v12152_v34, %v12151_v27  ;;  %v6397_v34 = vmax.f32 %v6333_v7, 0.0  ;;  %v6546_v38 = vld [vmem:[%s21769_s3 + $0x378] sm:$0xff] }
 0x61b   :  { %v16460_v17 = vpack.c.bf16 %v6546_v38, %v6545_v54  ;;  %v21914_v54 = vld [vmem:[#allocation5_spill] sm:$0xff] }
 0x61e   :  { %16438 = vmatpush3.bf16.xpose.msk.msra.mxu1 %vm19824_vm3, %v16436_v36 }
 0x61f   :  { %16439 = vmatprep.subr.bf16.mxu1 %v21909_v5 }
 0x625   :  { %15778 = vmatmul.mubr.msk.f32.vlgmr.msra.gmra.mrb[76].mxu1 %vm6691_vm2, %v6395_v52  ;;  %v21912_v52 = vld [vmem:[#allocation3_spill] sm:$0xff] }
 0x626   :  { %16442 = vmatpush3.bf16.xpose.msk.msra.mxu1 %vm19824_vm3, %v16440_v6  ;;  %15788 = vmatprep.mubr.msk.f32.mxu1 %vm17291_vm4, %v21908_v3  ;;  %v20814_v6 = vld [vmem:[%s21770_s2] ss:$0 sm:$0xff] }
 0x627   :  { %16443 = vmatprep.subr.bf16.mxu1 %v21909_v5  ;;  %v6334_v57 = vadd.f32 %v20814_v6, %v21912_v52  ;;  %v6335_v30 = vadd.f32 %v20814_v6, %v21913_v37  ;;  %v6336_v38 = vadd.f32 %v20814_v6, %v21914_v54  ;;  %v6558_v52 = vld [vmem:[%s21769_s3 + $0x3d8] sm:$0xff] }
 0x628   :  { %v7708_v12 = vpop.f32.mrb[50].mxu1  ;;  %v6562_v37 = vld [vmem:[%s21769_s3 + $0x3f8] sm:$0xff] }
 0x629   :  { %v12154_v19 = vsel %vm12132_vm5, %v7708_v12, 0.0  ;;  %v15636_v56 = vpop.f32.mrb[51].mxu1  ;;  %v6548_v12 = vld [vmem:[%s21769_s3 + $0x388] sm:$0xff]  ;;  %v6566_v54 = vld [vmem:[%s21769_s3 + $0x418] sm:$0xff] }
 0x62a   :  { %v12155_v40 = vadd.f32 %v12154_v19, %v12153_v51  ;;  %v16464_v19 = vpack.c.bf16 %v6548_v12, %v6547_v1  ;;  %v6398_v56 = vmax.f32 %v6334_v57, 0.0 }
 0x62e   :  { %16446 = vmatpush3.bf16.xpose.msk.msra.mxu1 %vm19824_vm3, %v16444_v31  ;;  %v6550_v31 = vld [vmem:[%s21769_s3 + $0x398] sm:$0xff] }
 0x62f   :  { %16447 = vmatprep.subr.bf16.mxu1 %v21909_v5 }
 0x635   :  { %15789 = vmatmul.mubr.msk.f32.vlgmr.msra.gmra.mrb[78].mxu1 %vm6691_vm2, %v6396_v15 }
 0x636   :  { %16450 = vmatpush3.bf16.xpose.msk.msra.mxu1 %vm19824_vm3, %v16448_v28  ;;  %15799 = vmatprep.mubr.msk.f32.mxu1 %vm17291_vm4, %v21908_v3 }
 0x637   :  { %16451 = vmatprep.subr.bf16.mxu1 %v21909_v5 }
 0x638   :  { %v7793_v27 = vpop.f32.mrb[52].mxu1 }
 0x639   :  { %v12156_v10 = vsel %vm12132_vm5, %v7793_v27, 0.0  ;;  %v15647_v9 = vpop.f32.mrb[53].mxu1  ;;  %v6551_v27 = vld [vmem:[%s21769_s3 + $0x3a0] sm:$0xff] }
 0x63a   :  { %v12157_v20 = vadd.f32 %v12156_v10, %v12155_v40  ;;  %v6549_v40 = vld [vmem:[%s21769_s3 + $0x390] sm:$0xff]  ;;  %v6552_v10 = vld [vmem:[%s21769_s3 + $0x3a8] sm:$0xff] }
 0x63b   :  { %v16468_v15 = vpack.c.bf16 %v6550_v31, %v6549_v40  ;;  %v16472_v9 = vpack.c.bf16 %v6552_v10, %v6551_v27  ;;  %v21915_v40 = vld [vmem:[#allocation8_spill] sm:$0xff] }
 0x63c   :  { %v6337_v31 = vadd.f32 %v20814_v6, %v21915_v40  ;;  %v6570_v40 = vld [vmem:[%s21769_s3 + $0x438] sm:$0xff] }
 0x63e   :  { %16454 = vmatpush3.bf16.xpose.msk.msra.mxu1 %vm19824_vm3, %v16452_v42  ;;  %v6553_v42 = vld [vmem:[%s21769_s3 + $0x3b0] sm:$0xff] }
 0x63f   :  { %16455 = vmatprep.subr.bf16.mxu1 %v21909_v5 }
 0x645   :  { %15800 = vmatmul.mubr.msk.f32.vlgmr.msra.gmra.mrb[80].mxu1 %vm6691_vm2, %v6397_v34  ;;  %v16476_v34 = vpack.c.bf16 %v6554_v2, %v6553_v42  ;;  %v21916_v42 = vld [vmem:[#allocation7_spill] sm:$0xff] }
 0x646   :  { %16458 = vmatpush3.bf16.xpose.msk.msra.mxu1 %vm19824_vm3, %v16456_v24  ;;  %15810 = vmatprep.mubr.msk.f32.mxu1 %vm17291_vm4, %v21908_v3  ;;  %v6338_v2 = vadd.f32 %v20814_v6, %v21916_v42  ;;  %v6574_v42 = vld [vmem:[%s21769_s3 + $0x458] sm:$0xff] }
 0x647   :  { %16459 = vmatprep.subr.bf16.mxu1 %v21909_v5 }
 0x648   :  { %v7878_v51 = vpop.f32.mrb[54].mxu1 }
 0x649   :  { %v12158_v36 = vsel %vm12132_vm5, %v7878_v51, 0.0  ;;  %v15658_v63 = vpop.f32.mrb[55].mxu1  ;;  %v6555_v51 = vld [vmem:[%s21769_s3 + $0x3c0] sm:$0xff] }
 0x64a   :  { %v12159_v53 = vadd.f32 %v12158_v36, %v12157_v20  ;;  %v6399_v20 = vmax.f32 %v6335_v30, 0.0  ;;  %v6556_v36 = vld [vmem:[%s21769_s3 + $0x3c8] sm:$0xff] }
 0x64b   :  { %v16480_v63 = vpack.c.bf16 %v6556_v36, %v6555_v51 }
 0x64e   :  { %16462 = vmatpush3.bf16.xpose.msk.msra.mxu1 %vm19824_vm3, %v16460_v17  ;;  %v6557_v17 = vld [vmem:[%s21769_s3 + $0x3d0] sm:$0xff] }
 0x64f   :  { %16463 = vmatprep.subr.bf16.mxu1 %v21909_v5 }
 0x655   :  { %15811 = vmatmul.mubr.msk.f32.vlgmr.msra.gmra.mrb[82].mxu1 %vm6691_vm2, %v6398_v56  ;;  %v16484_v56 = vpack.c.bf16 %v6558_v52, %v6557_v17  ;;  %v21917_v17 = vld [vmem:[#allocation10_spill] sm:$0xff] }
 0x656   :  { %16466 = vmatpush3.bf16.xpose.msk.msra.mxu1 %vm19824_vm3, %v16464_v19  ;;  %15821 = vmatprep.mubr.msk.f32.mxu1 %vm17291_vm4, %v21908_v3  ;;  %v6339_v52 = vadd.f32 %v20814_v6, %v21917_v17  ;;  %v6578_v17 = vld [vmem:[%s21769_s3 + $0x478] sm:$0xff] }
 0x657   :  { %16467 = vmatprep.subr.bf16.mxu1 %v21909_v5 }
 0x658   :  { %v7963_v45 = vpop.f32.mrb[56].mxu1 }
 0x659   :  { %v12160_v14 = vsel %vm12132_vm5, %v7963_v45, 0.0  ;;  %v15669_v26 = vpop.f32.mrb[57].mxu1  ;;  %v6559_v45 = vld [vmem:[%s21769_s3 + $0x3e0] sm:$0xff] }
 0x65a   :  { %v12161_v28 = vadd.f32 %v12160_v14, %v12159_v53  ;;  %v6400_v53 = vmax.f32 %v6336_v38, 0.0  ;;  %v6560_v14 = vld [vmem:[%s21769_s3 + $0x3e8] sm:$0xff] }
 0x65b   :  { %v16488_v26 = vpack.c.bf16 %v6560_v14, %v6559_v45 }
 0x65e   :  { %16470 = vmatpush3.bf16.xpose.msk.msra.mxu1 %vm19824_vm3, %v16468_v15  ;;  %v6561_v15 = vld [vmem:[%s21769_s3 + $0x3f0] sm:$0xff] }
 0x65f   :  { %16471 = vmatprep.subr.bf16.mxu1 %v21909_v5 }
 0x665   :  { %15822 = vmatmul.mubr.msk.f32.vlgmr.msra.gmra.mrb[84].mxu1 %vm6691_vm2, %v6399_v20  ;;  %v16492_v20 = vpack.c.bf16 %v6562_v37, %v6561_v15  ;;  %v21918_v15 = vld [vmem:[#allocation9_spill] sm:$0xff] }
 0x666   :  { %16474 = vmatpush3.bf16.xpose.msk.msra.mxu1 %vm19824_vm3, %v16472_v9  ;;  %15832 = vmatprep.mubr.msk.f32.mxu1 %vm17291_vm4, %v21908_v3  ;;  %v6340_v37 = vadd.f32 %v20814_v6, %v21918_v15  ;;  %v6582_v15 = vld [vmem:[%s21769_s3 + $0x498] sm:$0xff] }
 0x667   :  { %16475 = vmatprep.subr.bf16.mxu1 %v21909_v5 }
 0x668   :  { %v8048_v7 = vpop.f32.mrb[58].mxu1 }
 0x669   :  { %v12162_v13 = vsel %vm12132_vm5, %v8048_v7, 0.0  ;;  %v15680_v59 = vpop.f32.mrb[59].mxu1  ;;  %v6563_v7 = vld [vmem:[%s21769_s3 + $0x400] sm:$0xff] }
 0x66a   :  { %v12163_v24 = vadd.f32 %v12162_v13, %v12161_v28  ;;  %v6401_v28 = vmax.f32 %v6337_v31, 0.0  ;;  %v6564_v13 = vld [vmem:[%s21769_s3 + $0x408] sm:$0xff] }
 0x66b   :  { %v16496_v59 = vpack.c.bf16 %v6564_v13, %v6563_v7 }
 0x66e   :  { %16478 = vmatpush3.bf16.xpose.msk.msra.mxu1 %vm19824_vm3, %v16476_v34  ;;  %v6565_v34 = vld [vmem:[%s21769_s3 + $0x410] sm:$0xff] }
 0x66f   :  { %16479 = vmatprep.subr.bf16.mxu1 %v21909_v5 }
 0x675   :  { %15833 = vmatmul.mubr.msk.f32.vlgmr.msra.gmra.mrb[86].mxu1 %vm6691_vm2, %v6400_v53  ;;  %v16500_v53 = vpack.c.bf16 %v6566_v54, %v6565_v34  ;;  %v21919_v34 = vld [vmem:[#allocation12_spill] sm:$0xff] }
 0x676   :  { %16482 = vmatpush3.bf16.xpose.msk.msra.mxu1 %vm19824_vm3, %v16480_v63  ;;  %15843 = vmatprep.mubr.msk.f32.mxu1 %vm17291_vm4, %v21908_v3  ;;  %v6341_v54 = vadd.f32 %v20814_v6, %v21919_v34 }
 0x677   :  { %16483 = vmatprep.subr.bf16.mxu1 %v21909_v5 }
 0x678   :  { %v8133_v57 = vpop.f32.mrb[60].mxu1 }
 0x679   :  { %v12164_v1 = vsel %vm12132_vm5, %v8133_v57, 0.0  ;;  %v15691_v12 = vpop.f32.mrb[61].mxu1  ;;  %v6567_v57 = vld [vmem:[%s21769_s3 + $0x420] sm:$0xff] }
 0x67a   :  { %v12165_v19 = vadd.f32 %v12164_v1, %v12163_v24  ;;  %v6402_v24 = vmax.f32 %v6338_v2, 0.0  ;;  %v6568_v1 = vld [vmem:[%s21769_s3 + $0x428] sm:$0xff] }
 0x67b   :  { %v16504_v12 = vpack.c.bf16 %v6568_v1, %v6567_v57 }
 0x67e   :  { %16486 = vmatpush3.bf16.xpose.msk.msra.mxu1 %vm19824_vm3, %v16484_v56  ;;  %v6569_v56 = vld [vmem:[%s21769_s3 + $0x430] sm:$0xff] }
 0x67f   :  { %16487 = vmatprep.subr.bf16.mxu1 %v21909_v5 }
 0x685   :  { %15844 = vmatmul.mubr.msk.f32.vlgmr.msra.gmra.mrb[88].mxu1 %vm6691_vm2, %v6401_v28  ;;  %v16508_v28 = vpack.c.bf16 %v6570_v40, %v6569_v56  ;;  %v21920_v56 = vld [vmem:[#allocation11_spill] sm:$0xff] }
 0x686   :  { %16490 = vmatpush3.bf16.xpose.msk.msra.mxu1 %vm19824_vm3, %v16488_v26  ;;  %15854 = vmatprep.mubr.msk.f32.mxu1 %vm17291_vm4, %v21908_v3  ;;  %v6342_v40 = vadd.f32 %v20814_v6, %v21920_v56 }
 0x687   :  { %16491 = vmatprep.subr.bf16.mxu1 %v21909_v5 }
 0x688   :  { %v8218_v30 = vpop.f32.mrb[62].mxu1 }
 0x689   :  { %v12166_v27 = vsel %vm12132_vm5, %v8218_v30, 0.0  ;;  %v15702_v10 = vpop.f32.mrb[63].mxu1  ;;  %v6571_v30 = vld [vmem:[%s21769_s3 + $0x440] sm:$0xff] }
 0x68a   :  { %v12167_v9 = vadd.f32 %v12166_v27, %v12165_v19  ;;  %v6403_v19 = vmax.f32 %v6339_v52, 0.0  ;;  %v6572_v27 = vld [vmem:[%s21769_s3 + $0x448] sm:$0xff] }
 0x68b   :  { %v16512_v10 = vpack.c.bf16 %v6572_v27, %v6571_v30 }
 0x68e   :  { %16494 = vmatpush3.bf16.xpose.msk.msra.mxu1 %vm19824_vm3, %v16492_v20  ;;  %v6573_v20 = vld [vmem:[%s21769_s3 + $0x450] sm:$0xff] }
 0x68f   :  { %16495 = vmatprep.subr.bf16.mxu1 %v21909_v5 }
 0x695   :  { %15855 = vmatmul.mubr.msk.f32.vlgmr.msra.gmra.mrb[90].mxu1 %vm6691_vm2, %v6402_v24  ;;  %v16516_v24 = vpack.c.bf16 %v6574_v42, %v6573_v20  ;;  %v6343_v20 = vadd.f32 %v20814_v6, %v20209_v55  ;;  %v6583_v42 = vld [vmem:[%s21769_s3 + $0x4a0] sm:$0xff]  ;;  %v6585_v55 = vld [vmem:[%s21769_s3 + $0x4b0] sm:$0xff] }
 0x696   :  { %16498 = vmatpush3.bf16.xpose.msk.msra.mxu1 %vm19824_vm3, %v16496_v59  ;;  %15865 = vmatprep.mubr.msk.f32.mxu1 %vm17291_vm4, %v21908_v3 }
 0x697   :  { %16499 = vmatprep.subr.bf16.mxu1 %v21909_v5 }
 0x698   :  { %v8303_v38 = vpop.f32.mrb[64].mxu1 }
 0x699   :  { %v12168_v51 = vsel %vm12132_vm5, %v8303_v38, 0.0  ;;  %v15713_v36 = vpop.f32.mrb[65].mxu1  ;;  %v6575_v38 = vld [vmem:[%s21769_s3 + $0x460] sm:$0xff] }
 0x69a   :  { %v12169_v63 = vadd.f32 %v12168_v51, %v12167_v9  ;;  %v6404_v9 = vmax.f32 %v6340_v37, 0.0  ;;  %v6576_v51 = vld [vmem:[%s21769_s3 + $0x468] sm:$0xff] }
 0x69b   :  { %v16520_v36 = vpack.c.bf16 %v6576_v51, %v6575_v38 }
 0x69e   :  { %16502 = vmatpush3.bf16.xpose.msk.msra.mxu1 %vm19824_vm3, %v16500_v53  ;;  %v6577_v53 = vld [vmem:[%s21769_s3 + $0x470] sm:$0xff] }
 0x69f   :  { %16503 = vmatprep.subr.bf16.mxu1 %v21909_v5 }
 0x6a5   :  { %15866 = vmatmul.mubr.msk.f32.vlgmr.msra.gmra.mrb[92].mxu1 %vm6691_vm2, %v6403_v19  ;;  %v16524_v19 = vpack.c.bf16 %v6578_v17, %v6577_v53  ;;  %v6588_v53 = vld [vmem:[%s21769_s3 + $0x4c8] sm:$0xff] }
 0x6a6   :  { %16506 = vmatpush3.bf16.xpose.msk.msra.mxu1 %vm19824_vm3, %v16504_v12  ;;  %15876 = vmatprep.mubr.msk.f32.mxu1 %vm17291_vm4, %v21908_v3 }
 0x6a7   :  { %16507 = vmatprep.subr.bf16.mxu1 %v21909_v5 }
 0x6a8   :  { %v8388_v31 = vpop.f32.mrb[66].mxu1 }
 0x6a9   :  { %v12170_v45 = vsel %vm12132_vm5, %v8388_v31, 0.0  ;;  %v15724_v14 = vpop.f32.mrb[67].mxu1  ;;  %v6579_v31 = vld [vmem:[%s21769_s3 + $0x480] sm:$0xff] }
 0x6aa   :  { %v12171_v26 = vadd.f32 %v12170_v45, %v12169_v63  ;;  %v6405_v63 = vmax.f32 %v6341_v54, 0.0  ;;  %v6580_v45 = vld [vmem:[%s21769_s3 + $0x488] sm:$0xff] }
 0x6ab   :  { %v16528_v14 = vpack.c.bf16 %v6580_v45, %v6579_v31  ;;  %v6345_v31 = vadd.f32 %v20814_v6, %v20215_v4  ;;  %v6591_v45 = vld [vmem:[%s21769_s3 + $0x4e0] sm:$0xff]  ;;  %v6593_v4 = vld [vmem:[%s21769_s3 + $0x4f0] sm:$0xff] }
 0x6ae   :  { %16510 = vmatpush3.bf16.xpose.msk.msra.mxu1 %vm19824_vm3, %v16508_v28  ;;  %v6581_v28 = vld [vmem:[%s21769_s3 + $0x490] sm:$0xff] }
 0x6af   :  { %16511 = vmatprep.subr.bf16.mxu1 %v21909_v5 }
 0x6b5   :  { %15877 = vmatmul.mubr.msk.f32.vlgmr.msra.gmra.mrb[94].mxu1 %vm6691_vm2, %v6404_v9  ;;  %v16532_v9 = vpack.c.bf16 %v6582_v15, %v6581_v28  ;;  %v6409_v28 = vmax.f32 %v6345_v31, 0.0  ;;  %v6594_v15 = vld [vmem:[%s21769_s3 + $0x4f8] sm:$0xff]  ;;  %v6348_v31 = vadd.f32 %v20814_v6, %v20229_v44  ;;  %v6605_v44 = vld [vmem:[%s21769_s3 + $0x550] sm:$0xff] }
 0x6b6   :  { %16514 = vmatpush3.bf16.xpose.msk.msra.mxu1 %vm19824_vm3, %v16512_v10  ;;  %15887 = vmatprep.mubr.msk.f32.mxu1 %vm17291_vm4, %v21908_v3 }
 0x6b7   :  { %16515 = vmatprep.subr.bf16.mxu1 %v21909_v5 }
 0x6b8   :  { %v8473_v2 = vpop.f32.mrb[68].mxu1 }
 0x6b9   :  { %v12172_v7 = vsel %vm12132_vm5, %v8473_v2, 0.0  ;;  %v15735_v13 = vpop.f32.mrb[69].mxu1  ;;  %v6584_v2 = vld [vmem:[%s21769_s3 + $0x4a8] sm:$0xff] }
 0x6ba   :  { %v12173_v59 = vadd.f32 %v12172_v7, %v12171_v26  ;;  %v6406_v26 = vmax.f32 %v6342_v40, 0.0  ;;  %v16536_v7 = vpack.c.bf16 %v6584_v2, %v6583_v42  ;;  %v6407_v13 = vmax.f32 %v6343_v20, 0.0  ;;  %v21921_v20 = vld [vmem:[#allocation13_spill] sm:$0xff]  ;;  %v6595_v2 = vld [vmem:[%s21769_s3 + $0x500] sm:$0xff] }
 0x6bb   :  { %v6346_v42 = vadd.f32 %v20814_v6, %v21921_v20  ;;  %v6607_v20 = vld [vmem:[%s21769_s3 + $0x560] sm:$0xff] }
 0x6be   :  { %16518 = vmatpush3.bf16.xpose.msk.msra.mxu1 %vm19824_vm3, %v16516_v24 }
 0x6bf   :  { %16519 = vmatprep.subr.bf16.mxu1 %v21909_v5 }
 0x6c5   :  { %15888 = vmatmul.mubr.msk.f32.vlgmr.msra.gmra.mrb[96].mxu1 %vm6691_vm2, %v6405_v63  ;;  %v6587_v63 = vld [vmem:[%s21769_s3 + $0x4c0] sm:$0xff] }
 0x6c6   :  { %16522 = vmatpush3.bf16.xpose.msk.msra.mxu1 %vm19824_vm3, %v16520_v36  ;;  %15898 = vmatprep.mubr.msk.f32.mxu1 %vm17291_vm4, %v21908_v3  ;;  %v6344_v36 = vadd.f32 %v20814_v6, %v20206_v8  ;;  %v16544_v17 = vpack.c.bf16 %v6588_v53, %v6587_v63  ;;  %v6589_v8 = vld [vmem:[%s21769_s3 + $0x4d0] sm:$0xff]  ;;  %v6347_v63 = vadd.f32 %v20814_v6, %v20232_v21  ;;  %v6599_v53 = vld [vmem:[%s21769_s3 + $0x520] sm:$0xff] }
 0x6c7   :  { %16523 = vmatprep.subr.bf16.mxu1 %v21909_v5  ;;  %v6601_v21 = vld [vmem:[%s21769_s3 + $0x530] sm:$0xff] }
 0x6c8   :  { %v8558_v52 = vpop.f32.mrb[70].mxu1 }
 0x6c9   :  { %v12174_v57 = vsel %vm12132_vm5, %v8558_v52, 0.0  ;;  %v15746_v1 = vpop.f32.mrb[71].mxu1  ;;  %v6408_v52 = vmax.f32 %v6344_v36, 0.0 }
 0x6ca   :  { %v12175_v12 = vadd.f32 %v12174_v57, %v12173_v59  ;;  %v6586_v59 = vld [vmem:[%s21769_s3 + $0x4b8] sm:$0xff] }
 0x6cb   :  { %v16540_v51 = vpack.c.bf16 %v6586_v59, %v6585_v55  ;;  %v6590_v57 = vld [vmem:[%s21769_s3 + $0x4d8] sm:$0xff]  ;;  %v6410_v55 = vmax.f32 %v6346_v42, 0.0  ;;  %v6597_v59 = vld [vmem:[%s21769_s3 + $0x510] sm:$0xff]  ;;  %v6608_v42 = vld [vmem:[%s21769_s3 + $0x568] sm:$0xff] }
 0x6cc   :  { %v16548_v40 = vpack.c.bf16 %v6590_v57, %v6589_v8  ;;  %v6411_v8 = vmax.f32 %v6347_v63, 0.0  ;;  %v6602_v57 = vld [vmem:[%s21769_s3 + $0x538] sm:$0xff] }
 0x6ce   :  { %16526 = vmatpush3.bf16.xpose.msk.msra.mxu1 %vm19824_vm3, %v16524_v19 }
 0x6cf   :  { %16527 = vmatprep.subr.bf16.mxu1 %v21909_v5 }
 0x6d5   :  { %15899 = vmatmul.mubr.msk.f32.vlgmr.msra.gmra.mrb[98].mxu1 %vm6691_vm2, %v6406_v26 }
 0x6d6   :  { %16530 = vmatpush3.bf16.xpose.msk.msra.mxu1 %vm19824_vm3, %v16528_v14  ;;  %15909 = vmatprep.mubr.msk.f32.mxu1 %vm17291_vm4, %v21908_v3  ;;  %v6592_v14 = vld [vmem:[%s21769_s3 + $0x4e8] sm:$0xff] }
 0x6d7   :  { %16531 = vmatprep.subr.bf16.mxu1 %v21909_v5  ;;  %v16552_v26 = vpack.c.bf16 %v6592_v14, %v6591_v45  ;;  %v6603_v45 = vld [vmem:[%s21769_s3 + $0x540] sm:$0xff]  ;;  %v6604_v14 = vld [vmem:[%s21769_s3 + $0x548] sm:$0xff] }
 0x6d8   :  { %v8643_v37 = vpop.f32.mrb[72].mxu1 }
 0x6d9   :  { %v12176_v30 = vsel %vm12132_vm5, %v8643_v37, 0.0  ;;  %v15757_v27 = vpop.f32.mrb[73].mxu1 }
 0x6da   :  { %v12177_v10 = vadd.f32 %v12176_v30, %v12175_v12 }
 0x6de   :  { %16534 = vmatpush3.bf16.xpose.msk.msra.mxu1 %vm19824_vm3, %v16532_v9  ;;  %v16556_v9 = vpack.c.bf16 %v6594_v15, %v6593_v4  ;;  %v6606_v4 = vld [vmem:[%s21769_s3 + $0x558] sm:$0xff] }
 0x6df   :  { %16535 = vmatprep.subr.bf16.mxu1 %v21909_v5 }
 0x6e5   :  { %15910 = vmatmul.mubr.msk.f32.vlgmr.msra.gmra.mrb[100].mxu1 %vm6691_vm2, %v6407_v13 }
 0x6e6   :  { %16538 = vmatpush3.bf16.xpose.msk.msra.mxu1 %vm19824_vm3, %v16536_v7  ;;  %15920 = vmatprep.mubr.msk.f32.mxu1 %vm17291_vm4, %v21908_v3  ;;  %v6596_v7 = vld [vmem:[%s21769_s3 + $0x508] sm:$0xff] }
 0x6e7   :  { %16539 = vmatprep.subr.bf16.mxu1 %v21909_v5  ;;  %v16560_v13 = vpack.c.bf16 %v6596_v7, %v6595_v2  ;;  %v16584_v2 = vpack.c.bf16 %v6608_v42, %v6607_v20 }
 0x6e8   :  { %v8728_v24 = vpop.f32.mrb[74].mxu1 }
 0x6e9   :  { %v12178_v34 = vsel %vm12132_vm5, %v8728_v24, 0.0  ;;  %v15768_v54 = vpop.f32.mrb[75].mxu1  ;;  %v6598_v24 = vld [vmem:[%s21769_s3 + $0x518] sm:$0xff] }
 0x6ea   :  { %v12179_v38 = vadd.f32 %v12178_v34, %v12177_v10  ;;  %v16564_v36 = vpack.c.bf16 %v6598_v24, %v6597_v59 }
 0x6ee   :  { %16542 = vmatpush3.bf16.xpose.msk.msra.mxu1 %vm19824_vm3, %v16540_v51 }
 0x6ef   :  { %16543 = vmatprep.subr.bf16.mxu1 %v21909_v5 }
 0x6f5   :  { %15921 = vmatmul.mubr.msk.f32.vlgmr.msra.gmra.mrb[102].mxu1 %vm6691_vm2, %v6408_v52 }
 0x6f6   :  { %16546 = vmatpush3.bf16.xpose.msk.msra.mxu1 %vm19824_vm3, %v16544_v17  ;;  %15931 = vmatprep.mubr.msk.f32.mxu1 %vm17291_vm4, %v21908_v3  ;;  %v6600_v17 = vld [vmem:[%s21769_s3 + $0x528] sm:$0xff] }
 0x6f7   :  { %16547 = vmatprep.subr.bf16.mxu1 %v21909_v5  ;;  %v16568_v52 = vpack.c.bf16 %v6600_v17, %v6599_v53  ;;  %v6614_v17 = vld [vmem:[%s21769_s3 + $0x598] sm:$0xff] }
 0x6f8   :  { %v8813_v1 = vpop.f32.mrb[76].mxu1 }
 0x6f9   :  { %v12180_v12 = vsel %vm12132_vm5, %v8813_v1, 0.0  ;;  %v15779_v19 = vpop.f32.mrb[77].mxu1 }
 0x6fa   :  { %v12181_v56 = vadd.f32 %v12180_v12, %v12179_v38 }
 0x6fe   :  { %16550 = vmatpush3.bf16.xpose.msk.msra.mxu1 %vm19824_vm3, %v16548_v40  ;;  %v16572_v40 = vpack.c.bf16 %v6602_v57, %v6601_v21 }
 0x6ff   :  { %16551 = vmatprep.subr.bf16.mxu1 %v21909_v5 }
 0x705   :  { %15932 = vmatmul.mubr.msk.f32.vlgmr.msra.gmra.mrb[104].mxu1 %vm6691_vm2, %v6409_v28  ;;  %v6412_v28 = vmax.f32 %v6348_v31, 0.0 }
 0x706   :  { %16554 = vmatpush3.bf16.xpose.msk.msra.mxu1 %vm19824_vm3, %v16552_v26  ;;  %15942 = vmatprep.mubr.msk.f32.mxu1 %vm17291_vm4, %v21908_v3  ;;  %v16576_v26 = vpack.c.bf16 %v6604_v14, %v6603_v45  ;;  %v6618_v45 = vld [vmem:[%s21769_s3 + $0x5b8] sm:$0xff] }
 0x707   :  { %16555 = vmatprep.subr.bf16.mxu1 %v21909_v5 }
 0x708   :  { %v8898_v37 = vpop.f32.mrb[78].mxu1 }
 0x709   :  { %v12182_v30 = vsel %vm12132_vm5, %v8898_v37, 0.0  ;;  %v15790_v27 = vpop.f32.mrb[79].mxu1 }
 0x70a   :  { %v12183_v10 = vadd.f32 %v12182_v30, %v12181_v56 }
 0x70e   :  { %16558 = vmatpush3.bf16.xpose.msk.msra.mxu1 %vm19824_vm3, %v16556_v9  ;;  %v6349_v9 = vadd.f32 %v20814_v6, %v20238_v11  ;;  %v6609_v11 = vld [vmem:[%s21769_s3 + $0x570] sm:$0xff] }
 0x70f   :  { %16559 = vmatprep.subr.bf16.mxu1 %v21909_v5 }
 0x710   :  { %v6413_v7 = vmax.f32 %v6349_v9, 0.0  ;;  %v6622_v9 = vld [vmem:[%s21769_s3 + $0x5d8] sm:$0xff] }
 0x715   :  { %15943 = vmatmul.mubr.msk.f32.vlgmr.msra.gmra.mrb[106].mxu1 %vm6691_vm2, %v6410_v55 }
 0x716   :  { %16562 = vmatpush3.bf16.xpose.msk.msra.mxu1 %vm19824_vm3, %v16560_v13  ;;  %15953 = vmatprep.mubr.msk.f32.mxu1 %vm17291_vm4, %v21908_v3  ;;  %v6610_v13 = vld [vmem:[%s21769_s3 + $0x578] sm:$0xff] }
 0x717   :  { %16563 = vmatprep.subr.bf16.mxu1 %v21909_v5 }
 0x718   :  { %v8983_v34 = vpop.f32.mrb[80].mxu1 }
 0x719   :  { %v12184_v54 = vsel %vm12132_vm5, %v8983_v34, 0.0  ;;  %v15801_v38 = vpop.f32.mrb[81].mxu1 }
 0x71a   :  { %v12185_v51 = vadd.f32 %v12184_v54, %v12183_v10  ;;  %v16580_v10 = vpack.c.bf16 %v6606_v4, %v6605_v44  ;;  %v16588_v54 = vpack.c.bf16 %v6610_v13, %v6609_v11  ;;  %v6350_v38 = vadd.f32 %v20814_v6, %v20235_v60  ;;  %v6613_v60 = vld [vmem:[%s21769_s3 + $0x590] sm:$0xff] }
 0x71b   :  { %v6353_v13 = vadd.f32 %v20814_v6, %v20262_v0  ;;  %v6625_v0 = vld [vmem:[%s21769_s3 + $0x5f0] sm:$0xff] }
 0x71c   :  { %v6414_v53 = vmax.f32 %v6350_v38, 0.0 }
 0x71e   :  { %16566 = vmatpush3.bf16.xpose.msk.msra.mxu1 %vm19824_vm3, %v16564_v36  ;;  %v6612_v36 = vld [vmem:[%s21769_s3 + $0x588] sm:$0xff] }
 0x71f   :  { %16567 = vmatprep.subr.bf16.mxu1 %v21909_v5 }
 0x725   :  { %15954 = vmatmul.mubr.msk.f32.vlgmr.msra.gmra.mrb[108].mxu1 %vm6691_vm2, %v6411_v8 }
 0x726   :  { %16570 = vmatpush3.bf16.xpose.msk.msra.mxu1 %vm19824_vm3, %v16568_v52  ;;  %15964 = vmatprep.mubr.msk.f32.mxu1 %vm17291_vm4, %v21908_v3 }
 0x727   :  { %16571 = vmatprep.subr.bf16.mxu1 %v21909_v5 }
 0x728   :  { %v9068_v1 = vpop.f32.mrb[82].mxu1 }
 0x729   :  { %v12186_v12 = vsel %vm12132_vm5, %v9068_v1, 0.0  ;;  %v15812_v19 = vpop.f32.mrb[83].mxu1  ;;  %v16596_v1 = vpack.c.bf16 %v6614_v17, %v6613_v60  ;;  %v6354_v60 = vadd.f32 %v20814_v6, %v20259_v61  ;;  %v6627_v17 = vld [vmem:[%s21769_s3 + $0x600] sm:$0xff]  ;;  %v6629_v61 = vld [vmem:[%s21769_s3 + $0x610] sm:$0xff] }
 0x72a   :  { %v12187_v56 = vadd.f32 %v12186_v12, %v12185_v51  ;;  %v6611_v51 = vld [vmem:[%s21769_s3 + $0x580] sm:$0xff]  ;;  %v6351_v12 = vadd.f32 %v20814_v6, %v20256_v41  ;;  %v6617_v41 = vld [vmem:[%s21769_s3 + $0x5b0] sm:$0xff] }
 0x72b   :  { %v16592_v63 = vpack.c.bf16 %v6612_v36, %v6611_v51  ;;  %v6615_v19 = vld [vmem:[%s21769_s3 + $0x5a0] sm:$0xff]  ;;  %v16604_v4 = vpack.c.bf16 %v6618_v45, %v6617_v41  ;;  %v6632_v45 = vld [vmem:[%s21769_s3 + $0x628] sm:$0xff] }
 0x72c   :  { %v6415_v31 = vmax.f32 %v6351_v12, 0.0  ;;  %v6631_v41 = vld [vmem:[%s21769_s3 + $0x620] sm:$0xff] }
 0x72e   :  { %16574 = vmatpush3.bf16.xpose.msk.msra.mxu1 %vm19824_vm3, %v16572_v40 }
 0x72f   :  { %16575 = vmatprep.subr.bf16.mxu1 %v21909_v5 }
 0x735   :  { %15965 = vmatmul.mubr.msk.f32.vlgmr.msra.gmra.mrb[110].mxu1 %vm6691_vm2, %v6412_v28 }
 0x736   :  { %16578 = vmatpush3.bf16.xpose.msk.msra.mxu1 %vm19824_vm3, %v16576_v26  ;;  %15975 = vmatprep.mubr.msk.f32.mxu1 %vm17291_vm4, %v21908_v3 }
 0x737   :  { %16579 = vmatprep.subr.bf16.mxu1 %v21909_v5 }
 0x738   :  { %v9153_v15 = vpop.f32.mrb[84].mxu1 }
 0x739   :  { %v12188_v37 = vsel %vm12132_vm5, %v9153_v15, 0.0  ;;  %v15823_v30 = vpop.f32.mrb[85].mxu1  ;;  %v6352_v15 = vadd.f32 %v20814_v6, %v20253_v49  ;;  %v6621_v49 = vld [vmem:[%s21769_s3 + $0x5d0] sm:$0xff] }
 0x73a   :  { %v12189_v27 = vadd.f32 %v12188_v37, %v12187_v56  ;;  %v6616_v56 = vld [vmem:[%s21769_s3 + $0x5a8] sm:$0xff]  ;;  %v6619_v37 = vld [vmem:[%s21769_s3 + $0x5c0] sm:$0xff]  ;;  %v16612_v11 = vpack.c.bf16 %v6622_v9, %v6621_v49 }
 0x73b   :  { %v16600_v40 = vpack.c.bf16 %v6616_v56, %v6615_v19  ;;  %v6620_v30 = vld [vmem:[%s21769_s3 + $0x5c8] sm:$0xff] }
 0x73c   :  { %v6636_v49 = vld [vmem:[%s21769_s3 + $0x648] sm:$0xff] }
 0x73e   :  { %16582 = vmatpush3.bf16.xpose.msk.msra.mxu1 %vm19824_vm3, %v16580_v10  ;;  %v6416_v10 = vmax.f32 %v6352_v15, 0.0 }
 0x73f   :  { %16583 = vmatprep.subr.bf16.mxu1 %v21909_v5 }
 0x745   :  { %15976 = vmatmul.mubr.msk.f32.vlgmr.msra.gmra.mrb[112].mxu1 %vm6691_vm2, %v6413_v7 }
 0x746   :  { %16586 = vmatpush3.bf16.xpose.msk.msra.mxu1 %vm19824_vm3, %v16584_v2  ;;  %15986 = vmatprep.mubr.msk.f32.mxu1 %vm17291_vm4, %v21908_v3 }
 0x747   :  { %16587 = vmatprep.subr.bf16.mxu1 %v21909_v5 }
 0x748   :  { %v9238_v55 = vpop.f32.mrb[86].mxu1 }
 0x749   :  { %v12190_v59 = vsel %vm12132_vm5, %v9238_v55, 0.0  ;;  %v15834_v24 = vpop.f32.mrb[87].mxu1  ;;  %v6623_v55 = vld [vmem:[%s21769_s3 + $0x5e0] sm:$0xff] }
 0x74a   :  { %v12191_v34 = vadd.f32 %v12190_v59, %v12189_v27  ;;  %v16608_v27 = vpack.c.bf16 %v6620_v30, %v6619_v37  ;;  %v6624_v59 = vld [vmem:[%s21769_s3 + $0x5e8] sm:$0xff] }
 0x74b   :  { %v16616_v24 = vpack.c.bf16 %v6624_v59, %v6623_v55  ;;  %v6357_v59 = vadd.f32 %v20814_v6, %v20285_v43  ;;  %v6641_v43 = vld [vmem:[%s21769_s3 + $0x670] sm:$0xff] }
 0x74e   :  { %16590 = vmatpush3.bf16.xpose.msk.msra.mxu1 %vm19824_vm3, %v16588_v54  ;;  %v6626_v54 = vld [vmem:[%s21769_s3 + $0x5f8] sm:$0xff] }
 0x74f   :  { %16591 = vmatprep.subr.bf16.mxu1 %v21909_v5 }
 0x755   :  { %15987 = vmatmul.mubr.msk.f32.vlgmr.msra.gmra.mrb[114].mxu1 %vm6691_vm2, %v6414_v53  ;;  %v16620_v53 = vpack.c.bf16 %v6626_v54, %v6625_v0  ;;  %v6421_v54 = vmax.f32 %v6357_v59, 0.0  ;;  %v6656_v59 = vld [vmem:[%s21769_s3 + $0x6e8] sm:$0xff] }
 0x756   :  { %16594 = vmatpush3.bf16.xpose.msk.msra.mxu1 %vm19824_vm3, %v16592_v63  ;;  %15997 = vmatprep.mubr.msk.f32.mxu1 %vm17291_vm4, %v21908_v3 }
 0x757   :  { %16595 = vmatprep.subr.bf16.mxu1 %v21909_v5 }
 0x758   :  { %v9323_v52 = vpop.f32.mrb[88].mxu1 }
 0x759   :  { %v12192_v8 = vsel %vm12132_vm5, %v9323_v52, 0.0  ;;  %v15845_v21 = vpop.f32.mrb[89].mxu1  ;;  %v6628_v52 = vld [vmem:[%s21769_s3 + $0x608] sm:$0xff] }
 0x75a   :  { %v12193_v57 = vadd.f32 %v12192_v8, %v12191_v34  ;;  %v6417_v34 = vmax.f32 %v6353_v13, 0.0  ;;  %v16624_v8 = vpack.c.bf16 %v6628_v52, %v6627_v17  ;;  %v6418_v21 = vmax.f32 %v6354_v60, 0.0  ;;  %v6643_v52 = vld [vmem:[%s21769_s3 + $0x680] sm:$0xff] }
 0x75b   :  { %v6358_v17 = vadd.f32 %v20814_v6, %v20282_v29  ;;  %v6645_v29 = vld [vmem:[%s21769_s3 + $0x690] sm:$0xff] }
 0x75e   :  { %16598 = vmatpush3.bf16.xpose.msk.msra.mxu1 %vm19824_vm3, %v16596_v1 }
 0x75f   :  { %16599 = vmatprep.subr.bf16.mxu1 %v21909_v5 }
 0x765   :  { %15998 = vmatmul.mubr.msk.f32.vlgmr.msra.gmra.mrb[116].mxu1 %vm6691_vm2, %v6415_v31  ;;  %v6355_v31 = vadd.f32 %v20814_v6, %v20279_v46  ;;  %v6633_v46 = vld [vmem:[%s21769_s3 + $0x630] sm:$0xff] }
 0x766   :  { %16602 = vmatpush3.bf16.xpose.msk.msra.mxu1 %vm19824_vm3, %v16600_v40  ;;  %16008 = vmatprep.mubr.msk.f32.mxu1 %vm17291_vm4, %v21908_v3 }
 0x767   :  { %16603 = vmatprep.subr.bf16.mxu1 %v21909_v5 }
 0x768   :  { %v9408_v14 = vpop.f32.mrb[90].mxu1 }
 0x769   :  { %v12194_v26 = vsel %vm12132_vm5, %v9408_v14, 0.0  ;;  %v15856_v28 = vpop.f32.mrb[91].mxu1  ;;  %v16632_v14 = vpack.c.bf16 %v6632_v45, %v6631_v41  ;;  %v6647_v41 = vld [vmem:[%s21769_s3 + $0x6a0] sm:$0xff]  ;;  %v6648_v45 = vld [vmem:[%s21769_s3 + $0x6a8] sm:$0xff] }
 0x76a   :  { %v12195_v44 = vadd.f32 %v12194_v26, %v12193_v57  ;;  %v6630_v57 = vld [vmem:[%s21769_s3 + $0x618] sm:$0xff]  ;;  %v6419_v26 = vmax.f32 %v6355_v31, 0.0  ;;  %v6359_v31 = vadd.f32 %v20814_v6, %v20303_v50  ;;  %v6649_v50 = vld [vmem:[%s21769_s3 + $0x6b0] sm:$0xff] }
 0x76b   :  { %v16628_v40 = vpack.c.bf16 %v6630_v57, %v6629_v61  ;;  %v6634_v28 = vld [vmem:[%s21769_s3 + $0x638] sm:$0xff]  ;;  %v6422_v61 = vmax.f32 %v6358_v17, 0.0 }
 0x76c   :  { %v16636_v30 = vpack.c.bf16 %v6634_v28, %v6633_v46  ;;  %v6646_v57 = vld [vmem:[%s21769_s3 + $0x698] sm:$0xff] }
 0x76d   :  { %v6650_v46 = vld [vmem:[%s21769_s3 + $0x6b8] sm:$0xff] }
 0x76e   :  { %16606 = vmatpush3.bf16.xpose.msk.msra.mxu1 %vm19824_vm3, %v16604_v4 }
 0x76f   :  { %16607 = vmatprep.subr.bf16.mxu1 %v21909_v5 }
 0x775   :  { %16009 = vmatmul.mubr.msk.f32.vlgmr.msra.gmra.mrb[118].mxu1 %vm6691_vm2, %v6416_v10  ;;  %v6635_v10 = vld [vmem:[%s21769_s3 + $0x640] sm:$0xff] }
 0x776   :  { %16610 = vmatpush3.bf16.xpose.msk.msra.mxu1 %vm19824_vm3, %v16608_v27  ;;  %16019 = vmatprep.mubr.msk.f32.mxu1 %vm17291_vm4, %v21908_v3  ;;  %v6356_v27 = vadd.f32 %v20814_v6, %v20276_v23  ;;  %v16640_v9 = vpack.c.bf16 %v6636_v49, %v6635_v10  ;;  %v6637_v23 = vld [vmem:[%s21769_s3 + $0x650] sm:$0xff]  ;;  %v6652_v10 = vld [vmem:[%s21769_s3 + $0x6c8] sm:$0xff] }
 0x777   :  { %16611 = vmatprep.subr.bf16.mxu1 %v21909_v5 }
 0x778   :  { %v9493_v20 = vpop.f32.mrb[92].mxu1 }
 0x779   :  { %v12196_v42 = vsel %vm12132_vm5, %v9493_v20, 0.0  ;;  %v15867_v2 = vpop.f32.mrb[93].mxu1  ;;  %v6420_v20 = vmax.f32 %v6356_v27, 0.0  ;;  %v6651_v27 = vld [vmem:[%s21769_s3 + $0x6c0] sm:$0xff] }
 0x77a   :  { %v12197_v7 = vadd.f32 %v12196_v42, %v12195_v44  ;;  %v6638_v42 = vld [vmem:[%s21769_s3 + $0x658] sm:$0xff]  ;;  %v16672_v49 = vpack.c.bf16 %v6652_v10, %v6651_v27 }
 0x77b   :  { %v16644_v55 = vpack.c.bf16 %v6638_v42, %v6637_v23 }
 0x77e   :  { %16614 = vmatpush3.bf16.xpose.msk.msra.mxu1 %vm19824_vm3, %v16612_v11 }
 0x77f   :  { %16615 = vmatprep.subr.bf16.mxu1 %v21909_v5 }
 0x785   :  { %16020 = vmatmul.mubr.msk.f32.vlgmr.msra.gmra.mrb[120].mxu1 %vm6691_vm2, %v6417_v34  ;;  %v6640_v34 = vld [vmem:[%s21769_s3 + $0x668] sm:$0xff] }
 0x786   :  { %16618 = vmatpush3.bf16.xpose.msk.msra.mxu1 %vm19824_vm3, %v16616_v24  ;;  %16030 = vmatprep.mubr.msk.f32.mxu1 %vm17291_vm4, %v21908_v3  ;;  %v6639_v24 = vld [vmem:[%s21769_s3 + $0x660] sm:$0xff] }
 0x787   :  { %16619 = vmatprep.subr.bf16.mxu1 %v21909_v5  ;;  %v16648_v0 = vpack.c.bf16 %v6640_v34, %v6639_v24 }
 0x788   :  { %v9578_v38 = vpop.f32.mrb[94].mxu1 }
 0x789   :  { %v12198_v51 = vsel %vm12132_vm5, %v9578_v38, 0.0  ;;  %v15878_v36 = vpop.f32.mrb[95].mxu1  ;;  %v6642_v38 = vld [vmem:[%s21769_s3 + $0x678] sm:$0xff] }
 0x78a   :  { %v12199_v63 = vadd.f32 %v12198_v51, %v12197_v7  ;;  %v16652_v60 = vpack.c.bf16 %v6642_v38, %v6641_v43 }
 0x78e   :  { %16622 = vmatpush3.bf16.xpose.msk.msra.mxu1 %vm19824_vm3, %v16620_v53 }
 0x78f   :  { %16623 = vmatprep.subr.bf16.mxu1 %v21909_v5 }
 0x795   :  { %16031 = vmatmul.mubr.msk.f32.vlgmr.msra.gmra.mrb[122].mxu1 %vm6691_vm2, %v6418_v21 }
 0x796   :  { %16626 = vmatpush3.bf16.xpose.msk.msra.mxu1 %vm19824_vm3, %v16624_v8  ;;  %16041 = vmatprep.mubr.msk.f32.mxu1 %vm17291_vm4, %v21908_v3  ;;  %v6644_v8 = vld [vmem:[%s21769_s3 + $0x688] sm:$0xff] }
 0x797   :  { %16627 = vmatprep.subr.bf16.mxu1 %v21909_v5  ;;  %v16656_v21 = vpack.c.bf16 %v6644_v8, %v6643_v52 }
 0x798   :  { %v9663_v1 = vpop.f32.mrb[96].mxu1 }
 0x799   :  { %v12200_v12 = vsel %vm12132_vm5, %v9663_v1, 0.0  ;;  %v15889_v19 = vpop.f32.mrb[97].mxu1 }
 0x79a   :  { %v12201_v56 = vadd.f32 %v12200_v12, %v12199_v63 }
 0x79e   :  { %16630 = vmatpush3.bf16.xpose.msk.msra.mxu1 %vm19824_vm3, %v16628_v40  ;;  %v16660_v40 = vpack.c.bf16 %v6646_v57, %v6645_v29 }
 0x79f   :  { %16631 = vmatprep.subr.bf16.mxu1 %v21909_v5 }
 0x7a5   :  { %16042 = vmatmul.mubr.msk.f32.vlgmr.msra.gmra.mrb[124].mxu1 %vm6691_vm2, %v6419_v26  ;;  %v6423_v26 = vmax.f32 %v6359_v31, 0.0 }
 0x7a6   :  { %16634 = vmatpush3.bf16.xpose.msk.msra.mxu1 %vm19824_vm3, %v16632_v14  ;;  %16052 = vmatprep.mubr.msk.f32.mxu1 %vm17291_vm4, %v21908_v3  ;;  %v16664_v14 = vpack.c.bf16 %v6648_v45, %v6647_v41  ;;  %v6666_v41 = vld [vmem:[%s21769_s3 + $0x738] sm:$0xff] }
 0x7a7   :  { %16635 = vmatprep.subr.bf16.mxu1 %v21909_v5 }
 0x7a8   :  { %v9748_v44 = vpop.f32.mrb[98].mxu1 }
 0x7a9   :  { %v12202_v4 = vsel %vm12132_vm5, %v9748_v44, 0.0  ;;  %v15900_v15 = vpop.f32.mrb[99].mxu1 }
 0x7aa   :  { %v12203_v37 = vadd.f32 %v12202_v4, %v12201_v56 }
 0x7ae   :  { %16638 = vmatpush3.bf16.xpose.msk.msra.mxu1 %vm19824_vm3, %v16636_v30  ;;  %v6360_v30 = vadd.f32 %v20814_v6, %v20300_v18  ;;  %v6653_v18 = vld [vmem:[%s21769_s3 + $0x6d0] sm:$0xff] }
 0x7af   :  { %16639 = vmatprep.subr.bf16.mxu1 %v21909_v5 }
 0x7b5   :  { %16053 = vmatmul.mubr.msk.f32.vlgmr.msra.gmra.mrb[126].mxu1 %vm6691_vm2, %v6420_v20  ;;  %v6654_v20 = vld [vmem:[%s21769_s3 + $0x6d8] sm:$0xff] }
 0x7b6   :  { %16642 = vmatpush3.bf16.xpose.msk.msra.mxu1 %vm19824_vm3, %v16640_v9  ;;  %16063 = vmatprep.mubr.msk.f32.mxu1 %vm17291_vm4, %v21908_v3  ;;  %v6424_v9 = vmax.f32 %v6360_v30, 0.0  ;;  %v6670_v30 = vld [vmem:[%s21769_s3 + $0x758] sm:$0xff] }
 0x7b7   :  { %16643 = vmatprep.subr.bf16.mxu1 %v21909_v5 }
 0x7b8   :  { %v9833_v2 = vpop.f32.mrb[100].mxu1 }
 0x7b9   :  { %v12204_v7 = vsel %vm12132_vm5, %v9833_v2, 0.0  ;;  %v15911_v11 = vpop.f32.mrb[101].mxu1 }
 0x7ba   :  { %v12205_v13 = vadd.f32 %v12204_v7, %v12203_v37  ;;  %v16668_v37 = vpack.c.bf16 %v6650_v46, %v6649_v50  ;;  %v16676_v11 = vpack.c.bf16 %v6654_v20, %v6653_v18 }
 0x7be   :  { %16646 = vmatpush3.bf16.xpose.msk.msra.mxu1 %vm19824_vm3, %v16644_v55  ;;  %v6655_v55 = vld [vmem:[%s21769_s3 + $0x6e0] sm:$0xff] }
 0x7bf   :  { %16647 = vmatprep.subr.bf16.mxu1 %v21909_v5  ;;  %v16680_v24 = vpack.c.bf16 %v6656_v59, %v6655_v55 }
 0x7c5   :  { %16064 = vmatmul.mubr.msk.f32.vlgmr.msra.gmra.mrb[128].mxu1 %vm6691_vm2, %v6421_v54 }
 0x7c6   :  { %16650 = vmatpush3.bf16.xpose.msk.msra.mxu1 %vm19824_vm3, %v16648_v0  ;;  %16074 = vmatprep.mubr.msk.f32.mxu1 %vm17291_vm4, %v21908_v3  ;;  %v6658_v0 = vld [vmem:[%s21769_s3 + $0x6f8] sm:$0xff] }
 0x7c7   :  { %16651 = vmatprep.subr.bf16.mxu1 %v21909_v5 }
 0x7c8   :  { %v9918_v51 = vpop.f32.mrb[102].mxu1 }
 0x7c9   :  { %v12206_v36 = vsel %vm12132_vm5, %v9918_v51, 0.0  ;;  %v15922_v63 = vpop.f32.mrb[103].mxu1 }
 0x7ca   :  { %v12207_v53 = vadd.f32 %v12206_v36, %v12205_v13  ;;  %v6361_v13 = vadd.f32 %v20814_v6, %v20309_v47  ;;  %v6657_v47 = vld [vmem:[%s21769_s3 + $0x6f0] sm:$0xff]  ;;  %v6362_v63 = vadd.f32 %v20814_v6, %v20306_v35  ;;  %v6662_v6 = vld [vmem:[%s21769_s3 + $0x718] sm:$0xff] }
 0x7cb   :  { %v16684_v36 = vpack.c.bf16 %v6658_v0, %v6657_v47  ;;  %v6661_v35 = vld [vmem:[%s21769_s3 + $0x710] sm:$0xff]  ;;  %v6675_v0 = vld [vmem:[%s21769_s3 + $0x780] sm:$0xff] }
 0x7cc   :  { %v6425_v34 = vmax.f32 %v6361_v13, 0.0  ;;  %v6426_v52 = vmax.f32 %v6362_v63, 0.0  ;;  %v16692_v57 = vpack.c.bf16 %v6662_v6, %v6661_v35  ;;  %v6679_v35 = vld [vmem:[%s21769_s3 + $0x7a0] sm:$0xff]  ;;  %v6680_v6 = vld [vmem:[%s21769_s3 + $0x7a8] sm:$0xff] }
 0x7ce   :  { %16654 = vmatpush3.bf16.xpose.msk.msra.mxu1 %vm19824_vm3, %v16652_v60  ;;  %v6660_v60 = vld [vmem:[%s21769_s3 + $0x708] sm:$0xff] }
 0x7cf   :  { %16655 = vmatprep.subr.bf16.mxu1 %v21909_v5 }
 0x7d5   :  { %16075 = vmatmul.mubr.msk.f32.vlgmr.msra.gmra.mrb[130].mxu1 %vm6691_vm2, %v6422_v61 }
 0x7d6   :  { %16658 = vmatpush3.bf16.xpose.msk.msra.mxu1 %vm19824_vm3, %v16656_v21  ;;  %16085 = vmatprep.mubr.msk.f32.mxu1 %vm17291_vm4, %v21908_v3 }
 0x7d7   :  { %16659 = vmatprep.subr.bf16.mxu1 %v21909_v5 }
 0x7d8   :  { %v10003_v1 = vpop.f32.mrb[104].mxu1 }
 0x7d9   :  { %v12208_v12 = vsel %vm12132_vm5, %v10003_v1, 0.0  ;;  %v15933_v19 = vpop.f32.mrb[105].mxu1  ;;  %v21515_v1 = vld [vmem:[%s21770_s2] ss:$0 sm:$0xff] }
 0x7da   :  { %v12209_v56 = vadd.f32 %v12208_v12, %v12207_v53  ;;  %v6659_v53 = vld [vmem:[%s21769_s3 + $0x700] sm:$0xff]  ;;  %v6363_v12 = vadd.f32 %v21515_v1, %v20326_v39  ;;  %v6665_v39 = vld [vmem:[%s21769_s3 + $0x730] sm:$0xff]  ;;  %v6365_v20 = vadd.f32 %v21515_v1, %v20332_v62  ;;  %v6366_v47 = vadd.f32 %v21515_v1, %v20329_v16 }
 0x7db   :  { %v16688_v17 = vpack.c.bf16 %v6660_v60, %v6659_v53  ;;  %v6663_v19 = vld [vmem:[%s21769_s3 + $0x720] sm:$0xff]  ;;  %v16700_v46 = vpack.c.bf16 %v6666_v41, %v6665_v39  ;;  %v6673_v62 = vld [vmem:[%s21769_s3 + $0x770] sm:$0xff]  ;;  %v6684_v39 = vld [vmem:[%s21769_s3 + $0x7c8] sm:$0xff] }
 0x7dc   :  { %v6427_v31 = vmax.f32 %v6363_v12, 0.0  ;;  %v6677_v16 = vld [vmem:[%s21769_s3 + $0x790] sm:$0xff] }
 0x7de   :  { %16662 = vmatpush3.bf16.xpose.msk.msra.mxu1 %vm19824_vm3, %v16660_v40 }
 0x7df   :  { %16663 = vmatprep.subr.bf16.mxu1 %v21909_v5 }
 0x7e5   :  { %16086 = vmatmul.mubr.msk.f32.vlgmr.msra.gmra.mrb[132].mxu1 %vm6691_vm2, %v6423_v26 }
 0x7e6   :  { %16666 = vmatpush3.bf16.xpose.msk.msra.mxu1 %vm19824_vm3, %v16664_v14  ;;  %16096 = vmatprep.mubr.msk.f32.mxu1 %vm17291_vm4, %v21908_v3 }
 0x7e7   :  { %16667 = vmatprep.subr.bf16.mxu1 %v21909_v5 }
 0x7e8   :  { %v10088_v28 = vpop.f32.mrb[106].mxu1 }
 0x7e9   :  { %v12210_v44 = vsel %vm12132_vm5, %v10088_v28, 0.0  ;;  %v15944_v4 = vpop.f32.mrb[107].mxu1  ;;  %v6364_v28 = vadd.f32 %v21515_v1, %v20323_v25  ;;  %v6669_v25 = vld [vmem:[%s21769_s3 + $0x750] sm:$0xff] }
 0x7ea   :  { %v12211_v15 = vadd.f32 %v12210_v44, %v12209_v56  ;;  %v6664_v56 = vld [vmem:[%s21769_s3 + $0x728] sm:$0xff]  ;;  %v6667_v44 = vld [vmem:[%s21769_s3 + $0x740] sm:$0xff]  ;;  %v16708_v18 = vpack.c.bf16 %v6670_v30, %v6669_v25 }
 0x7eb   :  { %v16696_v40 = vpack.c.bf16 %v6664_v56, %v6663_v19  ;;  %v6668_v4 = vld [vmem:[%s21769_s3 + $0x748] sm:$0xff] }
 0x7ee   :  { %16670 = vmatpush3.bf16.xpose.msk.msra.mxu1 %vm19824_vm3, %v16668_v37  ;;  %v6428_v37 = vmax.f32 %v6364_v28, 0.0 }
 0x7ef   :  { %16671 = vmatprep.subr.bf16.mxu1 %v21909_v5 }
 0x7f5   :  { %16097 = vmatmul.mubr.msk.f32.vlgmr.msra.gmra.mrb[134].mxu1 %vm6691_vm2, %v6424_v9 }
 0x7f6   :  { %16674 = vmatpush3.bf16.xpose.msk.msra.mxu1 %vm19824_vm3, %v16672_v49  ;;  %16107 = vmatprep.mubr.msk.f32.mxu1 %vm17291_vm4, %v21908_v3 }
 0x7f7   :  { %16675 = vmatprep.subr.bf16.mxu1 %v21909_v5 }
 0x7f8   :  { %v10173_v23 = vpop.f32.mrb[108].mxu1 }
 0x7f9   :  { %v12212_v42 = vsel %vm12132_vm5, %v10173_v23, 0.0  ;;  %v15955_v2 = vpop.f32.mrb[109].mxu1  ;;  %v6671_v23 = vld [vmem:[%s21769_s3 + $0x760] sm:$0xff] }
 0x7fa   :  { %v12213_v7 = vadd.f32 %v12212_v42, %v12211_v15  ;;  %v16704_v15 = vpack.c.bf16 %v6668_v4, %v6667_v44  ;;  %v6672_v42 = vld [vmem:[%s21769_s3 + $0x768] sm:$0xff]  ;;  %v6369_v4 = vadd.f32 %v21515_v1, %v20356_v48  ;;  %v6689_v48 = vld [vmem:[%s21769_s3 + $0x7f0] sm:$0xff] }
 0x7fb   :  { %v16712_v2 = vpack.c.bf16 %v6672_v42, %v6671_v23  ;;  %v6370_v23 = vadd.f32 %v21515_v1, %v20353_v22 }
 0x7fc   :  { %v6433_v30 = vmax.f32 %v6369_v4, 0.0 }
 0x7fd   :  { %v6434_v42 = vmax.f32 %v6370_v23, 0.0  ;;  %v13699_v23 = vld [vmem:[%s21772_s4] ss:$0 sm:$0xff] }
 0x7fe   :  { %16678 = vmatpush3.bf16.xpose.msk.msra.mxu1 %vm19824_vm3, %v16676_v11  ;;  %v6674_v11 = vld [vmem:[%s21769_s3 + $0x778] sm:$0xff] }
 0x7ff   :  { %16679 = vmatprep.subr.bf16.mxu1 %v21909_v5 }
 0x805   :  { %16108 = vmatmul.mubr.msk.f32.vlgmr.msra.gmra.mrb[136].mxu1 %vm6691_vm2, %v6425_v34  ;;  %v16716_v34 = vpack.c.bf16 %v6674_v11, %v6673_v62 }
 0x806   :  { %16682 = vmatpush3.bf16.xpose.msk.msra.mxu1 %vm19824_vm3, %v16680_v24  ;;  %16118 = vmatprep.mubr.msk.f32.mxu1 %vm17291_vm4, %v21908_v3 }
 0x807   :  { %16683 = vmatprep.subr.bf16.mxu1 %v21909_v5 }
 0x808   :  { %v10258_v54 = vpop.f32.mrb[110].mxu1 }
 0x809   :  { %v12214_v43 = vsel %vm12132_vm5, %v10258_v54, 0.0  ;;  %v15966_v38 = vpop.f32.mrb[111].mxu1  ;;  %v6676_v54 = vld [vmem:[%s21769_s3 + $0x788] sm:$0xff] }
 0x80a   :  { %v12215_v51 = vadd.f32 %v12214_v43, %v12213_v7  ;;  %v6429_v7 = vmax.f32 %v6365_v20, 0.0  ;;  %v16720_v43 = vpack.c.bf16 %v6676_v54, %v6675_v0  ;;  %v6430_v38 = vmax.f32 %v6366_v47, 0.0 }
 0x80e   :  { %16686 = vmatpush3.bf16.xpose.msk.msra.mxu1 %vm19824_vm3, %v16684_v36 }
 0x80f   :  { %16687 = vmatprep.subr.bf16.mxu1 %v21909_v5 }
 0x815   :  { %16119 = vmatmul.mubr.msk.f32.vlgmr.msra.gmra.mrb[138].mxu1 %vm6691_vm2, %v6426_v52  ;;  %v6367_v52 = vadd.f32 %v21515_v1, %v20350_v58  ;;  %v6681_v58 = vld [vmem:[%s21769_s3 + $0x7b0] sm:$0xff] }
 0x816   :  { %16690 = vmatpush3.bf16.xpose.msk.msra.mxu1 %vm19824_vm3, %v16688_v17  ;;  %16129 = vmatprep.mubr.msk.f32.mxu1 %vm17291_vm4, %v21908_v3 }
 0x817   :  { %16691 = vmatprep.subr.bf16.mxu1 %v21909_v5 }
 0x818   :  { %v10343_v8 = vpop.f32.mrb[112].mxu1 }
 0x819   :  { %v12216_v21 = vsel %vm12132_vm5, %v10343_v8, 0.0  ;;  %v15977_v61 = vpop.f32.mrb[113].mxu1  ;;  %v16728_v8 = vpack.c.bf16 %v6680_v6, %v6679_v35 }
 0x81a   :  { %v12217_v29 = vadd.f32 %v12216_v21, %v12215_v51  ;;  %v6678_v51 = vld [vmem:[%s21769_s3 + $0x798] sm:$0xff]  ;;  %v6431_v21 = vmax.f32 %v6367_v52, 0.0 }
 0x81b   :  { %v16724_v17 = vpack.c.bf16 %v6678_v51, %v6677_v16  ;;  %v6682_v61 = vld [vmem:[%s21769_s3 + $0x7b8] sm:$0xff] }
 0x81c   :  { %v16732_v56 = vpack.c.bf16 %v6682_v61, %v6681_v58 }
 0x81e   :  { %16694 = vmatpush3.bf16.xpose.msk.msra.mxu1 %vm19824_vm3, %v16692_v57 }
 0x81f   :  { %16695 = vmatprep.subr.bf16.mxu1 %v21909_v5 }
 0x825   :  { %16130 = vmatmul.mubr.msk.f32.vlgmr.msra.gmra.mrb[140].mxu1 %vm6691_vm2, %v6427_v31  ;;  %v6683_v31 = vld [vmem:[%s21769_s3 + $0x7c0] sm:$0xff] }
 0x826   :  { %16698 = vmatpush3.bf16.xpose.msk.msra.mxu1 %vm19824_vm3, %v16696_v40  ;;  %16140 = vmatprep.mubr.msk.f32.mxu1 %vm17291_vm4, %v21908_v3  ;;  %v6368_v40 = vadd.f32 %v21515_v1, %v20347_v32  ;;  %v16736_v41 = vpack.c.bf16 %v6684_v39, %v6683_v31  ;;  %v6685_v32 = vld [vmem:[%s21769_s3 + $0x7d0] sm:$0xff] }
 0x827   :  { %16699 = vmatprep.subr.bf16.mxu1 %v21909_v5 }
 0x828   :  { %v10428_v45 = vpop.f32.mrb[114].mxu1 }
 0x829   :  { %v12218_v14 = vsel %vm12132_vm5, %v10428_v45, 0.0  ;;  %v15988_v26 = vpop.f32.mrb[115].mxu1  ;;  %v6432_v45 = vmax.f32 %v6368_v40, 0.0 }
 0x82a   :  { %v12219_v50 = vadd.f32 %v12218_v14, %v12217_v29  ;;  %v6686_v14 = vld [vmem:[%s21769_s3 + $0x7d8] sm:$0xff] }
 0x82b   :  { %v16740_v44 = vpack.c.bf16 %v6686_v14, %v6685_v32 }
 0x82e   :  { %16702 = vmatpush3.bf16.xpose.msk.msra.mxu1 %vm19824_vm3, %v16700_v46 }
 0x82f   :  { %16703 = vmatprep.subr.bf16.mxu1 %v21909_v5 }
 0x835   :  { %16141 = vmatmul.mubr.msk.f32.vlgmr.msra.gmra.mrb[142].mxu1 %vm6691_vm2, %v6428_v37  ;;  %v6688_v37 = vld [vmem:[%s21769_s3 + $0x7e8] sm:$0xff] }
 0x836   :  { %16706 = vmatpush3.bf16.xpose.msk.msra.mxu1 %vm19824_vm3, %v16704_v15  ;;  %16151 = vmatprep.mubr.msk.f32.mxu1 %vm17291_vm4, %v21908_v3  ;;  %v6687_v15 = vld [vmem:[%s21769_s3 + $0x7e0] sm:$0xff] }
 0x837   :  { %16707 = vmatprep.subr.bf16.mxu1 %v21909_v5  ;;  %v16744_v25 = vpack.c.bf16 %v6688_v37, %v6687_v15 }
 0x838   :  { %v10513_v27 = vpop.f32.mrb[116].mxu1 }
 0x839   :  { %v12220_v10 = vsel %vm12132_vm5, %v10513_v27, 0.0  ;;  %v15999_v49 = vpop.f32.mrb[117].mxu1  ;;  %v6690_v27 = vld [vmem:[%s21769_s3 + $0x7f8] sm:$0xff] }
 0x83a   :  { %v12221_v9 = vadd.f32 %v12220_v10, %v12219_v50  ;;  %v16748_v20 = vpack.c.bf16 %v6690_v27, %v6689_v48 }
 0x83e   :  { %16710 = vmatpush3.bf16.xpose.msk.msra.mxu1 %vm19824_vm3, %v16708_v18 }
 0x83f   :  { %16711 = vmatprep.subr.bf16.mxu1 %v21909_v5 }
 0x845   :  { %16152 = vmatmul.mubr.msk.f32.vlgmr.msra.gmra.mrb[144].mxu1 %vm6691_vm2, %v6429_v7 }
 0x846   :  { %16714 = vmatpush3.bf16.xpose.msk.msra.mxu1 %vm19824_vm3, %v16712_v2  ;;  %16162 = vmatprep.mubr.msk.f32.mxu1 %vm17291_vm4, %v21908_v3 }
 0x847   :  { %16715 = vmatprep.subr.bf16.mxu1 %v21909_v5 }
 0x848   :  { %v10598_v13 = vpop.f32.mrb[118].mxu1 }
 0x849   :  { %v12222_v55 = vsel %vm12132_vm5, %v10598_v13, 0.0  ;;  %v16010_v59 = vpop.f32.mrb[119].mxu1 }
 0x84a   :  { %v12223_v24 = vadd.f32 %v12222_v55, %v12221_v9 }
 0x84e   :  { %16718 = vmatpush3.bf16.xpose.msk.msra.mxu1 %vm19824_vm3, %v16716_v34 }
 0x84f   :  { %16719 = vmatprep.subr.bf16.mxu1 %v21909_v5 }
 0x855   :  { %16163 = vmatmul.mubr.msk.f32.vlgmr.msra.gmra.mrb[146].mxu1 %vm6691_vm2, %v6430_v38 }
 0x856   :  { %16722 = vmatpush3.bf16.xpose.msk.msra.mxu1 %vm19824_vm3, %v16720_v43  ;;  %16173 = vmatprep.mubr.msk.f32.mxu1 %vm17291_vm4, %v21908_v3 }
 0x857   :  { %16723 = vmatprep.subr.bf16.mxu1 %v21909_v5 }
 0x858   :  { %v10683_v36 = vpop.f32.mrb[120].mxu1 }
 0x859   :  { %v12224_v63 = vsel %vm12132_vm5, %v10683_v36, 0.0  ;;  %v16021_v53 = vpop.f32.mrb[121].mxu1 }
 0x85a   :  { %v12225_v60 = vadd.f32 %v12224_v63, %v12223_v24  ;;  %v12269_v63 = vld [vmem:[%s21771_s5] sm:$0xff]  ;;  %v12270_v53 = vld [vmem:[%s21771_s5 + $0x8] sm:$0xff] }
 0x85e   :  { %16726 = vmatpush3.bf16.xpose.msk.msra.mxu1 %vm19824_vm3, %v16724_v17 }
 0x85f   :  { %16727 = vmatprep.subr.bf16.mxu1 %v21909_v5 }
 0x865   :  { %16174 = vmatmul.mubr.msk.f32.vlgmr.msra.gmra.mrb[148].mxu1 %vm6691_vm2, %v6431_v21  ;;  %v12272_v21 = vld [vmem:[%s21771_s5 + $0x18] sm:$0xff] }
 0x866   :  { %16730 = vmatpush3.bf16.xpose.msk.msra.mxu1 %vm19824_vm3, %v16728_v8  ;;  %16184 = vmatprep.mubr.msk.f32.mxu1 %vm17291_vm4, %v21908_v3  ;;  %v12271_v8 = vld [vmem:[%s21771_s5 + $0x10] sm:$0xff] }
 0x867   :  { %16731 = vmatprep.subr.bf16.mxu1 %v21909_v5  ;;  %v16755_v58 = vpack.c.bf16 %v12272_v21, %v12271_v8 }
 0x868   :  { %v10768_v29 = vpop.f32.mrb[122].mxu1 }
 0x869   :  { %v12226_v57 = vsel %vm12132_vm5, %v10768_v29, 0.0  ;;  %v16032_v12 = vpop.f32.mrb[123].mxu1 }
 0x86a   :  { %v12227_v19 = vadd.f32 %v12226_v57, %v12225_v60  ;;  %v16752_v60 = vpack.c.bf16 %v12270_v53, %v12269_v63 }
 0x86e   :  { %16734 = vmatpush3.bf16.xpose.msk.msra.mxu1 %vm19824_vm3, %v16732_v56 }
 0x86f   :  { %16735 = vmatprep.subr.bf16.mxu1 %v21909_v5 }
 0x875   :  { %16185 = vmatmul.mubr.msk.f32.vlgmr.msra.gmra.mrb[150].mxu1 %vm6691_vm2, %v6432_v45 }
 0x876   :  { %16738 = vmatpush3.bf16.xpose.msk.msra.mxu1 %vm19824_vm3, %v16736_v41  ;;  %16195 = vmatprep.mubr.msk.f32.mxu1 %vm17291_vm4, %v21908_v3 }
 0x877   :  { %16739 = vmatprep.subr.bf16.mxu1 %v21909_v5 }
 0x878   :  { %v10853_v26 = vpop.f32.mrb[124].mxu1 }
 0x879   :  { %v12228_v50 = vsel %vm12132_vm5, %v10853_v26, 0.0  ;;  %v16043_v46 = vpop.f32.mrb[125].mxu1 }
 0x87a   :  { %v12229_v28 = vadd.f32 %v12228_v50, %v12227_v19 }
 0x87e   :  { %16742 = vmatpush3.bf16.xpose.msk.msra.mxu1 %vm19824_vm3, %v16740_v44 }
 0x87f   :  { %16743 = vmatprep.subr.bf16.mxu1 %v21909_v5 }
 0x885   :  { %16196 = vmatmul.mubr.msk.f32.vlgmr.msra.gmra.mrb[152].mxu1 %vm6691_vm2, %v6433_v30 }
 0x886   :  { %16746 = vmatpush3.bf16.xpose.msk.msra.mxu1 %vm19824_vm3, %v16744_v25  ;;  %16206 = vmatprep.mubr.msk.f32.mxu1 %vm17291_vm4, %v21908_v3 }
 0x887   :  { %16747 = vmatprep.subr.bf16.mxu1 %v21909_v5 }
 0x888   :  { %v10938_v10 = vpop.f32.mrb[126].mxu1 }
 0x889   :  { %v12230_v49 = vsel %vm12132_vm5, %v10938_v10, 0.0  ;;  %v16054_v9 = vpop.f32.mrb[127].mxu1 }
 0x88a   :  { %v12231_v18 = vadd.f32 %v12230_v49, %v12229_v28 }
 0x88e   :  { %16750 = vmatpush3.bf16.xpose.msk.msra.mxu1 %vm19824_vm3, %v16748_v20 }
 0x88f   :  { %16751 = vmatprep.subr.bf16.mxu1 %v21909_v5 }
 0x895   :  { %16207 = vmatmul.mubr.msk.f32.vlgmr.msra.gmra.mrb[154].mxu1 %vm6691_vm2, %v6434_v42 }
 0x896   :  { %16217 = vmatprep.mubr.msk.f32.mxu1 %vm17291_vm4, %v21908_v3  ;;  %16753 = vmatpush3.bf16.msra.mxu1 %v16752_v60 }
 0x897   :  { %16754 = vmatprep.subr.bf16.mxu1 %v21909_v5 }
 0x898   :  { %v11023_v2 = vpop.f32.mrb[128].mxu1 }
 0x899   :  { %v12232_v7 = vsel %vm12132_vm5, %v11023_v2, 0.0  ;;  %v16065_v62 = vpop.f32.mrb[129].mxu1 }
 0x89a   :  { %v12233_v11 = vadd.f32 %v12232_v7, %v12231_v18  ;;  %16756 = vmatpush3.bf16.msra.mxu1 %v16755_v58  ;;  %v12354_v7 = vld [vmem:[%s21773_s7] sm:$0xff]  ;;  %v12355_v62 = vld [vmem:[%s21773_s7 + $0x8] sm:$0xff] }
 0x89b   :  { %16757 = vmatprep.subr.bf16.mxu1 %v21909_v5 }
 0x8a8   :  { %v11108_v13 = vpop.f32.mrb[130].mxu1 }
 0x8a9   :  { %v12234_v33 = vsel %vm12132_vm5, %v11108_v13, 0.0  ;;  %v16076_v55 = vpop.f32.mrb[131].mxu1  ;;  %v16758_v13 = vpack.c.bf16 %v12355_v62, %v12354_v7 }
 0x8aa   :  { %v12235_v59 = vadd.f32 %v12234_v33, %v12233_v11  ;;  %v12356_v55 = vld [vmem:[%s21773_s7 + $0x10] sm:$0xff] }
 0x8b8   :  { %v11193_v24 = vpop.f32.mrb[132].mxu1 }
 0x8b9   :  { %v12236_v22 = vsel %vm12132_vm5, %v11193_v24, 0.0  ;;  %v16087_v1 = vpop.f32.mrb[133].mxu1 }
 0x8ba   :  { %v12237_v34 = vadd.f32 %v12236_v22, %v12235_v59  ;;  %v12357_v59 = vld [vmem:[%s21773_s7 + $0x18] sm:$0xff]  ;;  %v12358_v22 = vld [vmem:[%s21773_s7 + $0x20] sm:$0xff]  ;;  %v12359_v1 = vld [vmem:[%s21773_s7 + $0x28] sm:$0xff] }
 0x8bb   :  { %v16761_v24 = vpack.c.bf16 %v12357_v59, %v12356_v55 }
 0x8c8   :  { %v11278_v47 = vpop.f32.mrb[134].mxu1 }
 0x8c9   :  { %v12238_v0 = vsel %vm12132_vm5, %v11278_v47, 0.0  ;;  %v16098_v54 = vpop.f32.mrb[135].mxu1  ;;  %v12361_v47 = vld [vmem:[%s21773_s7 + $0x38] sm:$0xff] }
 0x8ca   :  { %v12239_v43 = vadd.f32 %v12238_v0, %v12237_v34  ;;  %v16764_v34 = vpack.c.bf16 %v12359_v1, %v12358_v22  ;;  %v13700_v54 = vld [vmem:[%s21775_s6] ss:$0 sm:$0xff] }
 0x8d8   :  { %v11363_v38 = vpop.f32.mrb[136].mxu1 }
 0x8d9   :  { %v12240_v16 = vsel %vm12132_vm5, %v11363_v38, 0.0  ;;  %v16109_v51 = vpop.f32.mrb[137].mxu1 }
 0x8da   :  { %v12241_v36 = vadd.f32 %v12240_v16, %v12239_v43 }
 0x8e8   :  { %v11448_v17 = vpop.f32.mrb[138].mxu1 }
 0x8e9   :  { %v12242_v52 = vsel %vm12132_vm5, %v11448_v17, 0.0  ;;  %v16120_v35 = vpop.f32.mrb[139].mxu1 }
 0x8ea   :  { %v12243_v6 = vadd.f32 %v12242_v52, %v12241_v36  ;;  %v13702_v36 = vld [vmem:[%s21776_s8] ss:$0 sm:$0xff] }
 0x8f8   :  { %v11533_v61 = vpop.f32.mrb[140].mxu1 }
 0x8f9   :  { %v12244_v29 = vsel %vm12132_vm5, %v11533_v61, 0.0  ;;  %v16131_v57 = vpop.f32.mrb[141].mxu1 }
 0x8fa   :  { %v12245_v12 = vadd.f32 %v12244_v29, %v12243_v6 }
 0x908   :  { %v11618_v19 = vpop.f32.mrb[142].mxu1 }
 0x909   :  { %v12246_v56 = vsel %vm12132_vm5, %v11618_v19, 0.0  ;;  %v16142_v40 = vpop.f32.mrb[143].mxu1 }
 0x90a   :  { %v12247_v31 = vadd.f32 %v12246_v56, %v12245_v12 }
 0x918   :  { %v11703_v39 = vpop.f32.mrb[144].mxu1 }
 0x919   :  { %v12248_v41 = vsel %vm12132_vm5, %v11703_v39, 0.0  ;;  %v16153_v45 = vpop.f32.mrb[145].mxu1 }
 0x91a   :  { %v12249_v32 = vadd.f32 %v12248_v41, %v12247_v31 }
 0x928   :  { %v11788_v14 = vpop.f32.mrb[146].mxu1 }
 0x929   :  { %v12250_v26 = vsel %vm12132_vm5, %v11788_v14, 0.0  ;;  %v16164_v50 = vpop.f32.mrb[147].mxu1 }
 0x92a   :  { %v12251_v46 = vadd.f32 %v12250_v26, %v12249_v32 }
 0x938   :  { %v11873_v28 = vpop.f32.mrb[148].mxu1 }
 0x939   :  { %v12252_v44 = vsel %vm12132_vm5, %v11873_v28, 0.0  ;;  %v16175_v4 = vpop.f32.mrb[149].mxu1 }
 0x93a   :  { %v12253_v15 = vadd.f32 %v12252_v44, %v12251_v46 }
 0x948   :  { %v11958_v37 = vpop.f32.mrb[150].mxu1 }
 0x949   :  { %v12254_v25 = vsel %vm12132_vm5, %v11958_v37, 0.0  ;;  %v16186_v30 = vpop.f32.mrb[151].mxu1 }
 0x94a   :  { %v12255_v48 = vadd.f32 %v12254_v25, %v12253_v15 }
 0x958   :  { %v12043_v27 = vpop.f32.mrb[152].mxu1 }
 0x959   :  { %v12256_v10 = vsel %vm12132_vm5, %v12043_v27, 0.0  ;;  %v16197_v49 = vpop.f32.mrb[153].mxu1 }
 0x95a   :  { %v12257_v9 = vadd.f32 %v12256_v10, %v12255_v48 }
 0x968   :  { %v12128_v18 = vpop.f32.mrb[154].mxu1 }
 0x969   :  { %v12258_v20 = vsel %vm12132_vm5, %v12128_v18, 0.0  ;;  %v16208_v42 = vpop.f32.mrb[155].mxu1 }
 0x96a   :  { %v12259_v2 = vadd.f32 %v12258_v20, %v12257_v9 }
 0x96c   :  { %v12267_v11 = vadd.f32 %v13699_v23, %v12259_v2 }
 0x96e   :  { %v12268_v33 = vmax.f32 %v12267_v11, 0.0 }
 0x970   :  { %12456 = vst.msk [vmem:[%s21774_s10] sm:$0xff] %vm12132_vm5, %v12268_v33  ;;  %16218 = vmatmul.mubr.msk.f32.vlgmr.msra.gmra.mrb[156].mxu1 %vm12132_vm5, %v12268_v33 }
 0x971   :  { %16759 = vmatpush3.bf16.msra.mxu1 %v16758_v13  ;;  %16236 = vmatprep.mubr.msk.f32.mxu1 %vm17291_vm4, %v21908_v3  ;;  %v12360_v3 = vld [vmem:[%s21773_s7 + $0x30] sm:$0xff] }
 0x972   :  { %16760 = vmatprep.subr.bf16.mxu1 %v21909_v5  ;;  %v16767_v0 = vpack.c.bf16 %v12361_v47, %v12360_v3 }
 0x975   :  { %16762 = vmatpush3.bf16.msra.mxu1 %v16761_v24 }
 0x976   :  { %16763 = vmatprep.subr.bf16.mxu1 %v21909_v5 }
 0x979   :  { %16765 = vmatpush3.bf16.msra.mxu1 %v16764_v34 }
 0x97a   :  { %16766 = vmatprep.subr.bf16.mxu1 %v21909_v5  ;;  %v17293_v5 = vmov 4  }
 0x97b   :  { %17287 = vset.pattern.permute.xlu0 %v17293_v5 }
 0x97d   :  { %16768 = vmatpush3.bf16.msra.mxu1 %v16767_v0 }
 0xa43   :  { %v12349_v43 = vpop.f32.mrb[156].mxu1 }
 0xa44   :  { %v12350_v38 = vadd.f32 %v13700_v54, %v12349_v43  ;;  %v16219_v16 = vpop.f32.mrb[157].mxu1 }
 0xa46   :  { %v12353_v51 = vmax.f32 %v12350_v38, 0.0 }
 0xa48   :  { %16237 = vmatmul.mubr.msk.f32.vlgmr.msra.gmra.mrb[158].mxu1 %vm12369_vm6, %v12353_v51 }
 0xb1b   :  { %v12439_v63 = vpop.f32.mrb[158].mxu1 }
 0xb1c   :  { %v12440_v53 = vadd.f32 %v13702_v36, %v12439_v63  ;;  %v16238_v60 = vpop.f32.mrb[159].mxu1 }
 0xb1e   :  { %v12449_v17 = vsel %vm166_vm1, %v12440_v53, 0.0 }
 0xb1f   :  { %12450 = vadd.xlane.f32.xlu0 %v12449_v17 }
 0xb35   :  { %12445 = vperm.xlu0 %17287, %v12440_v53  }
 0xbac   :  { %v12451_v52 = vpop.xlane.xlu0 %12450 }
 0xbad   :  { %v12453_v6 = vmul.f32 0.25, %v12451_v52 }
 0xbb4   :  { %v12446_v35 = vpop.permute.xlu0 %12445 }
 0xbb5   :  { %v12448_v8 = vadd.f32 %v12446_v35, %v12440_v53 }
 0xbb7   :  { %v12454_v21 = vsub.f32 %v12448_v8, %v12453_v6 }
 0xbb9   :  { %12455 = vst.msk [vmem:[%s21777_s9] sm:$0xff] %vm166_vm1, %v12454_v21 }

</bundles_post_ra>
